<compile_context>
chip_gen: v5e
topology: v5e:2x2
jax: 0.10.0
libtpu: 0.0.40
codegen_flags: <defaults>
</compile_context>

<pallas_src>
import functools

import jax
import jax.numpy as jnp
import numpy as np
from jax import lax
from jax.experimental import pallas as pl
from jax.experimental.pallas import tpu as pltpu

BN_EPS = 1e-5
LANE = 128


def _round_up(x, m):
    return (x + m - 1) // m * m


def _pad_last_dim(a, target):
    c = a.shape[-1]
    if c == target:
        return a
    pads = [(0, 0)] * (a.ndim - 1) + [(0, target - c)]
    return jnp.pad(a, pads)


def _pad_weight(w, cin_p, cout_p):
    # (KH, KW, Cin, Cout) -> zero-padded (KH, KW, cin_p, cout_p)
    kh, kw, cin, cout = w.shape
    return jnp.pad(w, ((0, 0), (0, 0), (0, cin_p - cin), (0, cout_p - cout)))


def _tn_for(cout):
    # 256-wide output tiles fill the 256-deep MXUs (v6e/v7x); 128 otherwise.
    return 256 if cout % 256 == 0 else 128


def _vmem_limit_bytes(block_bytes):
    # ~2x for double buffering + ~2x headroom for in-kernel temporaries; clamp
    # above the scoped defaults (16/32 MiB) and below v7x's 64 MiB physical.
    return int(min(max(4 * block_bytes, 32 * 1024 * 1024), 48 * 1024 * 1024))


# ----------------------------------------------------------------------------
# Stride-1 3x3 'same' conv kernel.  Zero-pads in-kernel (VMEM scratch), takes an
# optional fused input affine+ReLU (= BN of the previous conv) and an optional
# fused 1x1 projection-shortcut matmul (its LHS is the centre-tap slice).
# Emits per-sample partial (sum, sumsq) from the f32 accumulator so BN stats
# never re-read the conv output from HBM.
# ----------------------------------------------------------------------------
def _conv_s1_kernel(*refs, Ho, Wo, cin, has_affine, has_sc):
    i = 0
    x_ref = refs[i]; i += 1                         # (1, Ho, Wo, cin) bf16
    if has_affine:
        a_ref, b_ref = refs[i], refs[i + 1]; i += 2  # (1, cin) f32 each
    w_ref = refs[i]; i += 1                          # (9*cin, tn) bf16
    if has_sc:
        ws_ref = refs[i]; i += 1                     # (cin, tn) bf16
    o_ref, s_ref, q_ref = refs[i], refs[i + 1], refs[i + 2]; i += 3
    if has_sc:
        os_ref, ss_ref, qs_ref = refs[i], refs[i + 1], refs[i + 2]; i += 3
    pad_scr = refs[i]                                # (Ho+2, Wo+2, cin) bf16

    x = x_ref[0]                                     # (Ho, Wo, cin)
    if has_affine:
        # Fused BN1 affine + ReLU on conv2's input (VPU work, hides under MXU).
        a = a_ref[...].reshape(1, 1, cin)
        b = b_ref[...].reshape(1, 1, cin)
        x = jnp.maximum(x.astype(jnp.float32) * a + b, 0.0).astype(jnp.bfloat16)

    # In-kernel zero padding (scratch is re-zeroed every step so it is correct
    # under any megacore partitioning of the grid).
    pad_scr[...] = jnp.zeros_like(pad_scr)
    pad_scr[1:1 + Ho, 1:1 + Wo, :] = x

    m = Ho * Wo
    tn = w_ref.shape[-1]
    acc = jnp.zeros((m, tn), jnp.float32)
    center = None
    t = 0
    for ky in range(3):                              # statically unrolled taps
        for kx in range(3):
            piece = pad_scr[ky:ky + Ho, kx:kx + Wo, :].reshape(m, cin)
            if ky == 1 and kx == 1:
                center = piece                       # == unpadded input: 1x1 LHS
            acc = acc + jnp.dot(piece, w_ref[t * cin:(t + 1) * cin, :],
                                preferred_element_type=jnp.float32)
            t += 1

    o_ref[0] = acc.reshape(Ho, Wo, tn).astype(o_ref.dtype)
    s_ref[0] = jnp.sum(acc, axis=0)[None, :]
    q_ref[0] = jnp.sum(acc * acc, axis=0)[None, :]
    if has_sc:
        acc_s = jnp.dot(center, ws_ref[...], preferred_element_type=jnp.float32)
        os_ref[0] = acc_s.reshape(Ho, Wo, tn).astype(os_ref.dtype)
        ss_ref[0] = jnp.sum(acc_s, axis=0)[None, :]
        qs_ref[0] = jnp.sum(acc_s * acc_s, axis=0)[None, :]


def conv3x3_s1_bn_stats_pallas(x, w_flat, *, affine=None, ws_flat=None,
                               out_dtype=jnp.bfloat16):
    """Stride-1 3x3 'same' conv with fused BN partial stats.

    x: (N,H,W,Cin) bf16 lane-dense; w_flat: (9*Cin, Cout) bf16.
    affine: optional (scale, shift) f32 vectors applied (+ReLU) to x in-kernel.
    ws_flat: optional (Cin, Cout) bf16 fused 1x1 projection-shortcut weights.
    Returns (out, sum, sumsq[, out_s, sum_s, sumsq_s]); out bf16, stats f32.
    """
    N, H, W, Cin = x.shape
    Cout = w_flat.shape[-1]
    tn = _tn_for(Cout)
    n_ct = Cout // tn
    has_affine = affine is not None
    has_sc = ws_flat is not None
    assert not (has_affine and has_sc), "fused shortcut must see the raw input"

    inputs = [x]
    in_specs = [pl.BlockSpec((1, H, W, Cin), lambda n, j: (n, 0, 0, 0))]
    if has_affine:
        a, b = affine
        inputs += [a.reshape(1, Cin).astype(jnp.float32),
                   b.reshape(1, Cin).astype(jnp.float32)]
        in_specs += [pl.BlockSpec((1, Cin), lambda n, j: (0, 0)),
                     pl.BlockSpec((1, Cin), lambda n, j: (0, 0))]
    inputs.append(w_flat)
    in_specs.append(pl.BlockSpec((9 * Cin, tn), lambda n, j: (0, j)))
    if has_sc:
        inputs.append(ws_flat)
        in_specs.append(pl.BlockSpec((Cin, tn), lambda n, j: (0, j)))

    out_main = (
        jax.ShapeDtypeStruct((N, H, W, Cout), out_dtype),
        jax.ShapeDtypeStruct((N, 1, Cout), jnp.float32),
        jax.ShapeDtypeStruct((N, 1, Cout), jnp.float32),
    )
    spec_main = (
        pl.BlockSpec((1, H, W, tn), lambda n, j: (n, 0, 0, j)),
        pl.BlockSpec((1, 1, tn), lambda n, j: (n, 0, j)),
        pl.BlockSpec((1, 1, tn), lambda n, j: (n, 0, j)),
    )
    out_shape = out_main + (out_main if has_sc else ())
    out_specs = spec_main + (spec_main if has_sc else ())

    block_bytes = (H * W * Cin * 2                    # input block (bf16)
                   + 9 * Cin * tn * 2 + Cin * tn * 2  # weight tiles
                   + (2 if has_sc else 1) * H * W * tn * 2  # bf16 output tiles
                   + H * W * tn * 4                   # f32 accumulator
                   + (H + 2) * (W + 2) * Cin * 2)     # pad scratch
    kern = functools.partial(_conv_s1_kernel, Ho=H, Wo=W, cin=Cin,
                             has_affine=has_affine, has_sc=has_sc)
    return pl.pallas_call(
        kern,
        out_shape=out_shape,
        grid=(N, n_ct),
        in_specs=in_specs,
        out_specs=out_specs,
        scratch_shapes=[pltpu.VMEM((H + 2, W + 2, Cin), jnp.bfloat16)],
        compiler_params=pltpu.CompilerParams(
            dimension_semantics=("parallel", "parallel"),
            vmem_limit_bytes=_vmem_limit_bytes(block_bytes)),
    )(*inputs)


# ----------------------------------------------------------------------------
# Strided 3x3 'same' conv (downsampling conv1) fused with the 1x1/stride
# projection shortcut.  The padded input is stride-phase-decomposed once in
# glue so every tap is a contiguous in-kernel slice; the 1x1 shortcut LHS is
# exactly the centre tap (ky=1, kx=1) view that is already resident in VMEM.
# ----------------------------------------------------------------------------
def _conv_phase_sc_kernel(x_ref, w_ref, ws_ref, o_ref, s_ref, q_ref,
                          os_ref, ss_ref, qs_ref, *, tap_phase, center_tap,
                          Ho, Wo, cin):
    m = Ho * Wo
    tn = w_ref.shape[-1]
    acc = jnp.zeros((m, tn), jnp.float32)
    center = None
    for t, (p, r, c) in enumerate(tap_phase):        # statically unrolled
        piece = x_ref[p, r:r + Ho, c:c + Wo, :].reshape(m, cin)
        if t == center_tap:
            center = piece
        acc = acc + jnp.dot(piece, w_ref[t * cin:(t + 1) * cin, :],
                            preferred_element_type=jnp.float32)
    o_ref[0] = acc.reshape(Ho, Wo, tn).astype(o_ref.dtype)
    s_ref[0] = jnp.sum(acc, axis=0)[None, :]
    q_ref[0] = jnp.sum(acc * acc, axis=0)[None, :]
    acc_s = jnp.dot(center, ws_ref[...], preferred_element_type=jnp.float32)
    os_ref[0] = acc_s.reshape(Ho, Wo, tn).astype(os_ref.dtype)
    ss_ref[0] = jnp.sum(acc_s, axis=0)[None, :]
    qs_ref[0] = jnp.sum(acc_s * acc_s, axis=0)[None, :]


def conv3x3_strided_sc_bn_stats_pallas(x, w_flat, ws_flat, *, stride,
                                       out_dtype=jnp.bfloat16):
    N, H, W, Cin = x.shape
    Cout = w_flat.shape[-1]
    KH = KW = 3
    Ho = (H + 2 - KH) // stride + 1
    Wo = (W + 2 - KW) // stride + 1

    xp = jnp.pad(x, ((0, 0), (1, 1), (1, 1), (0, 0)))
    Hph = (KH - 1) // stride + Ho
    Wph = (KW - 1) // stride + Wo
    phase_list, tap_phase = [], []
    for ky in range(KH):
        for kx in range(KW):
            ph = (ky % stride, kx % stride)
            if ph not in phase_list:
                phase_list.append(ph)
            tap_phase.append((phase_list.index(ph), ky // stride, kx // stride))
    phases = []
    for (py, px) in phase_list:
        p = xp[:, py::stride, px::stride, :][:, :Hph, :Wph, :]
        dh, dw = Hph - p.shape[1], Wph - p.shape[2]
        if dh or dw:
            p = jnp.pad(p, ((0, 0), (0, dh), (0, dw), (0, 0)))
        phases.append(p)
    P = len(phase_list)
    xph = jnp.stack(phases, axis=1).reshape(N * P, Hph, Wph, Cin)
    center_tap = 1 * KW + 1   # tap (ky=1, kx=1): exactly the 1x1/stride LHS

    tn = _tn_for(Cout)
    n_ct = Cout // tn

    out_main = (
        jax.ShapeDtypeStruct((N, Ho, Wo, Cout), out_dtype),
        jax.ShapeDtypeStruct((N, 1, Cout), jnp.float32),
        jax.ShapeDtypeStruct((N, 1, Cout), jnp.float32),
    )
    spec_main = (
        pl.BlockSpec((1, Ho, Wo, tn), lambda n, j: (n, 0, 0, j)),
        pl.BlockSpec((1, 1, tn), lambda n, j: (n, 0, j)),
        pl.BlockSpec((1, 1, tn), lambda n, j: (n, 0, j)),
    )
    block_bytes = (P * Hph * Wph * Cin * 2 + 9 * Cin * tn * 2 + Cin * tn * 2
                   + 2 * Ho * Wo * tn * 2 + Ho * Wo * tn * 4)
    kern = functools.partial(_conv_phase_sc_kernel, tap_phase=tuple(tap_phase),
                             center_tap=center_tap, Ho=Ho, Wo=Wo, cin=Cin)
    return pl.pallas_call(
        kern,
        out_shape=out_main + out_main,
        grid=(N, n_ct),
        in_specs=[
            pl.BlockSpec((P, Hph, Wph, Cin), lambda n, j: (n, 0, 0, 0)),
            pl.BlockSpec((9 * Cin, tn), lambda n, j: (0, j)),
            pl.BlockSpec((Cin, tn), lambda n, j: (0, j)),
        ],
        out_specs=spec_main + spec_main,
        compiler_params=pltpu.CompilerParams(
            dimension_semantics=("parallel", "parallel"),
            vmem_limit_bytes=_vmem_limit_bytes(block_bytes)),
    )(xph, w_flat, ws_flat)


# ----------------------------------------------------------------------------
# BN fold (tiny per-channel glue) and the final fused apply kernel:
# BN2 affine + shortcut affine + residual add + ReLU, on lane-dense (rows, C).
# ----------------------------------------------------------------------------
def _fold_bn(ssum, ssq, count, gamma, beta):
    mean = ssum / count
    var = jnp.maximum(ssq / count - mean * mean, 0.0)   # biased (training) var
    scale = gamma * lax.rsqrt(var + BN_EPS)
    shift = beta - mean * scale
    return scale, shift


def _bn_add_relu_kernel(x_ref, a_ref, b_ref, r_ref, ra_ref, rb_ref, o_ref):
    y = x_ref[...].astype(jnp.float32) * a_ref[...] + b_ref[...]
    y = y + r_ref[...].astype(jnp.float32) * ra_ref[...] + rb_ref[...]
    o_ref[...] = jnp.maximum(y, 0.0)


def bn_add_relu_apply_pallas(x, scale, shift, resid, rscale, rshift):
    n, h, w, c = x.shape
    rows = n * h * w
    xf = x.reshape(rows, c)
    rf = resid.reshape(rows, c)
    tr = rows if rows <= 2048 else 2048               # large lane-dense blocks
    grid = (pl.cdiv(rows, tr),)
    blk = pl.BlockSpec((tr, c), lambda i: (i, 0))
    vec = pl.BlockSpec((1, c), lambda i: (0, 0))
    out = pl.pallas_call(
        _bn_add_relu_kernel,
        out_shape=jax.ShapeDtypeStruct((rows, c), jnp.float32),
        grid=grid,
        in_specs=[blk, vec, vec, blk, vec, vec],
        out_specs=blk,
        compiler_params=pltpu.CompilerParams(dimension_semantics=("parallel",)),
    )(xf, scale.reshape(1, c).astype(jnp.float32),
      shift.reshape(1, c).astype(jnp.float32),
      rf, rscale.reshape(1, c).astype(jnp.float32),
      rshift.reshape(1, c).astype(jnp.float32))
    return out.reshape(n, h, w, c)


# ----------------------------------------------------------------------------
# ResBlock forward (Pallas) and parameter init
# ----------------------------------------------------------------------------
def res_block_forward(x_nchw, params, *, stride):
    out_c = params["g1"].shape[0]
    x = jnp.transpose(x_nchw, (0, 2, 3, 1)).astype(jnp.float32)   # NCHW -> NHWC
    N, H, W, in_c = x.shape
    cin_p = _round_up(in_c, LANE)
    cout_p = _round_up(out_c, LANE)

    x_f32 = _pad_last_dim(x, cin_p)
    x_bf = x_f32.astype(jnp.bfloat16)

    w1f = _pad_weight(params["w1"], cin_p, cout_p).astype(jnp.bfloat16)
    w1f = w1f.reshape(9 * cin_p, cout_p)
    w2f = _pad_weight(params["w2"], cout_p, cout_p).astype(jnp.bfloat16)
    w2f = w2f.reshape(9 * cout_p, cout_p)
    g1 = _pad_last_dim(params["g1"], cout_p)
    b1 = _pad_last_dim(params["b1"], cout_p)
    g2 = _pad_last_dim(params["g2"], cout_p)
    b2 = _pad_last_dim(params["b2"], cout_p)

    has_proj = "ws" in params
    if has_proj:
        wsf = _pad_weight(params["ws"], cin_p, cout_p).astype(jnp.bfloat16)
        wsf = wsf.reshape(cin_p, cout_p)
        gs = _pad_last_dim(params["gs"], cout_p)
        bs = _pad_last_dim(params["bs"], cout_p)
    else:
        assert stride == 1, "stride != 1 requires a projection shortcut"

    # conv1 (+ fused 1x1 projection shortcut when present), fused BN stats
    if stride == 1:
        if has_proj:
            c1, s1, q1, cs, ss, qs = conv3x3_s1_bn_stats_pallas(x_bf, w1f, ws_flat=wsf)
        else:
            c1, s1, q1 = conv3x3_s1_bn_stats_pallas(x_bf, w1f)
    else:
        c1, s1, q1, cs, ss, qs = conv3x3_strided_sc_bn_stats_pallas(
            x_bf, w1f, wsf, stride=stride)

    cnt1 = float(N * c1.shape[1] * c1.shape[2])
    sc1, sh1 = _fold_bn(jnp.sum(s1, axis=(0, 1)), jnp.sum(q1, axis=(0, 1)),
                        cnt1, g1, b1)

    # conv2 (stride 1); BN1 affine + ReLU fused into its input path
    c2, s2, q2 = conv3x3_s1_bn_stats_pallas(c1, w2f, affine=(sc1, sh1))
    cnt2 = float(N * c2.shape[1] * c2.shape[2])
    sc2, sh2 = _fold_bn(jnp.sum(s2, axis=(0, 1)), jnp.sum(q2, axis=(0, 1)),
                        cnt2, g2, b2)

    if has_proj:
        cnts = float(N * cs.shape[1] * cs.shape[2])
        scs, shs = _fold_bn(jnp.sum(ss, axis=(0, 1)), jnp.sum(qs, axis=(0, 1)),
                            cnts, gs, bs)
        resid = cs
    else:
        resid = x_f32
        scs = jnp.ones((cout_p,), jnp.float32)
        shs = jnp.zeros((cout_p,), jnp.float32)

    # Fused: BN2 apply + shortcut-BN apply + residual add + final ReLU
    out = bn_add_relu_apply_pallas(c2, sc2, sh2, resid, scs, shs)
    out = out[..., :out_c]                            # drop channel padding
    return jnp.transpose(out, (0, 3, 1, 2))           # NHWC -> NCHW


def init_params(key, in_c, out_c, stride):
    ks = jax.random.split(key, 9)

    def conv_w(k, cout, cin, kh, kw):
        # PyTorch layout (cout, cin, kh, kw) -> kernel layout (kh, kw, cin, cout)
        w = 0.1 * jax.random.normal(k, (cout, cin, kh, kw), jnp.float32)
        return jnp.transpose(w, (2, 3, 1, 0))

    p = {
        "w1": conv_w(ks[0], out_c, in_c, 3, 3),
        "g1": 1.0 + 0.1 * jax.random.normal(ks[1], (out_c,), jnp.float32),
        "b1": 0.1 * jax.random.normal(ks[2], (out_c,), jnp.float32),
        "w2": conv_w(ks[3], out_c, out_c, 3, 3),
        "g2": 1.0 + 0.1 * jax.random.normal(ks[4], (out_c,), jnp.float32),
        "b2": 0.1 * jax.random.normal(ks[5], (out_c,), jnp.float32),
    }
    if stride != 1 or in_c != out_c:
        p["ws"] = conv_w(ks[6], out_c, in_c, 1, 1)
        p["gs"] = 1.0 + 0.1 * jax.random.normal(ks[7], (out_c,), jnp.float32)
        p["bs"] = 0.1 * jax.random.normal(ks[8], (out_c,), jnp.float32)
    return p


# ----------------------------------------------------------------------------
# Pure-JAX reference that mirrors the kernel's numerics (bf16 conv I/O, f32
# stats / affine); the only deviation from the fp32 PyTorch module is bf16
# rounding of activations at the conv boundaries.
# ----------------------------------------------------------------------------
def _ref_conv(x, w, stride, padding):
    dn = lax.conv_dimension_numbers(x.shape, w.shape, ("NHWC", "HWIO", "NHWC"))
    return lax.conv_general_dilated(
        x.astype(jnp.bfloat16), w.astype(jnp.bfloat16),
        (stride, stride), [(padding, padding), (padding, padding)],
        dimension_numbers=dn, preferred_element_type=jnp.float32)


def _ref_fold(c_f32, g, b):
    mean = c_f32.mean(axis=(0, 1, 2))
    var = ((c_f32 - mean) ** 2).mean(axis=(0, 1, 2))
    scale = g * lax.rsqrt(var + BN_EPS)
    shift = b - mean * scale
    return scale, shift


def res_block_ref(x_nchw, params, *, stride):
    x = jnp.transpose(x_nchw, (0, 2, 3, 1)).astype(jnp.float32)
    c1 = _ref_conv(x, params["w1"], stride, 1)
    sc1, sh1 = _ref_fold(c1, params["g1"], params["b1"])
    y1 = jnp.maximum(c1.astype(jnp.bfloat16).astype(jnp.float32) * sc1 + sh1, 0.0)
    c2 = _ref_conv(y1.astype(jnp.bfloat16), params["w2"], 1, 1)
    sc2, sh2 = _ref_fold(c2, params["g2"], params["b2"])
    left = c2.astype(jnp.bfloat16).astype(jnp.float32) * sc2 + sh2
    if "ws" in params:
        cs = _ref_conv(x, params["ws"], stride, 0)
        scs, shs = _ref_fold(cs, params["gs"], params["bs"])
        resid = cs.astype(jnp.bfloat16).astype(jnp.float32) * scs + shs
    else:
        resid = x
    return jnp.transpose(jnp.maximum(left + resid, 0.0), (0, 3, 1, 2))


if __name__ == "__main__":
    key = jax.random.PRNGKey(0)
    k1, k2, k3, k4, k5, k6 = jax.random.split(key, 6)
    # bf16 storage of conv outputs => up to ~1 bf16 ulp divergence on isolated
    # elements vs the reference, hence the atol below.
    RTOL, ATOL = 5e-3, 2e-2

    # Test 1: projection shortcut (stride=2, channel change) — NCHW like PyTorch.
    N, IN_C, OUT_C, H, W, STRIDE = 2, 4, 8, 16, 16, 2
    x = jax.random.normal(k1, (N, IN_C, H, W), jnp.float32)
    params = init_params(k2, IN_C, OUT_C, STRIDE)
    out = jax.block_until_ready(
        jax.jit(functools.partial(res_block_forward, stride=STRIDE))(x, params))
    ref = jax.block_until_ready(res_block_ref(x, params, stride=STRIDE))
    assert out.shape == (N, OUT_C, H // STRIDE, W // STRIDE), out.shape
    np.testing.assert_allclose(np.asarray(out), np.asarray(ref), rtol=RTOL, atol=ATOL)

    # Test 2: identity shortcut (stride=1, same channels).
    N2, C2, H2, W2 = 2, 8, 8, 8
    x2 = jax.random.normal(k3, (N2, C2, H2, W2), jnp.float32)
    p2 = init_params(k4, C2, C2, 1)
    out2 = jax.block_until_ready(
        jax.jit(functools.partial(res_block_forward, stride=1))(x2, p2))
    ref2 = jax.block_until_ready(res_block_ref(x2, p2, stride=1))
    assert out2.shape == (N2, C2, H2, W2), out2.shape
    np.testing.assert_allclose(np.asarray(out2), np.asarray(ref2), rtol=RTOL, atol=ATOL)

    # Test 3: projection shortcut with stride=1 (channel change only).
    N3, IN3, OUT3, H3, W3 = 1, 4, 8, 8, 8
    x3 = jax.random.normal(k5, (N3, IN3, H3, W3), jnp.float32)
    p3 = init_params(k6, IN3, OUT3, 1)
    out3 = jax.block_until_ready(
        jax.jit(functools.partial(res_block_forward, stride=1))(x3, p3))
    ref3 = jax.block_until_ready(res_block_ref(x3, p3, stride=1))
    assert out3.shape == (N3, OUT3, H3, W3), out3.shape
    np.testing.assert_allclose(np.asarray(out3), np.asarray(ref3), rtol=RTOL, atol=ATOL)

    print("KERNEL_OK")
</pallas_src>

<mosaic_0001>
module attributes {stable_mosaic.version = 11 : i64} {
  func.func @_conv_phase_sc_kernel(%arg0: i32, %arg1: i32, %arg2: memref<4x9x9x128xbf16, #tpu.memory_space<vmem>>, %arg3: memref<1152x128xbf16, #tpu.memory_space<vmem>>, %arg4: memref<128x128xbf16, #tpu.memory_space<vmem>>, %arg5: memref<1x8x8x128xbf16, #tpu.memory_space<vmem>>, %arg6: memref<1x1x128xf32, #tpu.memory_space<vmem>>, %arg7: memref<1x1x128xf32, #tpu.memory_space<vmem>>, %arg8: memref<1x8x8x128xbf16, #tpu.memory_space<vmem>>, %arg9: memref<1x1x128xf32, #tpu.memory_space<vmem>>, %arg10: memref<1x1x128xf32, #tpu.memory_space<vmem>>) attributes {dimension_semantics = [#tpu.dimension_semantics<parallel>, #tpu.dimension_semantics<parallel>], iteration_bounds = array<i64: 2, 1>, scalar_prefetch = 0 : i64, scratch_operands = 0 : i64, tpu.core_type = #tpu.core_type<tc>, window_params = [{transform_indices = @transform_0, window_bounds = array<i64: 4, 9, 9, 128>}, {transform_indices = @transform_1, window_bounds = array<i64: 1152, 128>}, {transform_indices = @transform_2, window_bounds = array<i64: 128, 128>}, {transform_indices = @transform_3, window_bounds = array<i64: 1, 8, 8, 128>}, {transform_indices = @transform_4, window_bounds = array<i64: 1, 1, 128>}, {transform_indices = @transform_5, window_bounds = array<i64: 1, 1, 128>}, {transform_indices = @transform_6, window_bounds = array<i64: 1, 8, 8, 128>}, {transform_indices = @transform_7, window_bounds = array<i64: 1, 1, 128>}, {transform_indices = @transform_8, window_bounds = array<i64: 1, 1, 128>}]} {
    %cst = arith.constant 0.000000e+00 : f32
    %0 = vector.broadcast %cst : f32 to vector<64x128xf32>
    %c0 = arith.constant 0 : index
    %c0_0 = arith.constant 0 : index
    %c0_1 = arith.constant 0 : index
    %c0_2 = arith.constant 0 : index
    %1 = vector.load %arg2[%c0, %c0_0, %c0_1, %c0_2] : memref<4x9x9x128xbf16, #tpu.memory_space<vmem>>, vector<1x8x8x128xbf16>
    %2 = vector.shape_cast %1 : vector<1x8x8x128xbf16> to vector<8x8x128xbf16>
    %3 = vector.shape_cast %2 : vector<8x8x128xbf16> to vector<64x128xbf16>
    %c0_3 = arith.constant 0 : index
    %c0_4 = arith.constant 0 : index
    %4 = vector.load %arg3[%c0_3, %c0_4] : memref<1152x128xbf16, #tpu.memory_space<vmem>>, vector<128x128xbf16>
    %cst_5 = arith.constant dense<0.000000e+00> : vector<64x128xf32>
    %5 = tpu.matmul %3, %4, %cst_5 {dimension_numbers = #tpu.dot_dimension_numbers<[1], [0], [0], [1], [0, 0, 1, 1], [], []>} : vector<64x128xbf16>, vector<128x128xbf16>, vector<64x128xf32> -> vector<64x128xf32>
    %6 = arith.addf %0, %5 : vector<64x128xf32>
    %c1 = arith.constant 1 : index
    %c0_6 = arith.constant 0 : index
    %c0_7 = arith.constant 0 : index
    %c0_8 = arith.constant 0 : index
    %7 = vector.load %arg2[%c1, %c0_6, %c0_7, %c0_8] : memref<4x9x9x128xbf16, #tpu.memory_space<vmem>>, vector<1x8x8x128xbf16>
    %8 = vector.shape_cast %7 : vector<1x8x8x128xbf16> to vector<8x8x128xbf16>
    %9 = vector.shape_cast %8 : vector<8x8x128xbf16> to vector<64x128xbf16>
    %c128 = arith.constant 128 : index
    %c0_9 = arith.constant 0 : index
    %10 = vector.load %arg3[%c128, %c0_9] : memref<1152x128xbf16, #tpu.memory_space<vmem>>, vector<128x128xbf16>
    %cst_10 = arith.constant dense<0.000000e+00> : vector<64x128xf32>
    %11 = tpu.matmul %9, %10, %cst_10 {dimension_numbers = #tpu.dot_dimension_numbers<[1], [0], [0], [1], [0, 0, 1, 1], [], []>} : vector<64x128xbf16>, vector<128x128xbf16>, vector<64x128xf32> -> vector<64x128xf32>
    %12 = arith.addf %6, %11 : vector<64x128xf32>
    %c0_11 = arith.constant 0 : index
    %c0_12 = arith.constant 0 : index
    %c1_13 = arith.constant 1 : index
    %c0_14 = arith.constant 0 : index
    %13 = vector.load %arg2[%c0_11, %c0_12, %c1_13, %c0_14] : memref<4x9x9x128xbf16, #tpu.memory_space<vmem>>, vector<1x8x8x128xbf16>
    %14 = vector.shape_cast %13 : vector<1x8x8x128xbf16> to vector<8x8x128xbf16>
    %15 = vector.shape_cast %14 : vector<8x8x128xbf16> to vector<64x128xbf16>
    %c256 = arith.constant 256 : index
    %c0_15 = arith.constant 0 : index
    %16 = vector.load %arg3[%c256, %c0_15] : memref<1152x128xbf16, #tpu.memory_space<vmem>>, vector<128x128xbf16>
    %cst_16 = arith.constant dense<0.000000e+00> : vector<64x128xf32>
    %17 = tpu.matmul %15, %16, %cst_16 {dimension_numbers = #tpu.dot_dimension_numbers<[1], [0], [0], [1], [0, 0, 1, 1], [], []>} : vector<64x128xbf16>, vector<128x128xbf16>, vector<64x128xf32> -> vector<64x128xf32>
    %18 = arith.addf %12, %17 : vector<64x128xf32>
    %c2 = arith.constant 2 : index
    %c0_17 = arith.constant 0 : index
    %c0_18 = arith.constant 0 : index
    %c0_19 = arith.constant 0 : index
    %19 = vector.load %arg2[%c2, %c0_17, %c0_18, %c0_19] : memref<4x9x9x128xbf16, #tpu.memory_space<vmem>>, vector<1x8x8x128xbf16>
    %20 = vector.shape_cast %19 : vector<1x8x8x128xbf16> to vector<8x8x128xbf16>
    %21 = vector.shape_cast %20 : vector<8x8x128xbf16> to vector<64x128xbf16>
    %c384 = arith.constant 384 : index
    %c0_20 = arith.constant 0 : index
    %22 = vector.load %arg3[%c384, %c0_20] : memref<1152x128xbf16, #tpu.memory_space<vmem>>, vector<128x128xbf16>
    %cst_21 = arith.constant dense<0.000000e+00> : vector<64x128xf32>
    %23 = tpu.matmul %21, %22, %cst_21 {dimension_numbers = #tpu.dot_dimension_numbers<[1], [0], [0], [1], [0, 0, 1, 1], [], []>} : vector<64x128xbf16>, vector<128x128xbf16>, vector<64x128xf32> -> vector<64x128xf32>
    %24 = arith.addf %18, %23 : vector<64x128xf32>
    %c3 = arith.constant 3 : index
    %c0_22 = arith.constant 0 : index
    %c0_23 = arith.constant 0 : index
    %c0_24 = arith.constant 0 : index
    %25 = vector.load %arg2[%c3, %c0_22, %c0_23, %c0_24] : memref<4x9x9x128xbf16, #tpu.memory_space<vmem>>, vector<1x8x8x128xbf16>
    %26 = vector.shape_cast %25 : vector<1x8x8x128xbf16> to vector<8x8x128xbf16>
    %27 = vector.shape_cast %26 : vector<8x8x128xbf16> to vector<64x128xbf16>
    %c512 = arith.constant 512 : index
    %c0_25 = arith.constant 0 : index
    %28 = vector.load %arg3[%c512, %c0_25] : memref<1152x128xbf16, #tpu.memory_space<vmem>>, vector<128x128xbf16>
    %cst_26 = arith.constant dense<0.000000e+00> : vector<64x128xf32>
    %29 = tpu.matmul %27, %28, %cst_26 {dimension_numbers = #tpu.dot_dimension_numbers<[1], [0], [0], [1], [0, 0, 1, 1], [], []>} : vector<64x128xbf16>, vector<128x128xbf16>, vector<64x128xf32> -> vector<64x128xf32>
    %30 = arith.addf %24, %29 : vector<64x128xf32>
    %c2_27 = arith.constant 2 : index
    %c0_28 = arith.constant 0 : index
    %c1_29 = arith.constant 1 : index
    %c0_30 = arith.constant 0 : index
    %31 = vector.load %arg2[%c2_27, %c0_28, %c1_29, %c0_30] : memref<4x9x9x128xbf16, #tpu.memory_space<vmem>>, vector<1x8x8x128xbf16>
    %32 = vector.shape_cast %31 : vector<1x8x8x128xbf16> to vector<8x8x128xbf16>
    %33 = vector.shape_cast %32 : vector<8x8x128xbf16> to vector<64x128xbf16>
    %c640 = arith.constant 640 : index
    %c0_31 = arith.constant 0 : index
    %34 = vector.load %arg3[%c640, %c0_31] : memref<1152x128xbf16, #tpu.memory_space<vmem>>, vector<128x128xbf16>
    %cst_32 = arith.constant dense<0.000000e+00> : vector<64x128xf32>
    %35 = tpu.matmul %33, %34, %cst_32 {dimension_numbers = #tpu.dot_dimension_numbers<[1], [0], [0], [1], [0, 0, 1, 1], [], []>} : vector<64x128xbf16>, vector<128x128xbf16>, vector<64x128xf32> -> vector<64x128xf32>
    %36 = arith.addf %30, %35 : vector<64x128xf32>
    %c0_33 = arith.constant 0 : index
    %c1_34 = arith.constant 1 : index
    %c0_35 = arith.constant 0 : index
    %c0_36 = arith.constant 0 : index
    %37 = vector.load %arg2[%c0_33, %c1_34, %c0_35, %c0_36] : memref<4x9x9x128xbf16, #tpu.memory_space<vmem>>, vector<1x8x8x128xbf16>
    %38 = vector.shape_cast %37 : vector<1x8x8x128xbf16> to vector<8x8x128xbf16>
    %39 = vector.shape_cast %38 : vector<8x8x128xbf16> to vector<64x128xbf16>
    %c768 = arith.constant 768 : index
    %c0_37 = arith.constant 0 : index
    %40 = vector.load %arg3[%c768, %c0_37] : memref<1152x128xbf16, #tpu.memory_space<vmem>>, vector<128x128xbf16>
    %cst_38 = arith.constant dense<0.000000e+00> : vector<64x128xf32>
    %41 = tpu.matmul %39, %40, %cst_38 {dimension_numbers = #tpu.dot_dimension_numbers<[1], [0], [0], [1], [0, 0, 1, 1], [], []>} : vector<64x128xbf16>, vector<128x128xbf16>, vector<64x128xf32> -> vector<64x128xf32>
    %42 = arith.addf %36, %41 : vector<64x128xf32>
    %c1_39 = arith.constant 1 : index
    %c1_40 = arith.constant 1 : index
    %c0_41 = arith.constant 0 : index
    %c0_42 = arith.constant 0 : index
    %43 = vector.load %arg2[%c1_39, %c1_40, %c0_41, %c0_42] : memref<4x9x9x128xbf16, #tpu.memory_space<vmem>>, vector<1x8x8x128xbf16>
    %44 = vector.shape_cast %43 : vector<1x8x8x128xbf16> to vector<8x8x128xbf16>
    %45 = vector.shape_cast %44 : vector<8x8x128xbf16> to vector<64x128xbf16>
    %c896 = arith.constant 896 : index
    %c0_43 = arith.constant 0 : index
    %46 = vector.load %arg3[%c896, %c0_43] : memref<1152x128xbf16, #tpu.memory_space<vmem>>, vector<128x128xbf16>
    %cst_44 = arith.constant dense<0.000000e+00> : vector<64x128xf32>
    %47 = tpu.matmul %45, %46, %cst_44 {dimension_numbers = #tpu.dot_dimension_numbers<[1], [0], [0], [1], [0, 0, 1, 1], [], []>} : vector<64x128xbf16>, vector<128x128xbf16>, vector<64x128xf32> -> vector<64x128xf32>
    %48 = arith.addf %42, %47 : vector<64x128xf32>
    %c0_45 = arith.constant 0 : index
    %c1_46 = arith.constant 1 : index
    %c1_47 = arith.constant 1 : index
    %c0_48 = arith.constant 0 : index
    %49 = vector.load %arg2[%c0_45, %c1_46, %c1_47, %c0_48] : memref<4x9x9x128xbf16, #tpu.memory_space<vmem>>, vector<1x8x8x128xbf16>
    %50 = vector.shape_cast %49 : vector<1x8x8x128xbf16> to vector<8x8x128xbf16>
    %51 = vector.shape_cast %50 : vector<8x8x128xbf16> to vector<64x128xbf16>
    %c1024 = arith.constant 1024 : index
    %c0_49 = arith.constant 0 : index
    %52 = vector.load %arg3[%c1024, %c0_49] : memref<1152x128xbf16, #tpu.memory_space<vmem>>, vector<128x128xbf16>
    %cst_50 = arith.constant dense<0.000000e+00> : vector<64x128xf32>
    %53 = tpu.matmul %51, %52, %cst_50 {dimension_numbers = #tpu.dot_dimension_numbers<[1], [0], [0], [1], [0, 0, 1, 1], [], []>} : vector<64x128xbf16>, vector<128x128xbf16>, vector<64x128xf32> -> vector<64x128xf32>
    %54 = arith.addf %48, %53 : vector<64x128xf32>
    %55 = vector.shape_cast %54 : vector<64x128xf32> to vector<8x8x128xf32>
    %56 = arith.truncf %55 : vector<8x8x128xf32> to vector<8x8x128xbf16>
    %c0_51 = arith.constant 0 : index
    %c0_52 = arith.constant 0 : index
    %c0_53 = arith.constant 0 : index
    %c0_54 = arith.constant 0 : index
    %57 = vector.load %arg5[%c0_51, %c0_52, %c0_53, %c0_54] : memref<1x8x8x128xbf16, #tpu.memory_space<vmem>>, vector<1x8x8x128xbf16>
    %58 = vector.shape_cast %57 : vector<1x8x8x128xbf16> to vector<8x8x128xbf16>
    %59 = vector.shape_cast %56 : vector<8x8x128xbf16> to vector<1x8x8x128xbf16>
    tpu.vector_store %arg5[%c0_51, %c0_52, %c0_53, %c0_54], %59 {strides = array<i32>} : memref<1x8x8x128xbf16, #tpu.memory_space<vmem>>, vector<1x8x8x128xbf16>,
    %cst_55 = arith.constant dense<0.000000e+00> : vector<128xf32>
    %60 = vector.multi_reduction <add>, %54, %cst_55 [0] : vector<64x128xf32> to vector<128xf32>
    %61 = vector.shape_cast %60 : vector<128xf32> to vector<1x128xf32>
    %c0_56 = arith.constant 0 : index
    %c0_57 = arith.constant 0 : index
    %c0_58 = arith.constant 0 : index
    %62 = vector.load %arg6[%c0_56, %c0_57, %c0_58] : memref<1x1x128xf32, #tpu.memory_space<vmem>>, vector<1x1x128xf32>
    %63 = vector.shape_cast %62 : vector<1x1x128xf32> to vector<1x128xf32>
    %64 = vector.shape_cast %61 : vector<1x128xf32> to vector<1x1x128xf32>
    tpu.vector_store %arg6[%c0_56, %c0_57, %c0_58], %64 {strides = array<i32>} : memref<1x1x128xf32, #tpu.memory_space<vmem>>, vector<1x1x128xf32>,
    %65 = arith.mulf %54, %54 : vector<64x128xf32>
    %cst_59 = arith.constant dense<0.000000e+00> : vector<128xf32>
    %66 = vector.multi_reduction <add>, %65, %cst_59 [0] : vector<64x128xf32> to vector<128xf32>
    %67 = vector.shape_cast %66 : vector<128xf32> to vector<1x128xf32>
    %c0_60 = arith.constant 0 : index
    %c0_61 = arith.constant 0 : index
    %c0_62 = arith.constant 0 : index
    %68 = vector.load %arg7[%c0_60, %c0_61, %c0_62] : memref<1x1x128xf32, #tpu.memory_space<vmem>>, vector<1x1x128xf32>
    %69 = vector.shape_cast %68 : vector<1x1x128xf32> to vector<1x128xf32>
    %70 = vector.shape_cast %67 : vector<1x128xf32> to vector<1x1x128xf32>
    tpu.vector_store %arg7[%c0_60, %c0_61, %c0_62], %70 {strides = array<i32>} : memref<1x1x128xf32, #tpu.memory_space<vmem>>, vector<1x1x128xf32>,
    %c0_63 = arith.constant 0 : index
    %c0_64 = arith.constant 0 : index
    %71 = vector.load %arg4[%c0_63, %c0_64] : memref<128x128xbf16, #tpu.memory_space<vmem>>, vector<128x128xbf16>
    %cst_65 = arith.constant dense<0.000000e+00> : vector<64x128xf32>
    %72 = tpu.matmul %27, %71, %cst_65 {dimension_numbers = #tpu.dot_dimension_numbers<[1], [0], [0], [1], [0, 0, 1, 1], [], []>} : vector<64x128xbf16>, vector<128x128xbf16>, vector<64x128xf32> -> vector<64x128xf32>
    %73 = vector.shape_cast %72 : vector<64x128xf32> to vector<8x8x128xf32>
    %74 = arith.truncf %73 : vector<8x8x128xf32> to vector<8x8x128xbf16>
    %c0_66 = arith.constant 0 : index
    %c0_67 = arith.constant 0 : index
    %c0_68 = arith.constant 0 : index
    %c0_69 = arith.constant 0 : index
    %75 = vector.load %arg8[%c0_66, %c0_67, %c0_68, %c0_69] : memref<1x8x8x128xbf16, #tpu.memory_space<vmem>>, vector<1x8x8x128xbf16>
    %76 = vector.shape_cast %75 : vector<1x8x8x128xbf16> to vector<8x8x128xbf16>
    %77 = vector.shape_cast %74 : vector<8x8x128xbf16> to vector<1x8x8x128xbf16>
    tpu.vector_store %arg8[%c0_66, %c0_67, %c0_68, %c0_69], %77 {strides = array<i32>} : memref<1x8x8x128xbf16, #tpu.memory_space<vmem>>, vector<1x8x8x128xbf16>,
    %cst_70 = arith.constant dense<0.000000e+00> : vector<128xf32>
    %78 = vector.multi_reduction <add>, %72, %cst_70 [0] : vector<64x128xf32> to vector<128xf32>
    %79 = vector.shape_cast %78 : vector<128xf32> to vector<1x128xf32>
    %c0_71 = arith.constant 0 : index
    %c0_72 = arith.constant 0 : index
    %c0_73 = arith.constant 0 : index
    %80 = vector.load %arg9[%c0_71, %c0_72, %c0_73] : memref<1x1x128xf32, #tpu.memory_space<vmem>>, vector<1x1x128xf32>
    %81 = vector.shape_cast %80 : vector<1x1x128xf32> to vector<1x128xf32>
    %82 = vector.shape_cast %79 : vector<1x128xf32> to vector<1x1x128xf32>
    tpu.vector_store %arg9[%c0_71, %c0_72, %c0_73], %82 {strides = array<i32>} : memref<1x1x128xf32, #tpu.memory_space<vmem>>, vector<1x1x128xf32>,
    %83 = arith.mulf %72, %72 : vector<64x128xf32>
    %cst_74 = arith.constant dense<0.000000e+00> : vector<128xf32>
    %84 = vector.multi_reduction <add>, %83, %cst_74 [0] : vector<64x128xf32> to vector<128xf32>
    %85 = vector.shape_cast %84 : vector<128xf32> to vector<1x128xf32>
    %c0_75 = arith.constant 0 : index
    %c0_76 = arith.constant 0 : index
    %c0_77 = arith.constant 0 : index
    %86 = vector.load %arg10[%c0_75, %c0_76, %c0_77] : memref<1x1x128xf32, #tpu.memory_space<vmem>>, vector<1x1x128xf32>
    %87 = vector.shape_cast %86 : vector<1x1x128xf32> to vector<1x128xf32>
    %88 = vector.shape_cast %85 : vector<1x128xf32> to vector<1x1x128xf32>
    tpu.vector_store %arg10[%c0_75, %c0_76, %c0_77], %88 {strides = array<i32>} : memref<1x1x128xf32, #tpu.memory_space<vmem>>, vector<1x1x128xf32>,
    return
  }
  func.func @transform_0(%arg0: i32, %arg1: i32) -> (i32, i32, i32, i32) {
    %c0_i32 = arith.constant 0 : i32
    %c0_i32_0 = arith.constant 0 : i32
    %c0_i32_1 = arith.constant 0 : i32
    %c0_i32_2 = arith.constant 0 : i32
    return %arg0, %c0_i32, %c0_i32_0, %c0_i32_1 : i32, i32, i32, i32
  }
  func.func @transform_1(%arg0: i32, %arg1: i32) -> (i32, i32) {
    %c0_i32 = arith.constant 0 : i32
    %c0_i32_0 = arith.constant 0 : i32
    return %c0_i32, %arg1 : i32, i32
  }
  func.func @transform_2(%arg0: i32, %arg1: i32) -> (i32, i32) {
    %c0_i32 = arith.constant 0 : i32
    %c0_i32_0 = arith.constant 0 : i32
    return %c0_i32, %arg1 : i32, i32
  }
  func.func @transform_3(%arg0: i32, %arg1: i32) -> (i32, i32, i32, i32) {
    %c0_i32 = arith.constant 0 : i32
    %c0_i32_0 = arith.constant 0 : i32
    %c0_i32_1 = arith.constant 0 : i32
    return %arg0, %c0_i32, %c0_i32_0, %arg1 : i32, i32, i32, i32
  }
  func.func @transform_4(%arg0: i32, %arg1: i32) -> (i32, i32, i32) {
    %c0_i32 = arith.constant 0 : i32
    %c0_i32_0 = arith.constant 0 : i32
    return %arg0, %c0_i32, %arg1 : i32, i32, i32
  }
  func.func @transform_5(%arg0: i32, %arg1: i32) -> (i32, i32, i32) {
    %c0_i32 = arith.constant 0 : i32
    %c0_i32_0 = arith.constant 0 : i32
    return %arg0, %c0_i32, %arg1 : i32, i32, i32
  }
  func.func @transform_6(%arg0: i32, %arg1: i32) -> (i32, i32, i32, i32) {
    %c0_i32 = arith.constant 0 : i32
    %c0_i32_0 = arith.constant 0 : i32
    %c0_i32_1 = arith.constant 0 : i32
    return %arg0, %c0_i32, %c0_i32_0, %arg1 : i32, i32, i32, i32
  }
  func.func @transform_7(%arg0: i32, %arg1: i32) -> (i32, i32, i32) {
    %c0_i32 = arith.constant 0 : i32
    %c0_i32_0 = arith.constant 0 : i32
    return %arg0, %c0_i32, %arg1 : i32, i32, i32
  }
  func.func @transform_8(%arg0: i32, %arg1: i32) -> (i32, i32, i32) {
    %c0_i32 = arith.constant 0 : i32
    %c0_i32_0 = arith.constant 0 : i32
    return %arg0, %c0_i32, %arg1 : i32, i32, i32
  }
}

module attributes {stable_mosaic.version = 11 : i64} {
  func.func @_bn_add_relu_kernel(%arg0: i32, %arg1: memref<128x128xbf16, #tpu.memory_space<vmem>>, %arg2: memref<1x128xf32, #tpu.memory_space<vmem>>, %arg3: memref<1x128xf32, #tpu.memory_space<vmem>>, %arg4: memref<128x128xbf16, #tpu.memory_space<vmem>>, %arg5: memref<1x128xf32, #tpu.memory_space<vmem>>, %arg6: memref<1x128xf32, #tpu.memory_space<vmem>>, %arg7: memref<128x128xf32, #tpu.memory_space<vmem>>) attributes {dimension_semantics = [#tpu.dimension_semantics<parallel>], iteration_bounds = array<i64: 1>, scalar_prefetch = 0 : i64, scratch_operands = 0 : i64, tpu.core_type = #tpu.core_type<tc>, window_params = [{transform_indices = @transform_0, window_bounds = array<i64: 128, 128>}, {pipeline_mode = #tpu.pipeline_mode<synchronous>, transform_indices = @transform_1, window_bounds = array<i64: 1, 128>}, {pipeline_mode = #tpu.pipeline_mode<synchronous>, transform_indices = @transform_2, window_bounds = array<i64: 1, 128>}, {transform_indices = @transform_3, window_bounds = array<i64: 128, 128>}, {pipeline_mode = #tpu.pipeline_mode<synchronous>, transform_indices = @transform_4, window_bounds = array<i64: 1, 128>}, {pipeline_mode = #tpu.pipeline_mode<synchronous>, transform_indices = @transform_5, window_bounds = array<i64: 1, 128>}, {transform_indices = @transform_6, window_bounds = array<i64: 128, 128>}]} {
    %c0 = arith.constant 0 : index
    %c0_0 = arith.constant 0 : index
    %0 = vector.load %arg1[%c0, %c0_0] : memref<128x128xbf16, #tpu.memory_space<vmem>>, vector<128x128xbf16>
    %1 = arith.extf %0 : vector<128x128xbf16> to vector<128x128xf32>
    %c0_1 = arith.constant 0 : index
    %c0_2 = arith.constant 0 : index
    %2 = vector.load %arg2[%c0_1, %c0_2] : memref<1x128xf32, #tpu.memory_space<vmem>>, vector<1x128xf32>
    %3 = vector.broadcast %2 : vector<1x128xf32> to vector<128x128xf32>
    %4 = arith.mulf %1, %3 : vector<128x128xf32>
    %c0_3 = arith.constant 0 : index
    %c0_4 = arith.constant 0 : index
    %5 = vector.load %arg3[%c0_3, %c0_4] : memref<1x128xf32, #tpu.memory_space<vmem>>, vector<1x128xf32>
    %6 = vector.broadcast %5 : vector<1x128xf32> to vector<128x128xf32>
    %7 = arith.addf %4, %6 : vector<128x128xf32>
    %c0_5 = arith.constant 0 : index
    %c0_6 = arith.constant 0 : index
    %8 = vector.load %arg4[%c0_5, %c0_6] : memref<128x128xbf16, #tpu.memory_space<vmem>>, vector<128x128xbf16>
    %9 = arith.extf %8 : vector<128x128xbf16> to vector<128x128xf32>
    %c0_7 = arith.constant 0 : index
    %c0_8 = arith.constant 0 : index
    %10 = vector.load %arg5[%c0_7, %c0_8] : memref<1x128xf32, #tpu.memory_space<vmem>>, vector<1x128xf32>
    %11 = vector.broadcast %10 : vector<1x128xf32> to vector<128x128xf32>
    %12 = arith.mulf %9, %11 : vector<128x128xf32>
    %13 = arith.addf %7, %12 : vector<128x128xf32>
    %c0_9 = arith.constant 0 : index
    %c0_10 = arith.constant 0 : index
    %14 = vector.load %arg6[%c0_9, %c0_10] : memref<1x128xf32, #tpu.memory_space<vmem>>, vector<1x128xf32>
    %15 = vector.broadcast %14 : vector<1x128xf32> to vector<128x128xf32>
    %16 = arith.addf %13, %15 : vector<128x128xf32>
    %cst = arith.constant 0.000000e+00 : f32
    %17 = vector.broadcast %cst : f32 to vector<128x128xf32>
    %18 = arith.maximumf %16, %17 : vector<128x128xf32>
    %c0_11 = arith.constant 0 : index
    %c0_12 = arith.constant 0 : index
    %19 = vector.load %arg7[%c0_11, %c0_12] : memref<128x128xf32, #tpu.memory_space<vmem>>, vector<128x128xf32>
    tpu.vector_store %arg7[%c0_11, %c0_12], %18 {strides = array<i32>} : memref<128x128xf32, #tpu.memory_space<vmem>>, vector<128x128xf32>,
    return
  }
  func.func @transform_0(%arg0: i32) -> (i32, i32) {
    %c0_i32 = arith.constant 0 : i32
    %c0_i32_0 = arith.constant 0 : i32
    return %arg0, %c0_i32 : i32, i32
  }
  func.func @transform_1(%arg0: i32) -> (i32, i32) {
    %c0_i32 = arith.constant 0 : i32
    %c0_i32_0 = arith.constant 0 : i32
    %c0_i32_1 = arith.constant 0 : i32
    return %c0_i32, %c0_i32_0 : i32, i32
  }
  func.func @transform_2(%arg0: i32) -> (i32, i32) {
    %c0_i32 = arith.constant 0 : i32
    %c0_i32_0 = arith.constant 0 : i32
    %c0_i32_1 = arith.constant 0 : i32
    return %c0_i32, %c0_i32_0 : i32, i32
  }
  func.func @transform_3(%arg0: i32) -> (i32, i32) {
    %c0_i32 = arith.constant 0 : i32
    %c0_i32_0 = arith.constant 0 : i32
    return %arg0, %c0_i32 : i32, i32
  }
  func.func @transform_4(%arg0: i32) -> (i32, i32) {
    %c0_i32 = arith.constant 0 : i32
    %c0_i32_0 = arith.constant 0 : i32
    %c0_i32_1 = arith.constant 0 : i32
    return %c0_i32, %c0_i32_0 : i32, i32
  }
  func.func @transform_5(%arg0: i32) -> (i32, i32) {
    %c0_i32 = arith.constant 0 : i32
    %c0_i32_0 = arith.constant 0 : i32
    %c0_i32_1 = arith.constant 0 : i32
    return %c0_i32, %c0_i32_0 : i32, i32
  }
  func.func @transform_6(%arg0: i32) -> (i32, i32) {
    %c0_i32 = arith.constant 0 : i32
    %c0_i32_0 = arith.constant 0 : i32
    return %arg0, %c0_i32 : i32, i32
  }
}

module attributes {stable_mosaic.version = 11 : i64} {
  func.func @_conv_s1_kernel(%arg0: i32, %arg1: i32, %arg2: memref<1x8x8x128xbf16, #tpu.memory_space<vmem>>, %arg3: memref<1x128xf32, #tpu.memory_space<vmem>>, %arg4: memref<1x128xf32, #tpu.memory_space<vmem>>, %arg5: memref<1152x128xbf16, #tpu.memory_space<vmem>>, %arg6: memref<1x8x8x128xbf16, #tpu.memory_space<vmem>>, %arg7: memref<1x1x128xf32, #tpu.memory_space<vmem>>, %arg8: memref<1x1x128xf32, #tpu.memory_space<vmem>>, %arg9: memref<10x10x128xbf16, #tpu.memory_space<vmem>>) attributes {dimension_semantics = [#tpu.dimension_semantics<parallel>, #tpu.dimension_semantics<parallel>], iteration_bounds = array<i64: 2, 1>, scalar_prefetch = 0 : i64, scratch_operands = 1 : i64, tpu.core_type = #tpu.core_type<tc>, window_params = [{transform_indices = @transform_0, window_bounds = array<i64: 1, 8, 8, 128>}, {pipeline_mode = #tpu.pipeline_mode<synchronous>, transform_indices = @transform_1, window_bounds = array<i64: 1, 128>}, {pipeline_mode = #tpu.pipeline_mode<synchronous>, transform_indices = @transform_2, window_bounds = array<i64: 1, 128>}, {transform_indices = @transform_3, window_bounds = array<i64: 1152, 128>}, {transform_indices = @transform_4, window_bounds = array<i64: 1, 8, 8, 128>}, {transform_indices = @transform_5, window_bounds = array<i64: 1, 1, 128>}, {transform_indices = @transform_6, window_bounds = array<i64: 1, 1, 128>}]} {
    %c0 = arith.constant 0 : index
    %c0_0 = arith.constant 0 : index
    %c0_1 = arith.constant 0 : index
    %c0_2 = arith.constant 0 : index
    %0 = vector.load %arg2[%c0, %c0_0, %c0_1, %c0_2] : memref<1x8x8x128xbf16, #tpu.memory_space<vmem>>, vector<1x8x8x128xbf16>
    %1 = vector.shape_cast %0 : vector<1x8x8x128xbf16> to vector<8x8x128xbf16>
    %c0_3 = arith.constant 0 : index
    %c0_4 = arith.constant 0 : index
    %2 = vector.load %arg3[%c0_3, %c0_4] : memref<1x128xf32, #tpu.memory_space<vmem>>, vector<1x128xf32>
    %3 = vector.shape_cast %2 : vector<1x128xf32> to vector<1x1x128xf32>
    %c0_5 = arith.constant 0 : index
    %c0_6 = arith.constant 0 : index
    %4 = vector.load %arg4[%c0_5, %c0_6] : memref<1x128xf32, #tpu.memory_space<vmem>>, vector<1x128xf32>
    %5 = vector.shape_cast %4 : vector<1x128xf32> to vector<1x1x128xf32>
    %6 = arith.extf %1 : vector<8x8x128xbf16> to vector<8x8x128xf32>
    %7 = vector.broadcast %3 : vector<1x1x128xf32> to vector<8x8x128xf32>
    %8 = arith.mulf %6, %7 : vector<8x8x128xf32>
    %9 = vector.broadcast %5 : vector<1x1x128xf32> to vector<8x8x128xf32>
    %10 = arith.addf %8, %9 : vector<8x8x128xf32>
    %cst = arith.constant 0.000000e+00 : f32
    %11 = vector.broadcast %cst : f32 to vector<8x8x128xf32>
    %12 = arith.maximumf %10, %11 : vector<8x8x128xf32>
    %13 = arith.truncf %12 : vector<8x8x128xf32> to vector<8x8x128xbf16>
    %cst_7 = arith.constant 0.000000e+00 : bf16
    %14 = vector.broadcast %cst_7 : bf16 to vector<10x10x128xbf16>
    %c0_8 = arith.constant 0 : index
    %c0_9 = arith.constant 0 : index
    %c0_10 = arith.constant 0 : index
    %15 = vector.load %arg9[%c0_8, %c0_9, %c0_10] : memref<10x10x128xbf16, #tpu.memory_space<vmem>>, vector<10x10x128xbf16>
    tpu.vector_store %arg9[%c0_8, %c0_9, %c0_10], %14 {strides = array<i32>} : memref<10x10x128xbf16, #tpu.memory_space<vmem>>, vector<10x10x128xbf16>,
    %c1 = arith.constant 1 : index
    %c1_11 = arith.constant 1 : index
    %c0_12 = arith.constant 0 : index
    %16 = vector.load %arg9[%c1, %c1_11, %c0_12] : memref<10x10x128xbf16, #tpu.memory_space<vmem>>, vector<8x8x128xbf16>
    tpu.vector_store %arg9[%c1, %c1_11, %c0_12], %13 {strides = array<i32>} : memref<10x10x128xbf16, #tpu.memory_space<vmem>>, vector<8x8x128xbf16>,
    %cst_13 = arith.constant 0.000000e+00 : f32
    %17 = vector.broadcast %cst_13 : f32 to vector<64x128xf32>
    %c0_14 = arith.constant 0 : index
    %c0_15 = arith.constant 0 : index
    %c0_16 = arith.constant 0 : index
    %18 = vector.load %arg9[%c0_14, %c0_15, %c0_16] : memref<10x10x128xbf16, #tpu.memory_space<vmem>>, vector<8x8x128xbf16>
    %19 = vector.shape_cast %18 : vector<8x8x128xbf16> to vector<64x128xbf16>
    %c0_17 = arith.constant 0 : index
    %c0_18 = arith.constant 0 : index
    %20 = vector.load %arg5[%c0_17, %c0_18] : memref<1152x128xbf16, #tpu.memory_space<vmem>>, vector<128x128xbf16>
    %cst_19 = arith.constant dense<0.000000e+00> : vector<64x128xf32>
    %21 = tpu.matmul %19, %20, %cst_19 {dimension_numbers = #tpu.dot_dimension_numbers<[1], [0], [0], [1], [0, 0, 1, 1], [], []>} : vector<64x128xbf16>, vector<128x128xbf16>, vector<64x128xf32> -> vector<64x128xf32>
    %22 = arith.addf %17, %21 : vector<64x128xf32>
    %c0_20 = arith.constant 0 : index
    %c1_21 = arith.constant 1 : index
    %c0_22 = arith.constant 0 : index
    %23 = vector.load %arg9[%c0_20, %c1_21, %c0_22] : memref<10x10x128xbf16, #tpu.memory_space<vmem>>, vector<8x8x128xbf16>
    %24 = vector.shape_cast %23 : vector<8x8x128xbf16> to vector<64x128xbf16>
    %c128 = arith.constant 128 : index
    %c0_23 = arith.constant 0 : index
    %25 = vector.load %arg5[%c128, %c0_23] : memref<1152x128xbf16, #tpu.memory_space<vmem>>, vector<128x128xbf16>
    %cst_24 = arith.constant dense<0.000000e+00> : vector<64x128xf32>
    %26 = tpu.matmul %24, %25, %cst_24 {dimension_numbers = #tpu.dot_dimension_numbers<[1], [0], [0], [1], [0, 0, 1, 1], [], []>} : vector<64x128xbf16>, vector<128x128xbf16>, vector<64x128xf32> -> vector<64x128xf32>
    %27 = arith.addf %22, %26 : vector<64x128xf32>
    %c0_25 = arith.constant 0 : index
    %c2 = arith.constant 2 : index
    %c0_26 = arith.constant 0 : index
    %28 = vector.load %arg9[%c0_25, %c2, %c0_26] : memref<10x10x128xbf16, #tpu.memory_space<vmem>>, vector<8x8x128xbf16>
    %29 = vector.shape_cast %28 : vector<8x8x128xbf16> to vector<64x128xbf16>
    %c256 = arith.constant 256 : index
    %c0_27 = arith.constant 0 : index
    %30 = vector.load %arg5[%c256, %c0_27] : memref<1152x128xbf16, #tpu.memory_space<vmem>>, vector<128x128xbf16>
    %cst_28 = arith.constant dense<0.000000e+00> : vector<64x128xf32>
    %31 = tpu.matmul %29, %30, %cst_28 {dimension_numbers = #tpu.dot_dimension_numbers<[1], [0], [0], [1], [0, 0, 1, 1], [], []>} : vector<64x128xbf16>, vector<128x128xbf16>, vector<64x128xf32> -> vector<64x128xf32>
    %32 = arith.addf %27, %31 : vector<64x128xf32>
    %c1_29 = arith.constant 1 : index
    %c0_30 = arith.constant 0 : index
    %c0_31 = arith.constant 0 : index
    %33 = vector.load %arg9[%c1_29, %c0_30, %c0_31] : memref<10x10x128xbf16, #tpu.memory_space<vmem>>, vector<8x8x128xbf16>
    %34 = vector.shape_cast %33 : vector<8x8x128xbf16> to vector<64x128xbf16>
    %c384 = arith.constant 384 : index
    %c0_32 = arith.constant 0 : index
    %35 = vector.load %arg5[%c384, %c0_32] : memref<1152x128xbf16, #tpu.memory_space<vmem>>, vector<128x128xbf16>
    %cst_33 = arith.constant dense<0.000000e+00> : vector<64x128xf32>
    %36 = tpu.matmul %34, %35, %cst_33 {dimension_numbers = #tpu.dot_dimension_numbers<[1], [0], [0], [1], [0, 0, 1, 1], [], []>} : vector<64x128xbf16>, vector<128x128xbf16>, vector<64x128xf32> -> vector<64x128xf32>
    %37 = arith.addf %32, %36 : vector<64x128xf32>
    %c1_34 = arith.constant 1 : index
    %c1_35 = arith.constant 1 : index
    %c0_36 = arith.constant 0 : index
    %38 = vector.load %arg9[%c1_34, %c1_35, %c0_36] : memref<10x10x128xbf16, #tpu.memory_space<vmem>>, vector<8x8x128xbf16>
    %39 = vector.shape_cast %38 : vector<8x8x128xbf16> to vector<64x128xbf16>
    %c512 = arith.constant 512 : index
    %c0_37 = arith.constant 0 : index
    %40 = vector.load %arg5[%c512, %c0_37] : memref<1152x128xbf16, #tpu.memory_space<vmem>>, vector<128x128xbf16>
    %cst_38 = arith.constant dense<0.000000e+00> : vector<64x128xf32>
    %41 = tpu.matmul %39, %40, %cst_38 {dimension_numbers = #tpu.dot_dimension_numbers<[1], [0], [0], [1], [0, 0, 1, 1], [], []>} : vector<64x128xbf16>, vector<128x128xbf16>, vector<64x128xf32> -> vector<64x128xf32>
    %42 = arith.addf %37, %41 : vector<64x128xf32>
    %c1_39 = arith.constant 1 : index
    %c2_40 = arith.constant 2 : index
    %c0_41 = arith.constant 0 : index
    %43 = vector.load %arg9[%c1_39, %c2_40, %c0_41] : memref<10x10x128xbf16, #tpu.memory_space<vmem>>, vector<8x8x128xbf16>
    %44 = vector.shape_cast %43 : vector<8x8x128xbf16> to vector<64x128xbf16>
    %c640 = arith.constant 640 : index
    %c0_42 = arith.constant 0 : index
    %45 = vector.load %arg5[%c640, %c0_42] : memref<1152x128xbf16, #tpu.memory_space<vmem>>, vector<128x128xbf16>
    %cst_43 = arith.constant dense<0.000000e+00> : vector<64x128xf32>
    %46 = tpu.matmul %44, %45, %cst_43 {dimension_numbers = #tpu.dot_dimension_numbers<[1], [0], [0], [1], [0, 0, 1, 1], [], []>} : vector<64x128xbf16>, vector<128x128xbf16>, vector<64x128xf32> -> vector<64x128xf32>
    %47 = arith.addf %42, %46 : vector<64x128xf32>
    %c2_44 = arith.constant 2 : index
    %c0_45 = arith.constant 0 : index
    %c0_46 = arith.constant 0 : index
    %48 = vector.load %arg9[%c2_44, %c0_45, %c0_46] : memref<10x10x128xbf16, #tpu.memory_space<vmem>>, vector<8x8x128xbf16>
    %49 = vector.shape_cast %48 : vector<8x8x128xbf16> to vector<64x128xbf16>
    %c768 = arith.constant 768 : index
    %c0_47 = arith.constant 0 : index
    %50 = vector.load %arg5[%c768, %c0_47] : memref<1152x128xbf16, #tpu.memory_space<vmem>>, vector<128x128xbf16>
    %cst_48 = arith.constant dense<0.000000e+00> : vector<64x128xf32>
    %51 = tpu.matmul %49, %50, %cst_48 {dimension_numbers = #tpu.dot_dimension_numbers<[1], [0], [0], [1], [0, 0, 1, 1], [], []>} : vector<64x128xbf16>, vector<128x128xbf16>, vector<64x128xf32> -> vector<64x128xf32>
    %52 = arith.addf %47, %51 : vector<64x128xf32>
    %c2_49 = arith.constant 2 : index
    %c1_50 = arith.constant 1 : index
    %c0_51 = arith.constant 0 : index
    %53 = vector.load %arg9[%c2_49, %c1_50, %c0_51] : memref<10x10x128xbf16, #tpu.memory_space<vmem>>, vector<8x8x128xbf16>
    %54 = vector.shape_cast %53 : vector<8x8x128xbf16> to vector<64x128xbf16>
    %c896 = arith.constant 896 : index
    %c0_52 = arith.constant 0 : index
    %55 = vector.load %arg5[%c896, %c0_52] : memref<1152x128xbf16, #tpu.memory_space<vmem>>, vector<128x128xbf16>
    %cst_53 = arith.constant dense<0.000000e+00> : vector<64x128xf32>
    %56 = tpu.matmul %54, %55, %cst_53 {dimension_numbers = #tpu.dot_dimension_numbers<[1], [0], [0], [1], [0, 0, 1, 1], [], []>} : vector<64x128xbf16>, vector<128x128xbf16>, vector<64x128xf32> -> vector<64x128xf32>
    %57 = arith.addf %52, %56 : vector<64x128xf32>
    %c2_54 = arith.constant 2 : index
    %c2_55 = arith.constant 2 : index
    %c0_56 = arith.constant 0 : index
    %58 = vector.load %arg9[%c2_54, %c2_55, %c0_56] : memref<10x10x128xbf16, #tpu.memory_space<vmem>>, vector<8x8x128xbf16>
    %59 = vector.shape_cast %58 : vector<8x8x128xbf16> to vector<64x128xbf16>
    %c1024 = arith.constant 1024 : index
    %c0_57 = arith.constant 0 : index
    %60 = vector.load %arg5[%c1024, %c0_57] : memref<1152x128xbf16, #tpu.memory_space<vmem>>, vector<128x128xbf16>
    %cst_58 = arith.constant dense<0.000000e+00> : vector<64x128xf32>
    %61 = tpu.matmul %59, %60, %cst_58 {dimension_numbers = #tpu.dot_dimension_numbers<[1], [0], [0], [1], [0, 0, 1, 1], [], []>} : vector<64x128xbf16>, vector<128x128xbf16>, vector<64x128xf32> -> vector<64x128xf32>
    %62 = arith.addf %57, %61 : vector<64x128xf32>
    %63 = vector.shape_cast %62 : vector<64x128xf32> to vector<8x8x128xf32>
    %64 = arith.truncf %63 : vector<8x8x128xf32> to vector<8x8x128xbf16>
    %c0_59 = arith.constant 0 : index
    %c0_60 = arith.constant 0 : index
    %c0_61 = arith.constant 0 : index
    %c0_62 = arith.constant 0 : index
    %65 = vector.load %arg6[%c0_59, %c0_60, %c0_61, %c0_62] : memref<1x8x8x128xbf16, #tpu.memory_space<vmem>>, vector<1x8x8x128xbf16>
    %66 = vector.shape_cast %65 : vector<1x8x8x128xbf16> to vector<8x8x128xbf16>
    %67 = vector.shape_cast %64 : vector<8x8x128xbf16> to vector<1x8x8x128xbf16>
    tpu.vector_store %arg6[%c0_59, %c0_60, %c0_61, %c0_62], %67 {strides = array<i32>} : memref<1x8x8x128xbf16, #tpu.memory_space<vmem>>, vector<1x8x8x128xbf16>,
    %cst_63 = arith.constant dense<0.000000e+00> : vector<128xf32>
    %68 = vector.multi_reduction <add>, %62, %cst_63 [0] : vector<64x128xf32> to vector<128xf32>
    %69 = vector.shape_cast %68 : vector<128xf32> to vector<1x128xf32>
    %c0_64 = arith.constant 0 : index
    %c0_65 = arith.constant 0 : index
    %c0_66 = arith.constant 0 : index
    %70 = vector.load %arg7[%c0_64, %c0_65, %c0_66] : memref<1x1x128xf32, #tpu.memory_space<vmem>>, vector<1x1x128xf32>
    %71 = vector.shape_cast %70 : vector<1x1x128xf32> to vector<1x128xf32>
    %72 = vector.shape_cast %69 : vector<1x128xf32> to vector<1x1x128xf32>
    tpu.vector_store %arg7[%c0_64, %c0_65, %c0_66], %72 {strides = array<i32>} : memref<1x1x128xf32, #tpu.memory_space<vmem>>, vector<1x1x128xf32>,
    %73 = arith.mulf %62, %62 : vector<64x128xf32>
    %cst_67 = arith.constant dense<0.000000e+00> : vector<128xf32>
    %74 = vector.multi_reduction <add>, %73, %cst_67 [0] : vector<64x128xf32> to vector<128xf32>
    %75 = vector.shape_cast %74 : vector<128xf32> to vector<1x128xf32>
    %c0_68 = arith.constant 0 : index
    %c0_69 = arith.constant 0 : index
    %c0_70 = arith.constant 0 : index
    %76 = vector.load %arg8[%c0_68, %c0_69, %c0_70] : memref<1x1x128xf32, #tpu.memory_space<vmem>>, vector<1x1x128xf32>
    %77 = vector.shape_cast %76 : vector<1x1x128xf32> to vector<1x128xf32>
    %78 = vector.shape_cast %75 : vector<1x128xf32> to vector<1x1x128xf32>
    tpu.vector_store %arg8[%c0_68, %c0_69, %c0_70], %78 {strides = array<i32>} : memref<1x1x128xf32, #tpu.memory_space<vmem>>, vector<1x1x128xf32>,
    return
  }
  func.func @transform_0(%arg0: i32, %arg1: i32) -> (i32, i32, i32, i32) {
    %c0_i32 = arith.constant 0 : i32
    %c0_i32_0 = arith.constant 0 : i32
    %c0_i32_1 = arith.constant 0 : i32
    %c0_i32_2 = arith.constant 0 : i32
    return %arg0, %c0_i32, %c0_i32_0, %c0_i32_1 : i32, i32, i32, i32
  }
  func.func @transform_1(%arg0: i32, %arg1: i32) -> (i32, i32) {
    %c0_i32 = arith.constant 0 : i32
    %c0_i32_0 = arith.constant 0 : i32
    %c0_i32_1 = arith.constant 0 : i32
    return %c0_i32, %c0_i32_0 : i32, i32
  }
  func.func @transform_2(%arg0: i32, %arg1: i32) -> (i32, i32) {
    %c0_i32 = arith.constant 0 : i32
    %c0_i32_0 = arith.constant 0 : i32
    %c0_i32_1 = arith.constant 0 : i32
    return %c0_i32, %c0_i32_0 : i32, i32
  }
  func.func @transform_3(%arg0: i32, %arg1: i32) -> (i32, i32) {
    %c0_i32 = arith.constant 0 : i32
    %c0_i32_0 = arith.constant 0 : i32
    return %c0_i32, %arg1 : i32, i32
  }
  func.func @transform_4(%arg0: i32, %arg1: i32) -> (i32, i32, i32, i32) {
    %c0_i32 = arith.constant 0 : i32
    %c0_i32_0 = arith.constant 0 : i32
    %c0_i32_1 = arith.constant 0 : i32
    return %arg0, %c0_i32, %c0_i32_0, %arg1 : i32, i32, i32, i32
  }
  func.func @transform_5(%arg0: i32, %arg1: i32) -> (i32, i32, i32) {
    %c0_i32 = arith.constant 0 : i32
    %c0_i32_0 = arith.constant 0 : i32
    return %arg0, %c0_i32, %arg1 : i32, i32, i32
  }
  func.func @transform_6(%arg0: i32, %arg1: i32) -> (i32, i32, i32) {
    %c0_i32 = arith.constant 0 : i32
    %c0_i32_0 = arith.constant 0 : i32
    return %arg0, %c0_i32, %arg1 : i32, i32, i32
  }
}

</mosaic_0001>

<bundles_post_ra>
// kernel: res_block_forward.5
= control target key start
LH: loop header
LB: loop body
LE: loop exit
PB: predicated region body
PF: predicated region fallthrough
CT: control target
= control target key end

     0   :  { %s516_s0 = inlined_call_operand.vmem [shape: bf16[128,128], index: 0, kind: input, shape index: {}]   ;;  %s517_s1 = inlined_call_operand.vmem [shape: f32[1,128], index: 1, kind: input, shape index: {}]   ;;  %s518_s2 = inlined_call_operand.vmem [shape: f32[1,128], index: 2, kind: input, shape index: {}]   ;;  %s519_s3 = inlined_call_operand.vmem [shape: bf16[128,128], index: 3, kind: input, shape index: {}]   ;;  %s520_s4 = inlined_call_operand.vmem [shape: f32[1,128], index: 4, kind: input, shape index: {}]   ;;  %s521_s5 = inlined_call_operand.vmem [shape: f32[1,128], index: 5, kind: input, shape index: {}]   ;;  %s522_s6 = inlined_call_operand.vmem [shape: f32[128,128], index: 6, kind: output, shape index: {}]  }
   0x1   :  { %v220_v0 = vld [vmem:[%s516_s0] sm:$0xff]   ;;  %v283_v11 = vld [vmem:[%s516_s0 + $0x8] sm:$0xff]   ;;  %v284_v17 = vld [vmem:[%s516_s0 + $0x10] sm:$0xff]  }
   0x2   :  { %v342_v1 = vld [vmem:[%s517_s1] ss:$0 sm:$0xff]  ;;  %v221_v2 = vunpack.c.l.bf16 %v220_v0  ;;  %v222_v5 = vunpack.c.h.bf16 %v220_v0  ;;  %v290_v12 = vld [vmem:[%s519_s3 + $0x8] sm:$0xff]   ;;  %v225_v15 = vunpack.c.l.bf16 %v283_v11  ;;  %v291_v18 = vld [vmem:[%s519_s3 + $0x10] sm:$0xff]   ;;  %v226_v22 = vunpack.c.h.bf16 %v283_v11 }
   0x3   :  { %v347_v3 = vld [vmem:[%s518_s2] ss:$0 sm:$0xff]  ;;  %v257_v16 = vunpack.c.l.bf16 %v290_v12  ;;  %v258_v23 = vunpack.c.h.bf16 %v290_v12  ;;  %v229_v26 = vunpack.c.l.bf16 %v284_v17  ;;  %v261_v27 = vunpack.c.l.bf16 %v291_v18  ;;  %v285_v32 = vld [vmem:[%s516_s0 + $0x18] sm:$0xff]  }
   0x4   :  { %v252_v4 = vld [vmem:[%s519_s3] sm:$0xff]   ;;  %v59_v9 = vmul.f32 %v342_v1, %v221_v2  ;;  %v60_v10 = vmul.f32 %v342_v1, %v222_v5  ;;  %v61_v24 = vmul.f32 %v342_v1, %v225_v15  ;;  %v62_v30 = vmul.f32 %v342_v1, %v226_v22  ;;  %v292_v45 = vld [vmem:[%s519_s3 + $0x18] sm:$0xff]  }
   0x5   :  { %v253_v6 = vunpack.c.l.bf16 %v252_v4  ;;  %v355_v7 = vld [vmem:[%s520_s4] ss:$0 sm:$0xff]  ;;  %v254_v8 = vunpack.c.h.bf16 %v252_v4  ;;  %v63_v34 = vmul.f32 %v342_v1, %v229_v26  ;;  %v230_v36 = vunpack.c.h.bf16 %v284_v17 }
   0x6   :  { %v79_v19 = vadd.f32 %v347_v3, %v59_v9  ;;  %v377_v20 = vld [vmem:[%s521_s5] ss:$0 sm:$0xff]  ;;  %v80_v21 = vadd.f32 %v347_v3, %v60_v10  ;;  %v133_v25 = vmul.f32 %v355_v7, %v257_v16  ;;  %v134_v31 = vmul.f32 %v355_v7, %v258_v23  ;;  %v294_v16 = vld [vmem:[%s519_s3 + $0x28] sm:$0xff]  }
   0x7   :  { %v131_v13 = vmul.f32 %v355_v7, %v253_v6  ;;  %v132_v14 = vmul.f32 %v355_v7, %v254_v8  ;;  %v81_v33 = vadd.f32 %v347_v3, %v61_v24  ;;  %v135_v35 = vmul.f32 %v355_v7, %v261_v27  ;;  %v286_v58 = vld [vmem:[%s516_s0 + $0x20] sm:$0xff]   ;;  %v287_v6 = vld [vmem:[%s516_s0 + $0x28] sm:$0xff]  }
   0x8   :  { %v82_v39 = vadd.f32 %v347_v3, %v62_v30  ;;  %v262_v40 = vunpack.c.h.bf16 %v291_v18  ;;  %v83_v42 = vadd.f32 %v347_v3, %v63_v34  ;;  %v64_v43 = vmul.f32 %v342_v1, %v230_v36  ;;  %v293_v59 = vld [vmem:[%s519_s3 + $0x20] sm:$0xff]   ;;  %v288_v30 = vld [vmem:[%s516_s0 + $0x30] sm:$0xff]  }
   0x9   :  { %v147_v28 = vadd.f32 %v131_v13, %v79_v19  ;;  %v148_v29 = vadd.f32 %v132_v14, %v80_v21  ;;  %v149_v41 = vadd.f32 %v133_v25, %v81_v33  ;;  %v233_v44 = vunpack.c.l.bf16 %v285_v32 }
   0xa   :  { %v150_v48 = vadd.f32 %v134_v31, %v82_v39  ;;  %v136_v49 = vmul.f32 %v355_v7, %v262_v40  ;;  %v151_v51 = vadd.f32 %v135_v35, %v83_v42  ;;  %v84_v52 = vadd.f32 %v347_v3, %v64_v43  ;;  %v295_v35 = vld [vmem:[%s519_s3 + $0x30] sm:$0xff]  }
   0xb   :  { %v167_v37 = vadd.f32 %v377_v20, %v147_v28  ;;  %v168_v38 = vadd.f32 %v377_v20, %v148_v29  ;;  %v169_v50 = vadd.f32 %v377_v20, %v149_v41  ;;  %v65_v53 = vmul.f32 %v342_v1, %v233_v44 }
   0xc   :  { %v170_v54 = vadd.f32 %v377_v20, %v150_v48  ;;  %v265_v55 = vunpack.c.l.bf16 %v292_v45  ;;  %v234_v56 = vunpack.c.h.bf16 %v285_v32  ;;  %v266_v57 = vunpack.c.h.bf16 %v292_v45 }
   0xd   :  { %v183_v46 = vmax.f32 %v167_v37, 0.0  ;;  %v184_v47 = vmax.f32 %v168_v38, 0.0  ;;  %v185_v60 = vmax.f32 %v169_v50, 0.0  ;;  %v171_v61 = vadd.f32 %v377_v20, %v151_v51 }
   0xe   :  { %v152_v62 = vadd.f32 %v136_v49, %v84_v52  ;;  %v85_v63 = vadd.f32 %v347_v3, %v65_v53  ;;  %v186_v0 = vmax.f32 %v170_v54, 0.0  ;;  %v137_v2 = vmul.f32 %v355_v7, %v265_v55  ;;  %v289_v52 = vld [vmem:[%s516_s0 + $0x38] sm:$0xff]  }
   0xf   :  { %199 = vst [vmem:[%s522_s6] sm:$0xff] %v183_v46  ;;  %v66_v4 = vmul.f32 %v342_v1, %v234_v56  ;;  %v138_v5 = vmul.f32 %v355_v7, %v266_v57  ;;  %v187_v8 = vmax.f32 %v171_v61, 0.0  ;;  %v237_v10 = vunpack.c.l.bf16 %v286_v58  ;;  %v296_v53 = vld [vmem:[%s519_s3 + $0x38] sm:$0xff]  }
  0x10   :  { %200 = vst [vmem:[%s522_s6 + $0x8] sm:$0xff] %v184_v47  ;;  %v172_v9 = vadd.f32 %v377_v20, %v152_v62  ;;  %v269_v11 = vunpack.c.l.bf16 %v293_v59  ;;  %v153_v12 = vadd.f32 %v137_v2, %v85_v63  ;;  %v238_v14 = vunpack.c.h.bf16 %v286_v58 }
  0x11   :  { %201 = vst [vmem:[%s522_s6 + $0x10] sm:$0xff] %v185_v60  ;;  %v86_v13 = vadd.f32 %v347_v3, %v66_v4  ;;  %v270_v15 = vunpack.c.h.bf16 %v293_v59  ;;  %v67_v18 = vmul.f32 %v342_v1, %v237_v10  ;;  %v241_v21 = vunpack.c.l.bf16 %v287_v6 }
  0x12   :  { %202 = vst [vmem:[%s522_s6 + $0x18] sm:$0xff] %v186_v0  ;;  %v188_v17 = vmax.f32 %v172_v9, 0.0  ;;  %v139_v19 = vmul.f32 %v355_v7, %v269_v11  ;;  %v173_v22 = vadd.f32 %v377_v20, %v153_v12  ;;  %v68_v24 = vmul.f32 %v342_v1, %v238_v14 }
  0x13   :  { %203 = vst [vmem:[%s522_s6 + $0x20] sm:$0xff] %v187_v8  ;;  %v154_v23 = vadd.f32 %v138_v5, %v86_v13  ;;  %v140_v25 = vmul.f32 %v355_v7, %v270_v15  ;;  %v87_v26 = vadd.f32 %v347_v3, %v67_v18  ;;  %v69_v27 = vmul.f32 %v342_v1, %v241_v21 }
  0x14   :  { %204 = vst [vmem:[%s522_s6 + $0x28] sm:$0xff] %v188_v17  ;;  %v273_v28 = vunpack.c.l.bf16 %v294_v16  ;;  %v242_v29 = vunpack.c.h.bf16 %v287_v6  ;;  %v189_v31 = vmax.f32 %v173_v22, 0.0  ;;  %v88_v33 = vadd.f32 %v347_v3, %v68_v24 }
  0x15   :  { %v174_v32 = vadd.f32 %v377_v20, %v154_v23  ;;  %v274_v34 = vunpack.c.h.bf16 %v294_v16  ;;  %v155_v36 = vadd.f32 %v139_v19, %v87_v26  ;;  %v89_v37 = vadd.f32 %v347_v3, %v69_v27 }
  0x16   :  { %v141_v38 = vmul.f32 %v355_v7, %v273_v28  ;;  %v70_v39 = vmul.f32 %v342_v1, %v242_v29  ;;  %205 = vst [vmem:[%s522_s6 + $0x30] sm:$0xff] %v189_v31  ;;  %v156_v41 = vadd.f32 %v140_v25, %v88_v33  ;;  %v245_v43 = vunpack.c.l.bf16 %v288_v30 }
  0x17   :  { %v190_v40 = vmax.f32 %v174_v32, 0.0  ;;  %v142_v42 = vmul.f32 %v355_v7, %v274_v34  ;;  %v175_v44 = vadd.f32 %v377_v20, %v155_v36  ;;  %v277_v47 = vunpack.c.l.bf16 %v295_v35 }
  0x18   :  { %v157_v45 = vadd.f32 %v141_v38, %v89_v37  ;;  %v90_v46 = vadd.f32 %v347_v3, %v70_v39  ;;  %v176_v48 = vadd.f32 %v377_v20, %v156_v41  ;;  %v71_v49 = vmul.f32 %v342_v1, %v245_v43 }
  0x19   :  { %206 = vst [vmem:[%s522_s6 + $0x38] sm:$0xff] %v190_v40  ;;  %v246_v50 = vunpack.c.h.bf16 %v288_v30  ;;  %v278_v51 = vunpack.c.h.bf16 %v295_v35  ;;  %v191_v54 = vmax.f32 %v175_v44, 0.0  ;;  %v143_v57 = vmul.f32 %v355_v7, %v277_v47 }
  0x1a   :  { %v177_v55 = vadd.f32 %v377_v20, %v157_v45  ;;  %v158_v56 = vadd.f32 %v142_v42, %v90_v46  ;;  %v192_v58 = vmax.f32 %v176_v48, 0.0  ;;  %v91_v59 = vadd.f32 %v347_v3, %v71_v49 }
  0x1b   :  { %v72_v60 = vmul.f32 %v342_v1, %v246_v50  ;;  %v144_v61 = vmul.f32 %v355_v7, %v278_v51  ;;  %207 = vst [vmem:[%s522_s6 + $0x40] sm:$0xff] %v191_v54  ;;  %v249_v0 = vunpack.c.l.bf16 %v289_v52  ;;  %v281_v2 = vunpack.c.l.bf16 %v296_v53 }
  0x1c   :  { %v193_v62 = vmax.f32 %v177_v55, 0.0  ;;  %v178_v63 = vadd.f32 %v377_v20, %v158_v56  ;;  %208 = vst [vmem:[%s522_s6 + $0x48] sm:$0xff] %v192_v58  ;;  %v159_v4 = vadd.f32 %v143_v57, %v91_v59  ;;  %v250_v6 = vunpack.c.h.bf16 %v289_v52 }
  0x1d   :  { %v92_v5 = vadd.f32 %v347_v3, %v72_v60  ;;  %v282_v8 = vunpack.c.h.bf16 %v296_v53  ;;  %v73_v10 = vmul.f32 %v342_v1, %v249_v0  ;;  %v145_v11 = vmul.f32 %v355_v7, %v281_v2 }
  0x1e   :  { %209 = vst [vmem:[%s522_s6 + $0x50] sm:$0xff] %v193_v62  ;;  %v194_v9 = vmax.f32 %v178_v63, 0.0  ;;  %v179_v12 = vadd.f32 %v377_v20, %v159_v4  ;;  %v74_v14 = vmul.f32 %v342_v1, %v250_v6 }
  0x1f   :  { %v160_v13 = vadd.f32 %v144_v61, %v92_v5  ;;  %v146_v15 = vmul.f32 %v355_v7, %v282_v8  ;;  %v93_v16 = vadd.f32 %v347_v3, %v73_v10 }
  0x20   :  { %210 = vst [vmem:[%s522_s6 + $0x58] sm:$0xff] %v194_v9  ;;  %v195_v17 = vmax.f32 %v179_v12, 0.0  ;;  %v94_v19 = vadd.f32 %v347_v3, %v74_v14 }
  0x21   :  { %v180_v18 = vadd.f32 %v377_v20, %v160_v13  ;;  %v161_v21 = vadd.f32 %v145_v11, %v93_v16 }
  0x22   :  { %211 = vst [vmem:[%s522_s6 + $0x60] sm:$0xff] %v195_v17  ;;  %v162_v1 = vadd.f32 %v146_v15, %v94_v19 }
  0x23   :  { %v196_v22 = vmax.f32 %v180_v18, 0.0  ;;  %v181_v7 = vadd.f32 %v377_v20, %v161_v21 }
  0x24   :  { %v182_v23 = vadd.f32 %v377_v20, %v162_v1 }
  0x25   :  { %212 = vst [vmem:[%s522_s6 + $0x68] sm:$0xff] %v196_v22  ;;  %v197_v24 = vmax.f32 %v181_v7, 0.0 }
  0x26   :  { %v198_v25 = vmax.f32 %v182_v23, 0.0 }
  0x27   :  { %213 = vst [vmem:[%s522_s6 + $0x70] sm:$0xff] %v197_v24 }
  0x28   :  { %214 = vst [vmem:[%s522_s6 + $0x78] sm:$0xff] %v198_v25 }

// kernel: res_block_forward.3
= control target key start
LH: loop header
LB: loop body
LE: loop exit
PB: predicated region body
PF: predicated region fallthrough
CT: control target
= control target key end

     0   :  { %s3232_s27 = smov 0   ;;  %s3234_s28 = smov 0   ;;  %s3744_s0 = inlined_call_operand.vmem [shape: bf16[8,9,9,128], index: 0, kind: input, shape index: {}]   ;;  %s3745_s1 = inlined_call_operand.vmem [shape: bf16[1152,128], index: 1, kind: input, shape index: {}]   ;;  %s3746_s2 = inlined_call_operand.vmem [shape: bf16[128,128], index: 2, kind: input, shape index: {}]   ;;  %s3747_s3 = inlined_call_operand.vmem [shape: bf16[2,8,8,128], index: 3, kind: output, shape index: {0}]   ;;  %s3748_s4 = inlined_call_operand.vmem [shape: f32[2,1,128], index: 4, kind: output, shape index: {1}]   ;;  %s3749_s5 = inlined_call_operand.vmem [shape: f32[2,1,128], index: 5, kind: output, shape index: {2}]   ;;  %s3750_s6 = inlined_call_operand.vmem [shape: bf16[2,8,8,128], index: 6, kind: output, shape index: {3}]   ;;  %s3751_s7 = inlined_call_operand.vmem [shape: f32[2,1,128], index: 7, kind: output, shape index: {4}]   ;;  %s3752_s8 = inlined_call_operand.vmem [shape: f32[2,1,128], index: 8, kind: output, shape index: {5}]  }
   0x1   :  { %s3236_s29 = smov 0  }
   0x2 LB: > { %s31_s30 = sadd.s32 1, %s3181_s28  ;;  %p2473_p0 = scmp.ge.s32.totalorder %s3185_s29, 1  ;;  %s3185_s29 = sphi %s3236_s29, %s19_s29   ;;  %s3181_s28 = sphi %s3234_s28, %s3756_s28   ;;  %s3177_s27 = sphi %s3232_s27, %s3755_s27  }
   0x3   : > { %p33_p1 = scmp.ge.s32.totalorder %s31_s30, 2  ;;  %p317_p2 = scmp.lt.s32.totalorder %s3185_s29, 3 }
   0x5   : > { %s3758_s30 = smov (%p33_p1, %s31_s30), 0  ;;  %p318_p3 = pnand %p2473_p0, %p317_p2 }
   0x6   : > { %s2474_s21 = sshll.u32 (!%p318_p3), %s3177_s27, 2  ;;  %p410_p5 = scmp.lt.s32.totalorder (!%p318_p3), %s3177_s27, 1 }
   0x7   : > { %321 = sbr.rel (%p318_p3) target bundleno = 353 (0x161), region = 32  ;;  %p396_p4 = scmp.lt.s32.totalorder (!%p318_p3), %s2474_s21, 7 }
   0xc   : > { %v2995_v0 = vld [vmem:[%s3745_s1 + $0x78] sm:$0xff]  ;;  %v2994_v2 = vld [vmem:[%s3745_s1 + $0x70] sm:$0xff]  ;;  %v2993_v4 = vld [vmem:[%s3745_s1 + $0x68] sm:$0xff]  ;;  %s3760_s21 = smov (!%p396_p4, %s2474_s21), 7  ;;  %vm717_vm0 = vsmask.f32 3328 }
   0xd   : > { %v2983_v1 = vld [vmem:[%s3745_s1 + $0x38] sm:$0xff]  ;;  %3122 = vmatpush.bf16.msra.mxu2 %v2995_v0  ;;  %v2982_v3 = vld [vmem:[%s3745_s1 + $0x30] sm:$0xff]  ;;  %571 = vmatpush.bf16.msra.mxu0 %v2995_v0  ;;  %v2981_v5 = vld [vmem:[%s3745_s1 + $0x28] sm:$0xff]  ;;  %s3138_s16 = smul.u32 72, %s3760_s21  ;;  %vm718_vm1 = vsmask.f32 7440 }
   0xe   : > { %672 = vmatpush.bf16.msra.mxu1 %v2983_v1  ;;  %3130 = vmatpush.bf16.msra.mxu3 %v2983_v1  ;;  %v2992_v6 = vld [vmem:[%s3745_s1 + $0x60] sm:$0xff]  ;;  %v2991_v8 = vld [vmem:[%s3745_s1 + $0x58] sm:$0xff]  ;;  %v2990_v10 = vld [vmem:[%s3745_s1 + $0x50] sm:$0xff]  ;;  %s3762_s27 = smov (!%p410_p5, %s3177_s27), 1 }
   0xf   : > { %v2980_v7 = vld [vmem:[%s3745_s1 + $0x20] sm:$0xff]  ;;  %v2979_v9 = vld [vmem:[%s3745_s1 + $0x18] sm:$0xff]  ;;  %v2978_v11 = vld [vmem:[%s3745_s1 + $0x10] sm:$0xff]  ;;  %s3298_s24 = scalar_lea.vmem %s3744_s0, %s3138_s16  ;;  %s443_s10 = scalar_lea.vmem %s3751_s7, %s3762_s27 }
  0x10   : > { %v2989_v12 = vld [vmem:[%s3745_s1 + $0x48] sm:$0xff]  ;;  %v2988_v14 = vld [vmem:[%s3745_s1 + $0x40] sm:$0xff]  ;;  %v2986_v17 = vld [vmem:[%s3298_s24 + $0x6c] sm:$0xf0]  ;;  %s449_s13 = scalar_lea.vmem %s3752_s8, %s3762_s27  ;;  %s423_s16 = scalar_lea.vmem %s3748_s4, %s3762_s27 }
  0x11   : > { %3123 = vmatpush.bf16.msra.mxu2 %v2994_v2  ;;  %572 = vmatpush.bf16.msra.mxu0 %v2994_v2  ;;  %v2977_v13 = vld [vmem:[%s3745_s1 + $0x8] sm:$0xff]  ;;  %v2976_v15 = vld [vmem:[%s3745_s1] sm:$0xff]  ;;  %v3003_v22 = vld [vmem:[%s3745_s1 + $0xb8] sm:$0xff] }
  0x12   : > { %673 = vmatpush.bf16.msra.mxu1 %v2982_v3  ;;  %3131 = vmatpush.bf16.msra.mxu3 %v2982_v3  ;;  %v2498_v16 = vld [vmem:[%s3298_s24 + $0x68] sm:$0xf]  ;;  %v2538_v18 = vld [vmem:[%s3298_s24] sm:$0xf]  ;;  %v3015_v23 = vld [vmem:[%s3745_s1 + $0xf8] sm:$0xff] }
  0x13   : > { %v2972_v19 = vld [vmem:[%s3298_s24 + $0x4] sm:$0xf0]  ;;  %v2546_v20 = vld [vmem:[%s3298_s24 + $0x20] sm:$0xf]  ;;  %v2984_v25 = vld [vmem:[%s3298_s24 + $0x4c] sm:$0xf0]  ;;  %v2499_v26 = vor.u32 %v2986_v17, %v2498_v16 }
  0x14   : > { %v2974_v21 = vld [vmem:[%s3298_s24 + $0x24] sm:$0xf0]  ;;  %v2539_v27 = vor.u32 %v2972_v19, %v2538_v18  ;;  %v3035_v29 = vld [vmem:[%s3745_s1 + $0x178] sm:$0xff]  ;;  %v3002_v32 = vld [vmem:[%s3745_s1 + $0xb0] sm:$0xff] }
  0x15   : > { %3124 = vmatpush.bf16.msra.mxu2 %v2993_v4  ;;  %573 = vmatpush.bf16.msra.mxu0 %v2993_v4  ;;  %v2490_v24 = vld [vmem:[%s3298_s24 + $0x48] sm:$0xf]  ;;  %v2547_v28 = vor.u32 %v2974_v21, %v2546_v20  ;;  %v3027_v31 = vld [vmem:[%s3745_s1 + $0x138] sm:$0xff]  ;;  %v701_v33 = vld [vmem:[%s3298_s24] sm:$0xf] }
  0x16   : > { %674 = vmatpush.bf16.msra.mxu1 %v2981_v5  ;;  %3132 = vmatpush.bf16.msra.mxu3 %v2981_v5  ;;  %v2491_v30 = vor.u32 %v2984_v25, %v2490_v24  ;;  %v703_v34 = vld [vmem:[%s3298_s24 + $0x8] sm:$0xf]  ;;  %v3014_v35 = vld [vmem:[%s3745_s1 + $0xf0] sm:$0xff]  ;;  %v2730_v37 = vld [vmem:[%s3298_s24 + $0x98] sm:$0xf]  ;;  %v721_v39 = vshrl.u32 %v701_v33, 16 }
  0x17   : > { %v2728_v36 = vld [vmem:[%s3298_s24 + $0x90] sm:$0xf]  ;;  %v724_v40 = vshll.u32 %v701_v33, 16  ;;  %v735_v41 = vshrl.u32 %v703_v34, 16  ;;  %v738_v42 = vshll.u32 %v703_v34, 16  ;;  %v3001_v44 = vld [vmem:[%s3745_s1 + $0xa8] sm:$0xff]  ;;  %vm3394_vm2 = vmor %vm717_vm0, %vm718_vm1 }
  0x18   : > { %v3034_v38 = vld [vmem:[%s3745_s1 + $0x170] sm:$0xff]  ;;  %v1234_v45 = vshrl.u32 %v2728_v36, 16  ;;  %v1237_v46 = vshll.u32 %v2728_v36, 16  ;;  %v1248_v47 = vshrl.u32 %v2730_v37, 16  ;;  %v1251_v48 = vshll.u32 %v2730_v37, 16  ;;  %v3013_v49 = vld [vmem:[%s3745_s1 + $0xe8] sm:$0xff] }
  0x19   : > { %3125 = vmatpush.bf16.msra.mxu2 %v2992_v6  ;;  %574 = vmatpush.bf16.msra.mxu0 %v2992_v6  ;;  %v3026_v43 = vld [vmem:[%s3745_s1 + $0x130] sm:$0xff]  ;;  %v3033_v50 = vld [vmem:[%s3745_s1 + $0x168] sm:$0xff]  ;;  %v3000_v52 = vld [vmem:[%s3745_s1 + $0xa0] sm:$0xff]  ;;  %v723_v55 = vrot.slane %v721_v39, 4  ;;  %v726_v56 = vrot.slane %v724_v40, 5  ;;  %v737_v57 = vrot.slane %v735_v41, 4 }
  0x1a   : > { %675 = vmatpush.bf16.msra.mxu1 %v2980_v7  ;;  %3133 = vmatpush.bf16.msra.mxu3 %v2980_v7  ;;  %v3025_v51 = vld [vmem:[%s3745_s1 + $0x128] sm:$0xff]  ;;  %v3012_v53 = vld [vmem:[%s3745_s1 + $0xe0] sm:$0xff]  ;;  %v740_v58 = vrot.slane %v738_v42, 5  ;;  %v2502_v60 = vld [vmem:[%s3298_s24 + $0x78] sm:$0xf]  ;;  %v1236_v63 = vrot.slane %v1234_v45, 4 }
  0x1b   : > { %v702_v54 = vld [vmem:[%s3298_s24 + $0x4] sm:$0x1]  ;;  %v2987_v61 = vld [vmem:[%s3298_s24 + $0x7c] sm:$0xf0]  ;;  %v704_v62 = vld [vmem:[%s3298_s24 + $0xc] sm:$0x1] }
  0x1c   : > { %v3032_v59 = vld [vmem:[%s3745_s1 + $0x160] sm:$0xff]  ;;  %v1239_v0 = vrot.slane %v1237_v46, 5  ;;  %v1250_v1 = vrot.slane %v1248_v47, 4  ;;  %v1253_v2 = vrot.slane %v1251_v48, 5  ;;  %v2542_v3 = vld [vmem:[%s3298_s24 + $0x10] sm:$0xf]  ;;  %v2503_v21 = vor.u32 %v2987_v61, %v2502_v60 }
  0x1d   : > { %3126 = vmatpush.bf16.msra.mxu2 %v2991_v8  ;;  %575 = vmatpush.bf16.msra.mxu0 %v2991_v8  ;;  %v2729_v4 = vld [vmem:[%s3298_s24 + $0x94] sm:$0x1]  ;;  %v2731_v5 = vld [vmem:[%s3298_s24 + $0x9c] sm:$0x1]  ;;  %v2973_v6 = vld [vmem:[%s3298_s24 + $0x14] sm:$0xf0] }
  0x1e   : > { %676 = vmatpush.bf16.msra.mxu1 %v2979_v9  ;;  %3134 = vmatpush.bf16.msra.mxu3 %v2979_v9  ;;  %v2550_v7 = vld [vmem:[%s3298_s24 + $0x30] sm:$0xf]  ;;  %v2975_v8 = vld [vmem:[%s3298_s24 + $0x34] sm:$0xf0]  ;;  %v1240_v17 = vor.u32 %v1239_v0, %v1236_v63  ;;  %v1243_v18 = vshll.u32 %v2729_v4, 16  ;;  %v1254_v19 = vor.u32 %v1253_v2, %v1250_v1  ;;  %v1257_v20 = vshll.u32 %v2731_v5, 16 }
  0x1f   : > { %v2494_v9 = vld [vmem:[%s3298_s24 + $0x58] sm:$0xf]  ;;  %v705_v39 = vld [vmem:[%s3298_s24 + $0x10] sm:$0xf]  ;;  %v2997_v46 = vld [vmem:[%s3745_s1 + $0x88] sm:$0xff] }
  0x20   : > { %v2999_v16 = vld [vmem:[%s3745_s1 + $0x98] sm:$0xff]  ;;  %v1241_v34 = vrot.slane %v1240_v17, 4  ;;  %v1255_v36 = vrot.slane %v1254_v19, 4  ;;  %v1259_v37 = vrot.slane %v1257_v20, 5  ;;  %v3010_v41 = vld [vmem:[%s3745_s1 + $0xd0] sm:$0xff]  ;;  %v3021_v60 = vld [vmem:[%s3745_s1 + $0x108] sm:$0xff] }
  0x21   : > { %3127 = vmatpush.bf16.msra.mxu2 %v2990_v10  ;;  %576 = vmatpush.bf16.msra.mxu0 %v2990_v10  ;;  %v2985_v10 = vld [vmem:[%s3298_s24 + $0x5c] sm:$0xf0]  ;;  %v3031_v24 = vld [vmem:[%s3745_s1 + $0x158] sm:$0xff]  ;;  %v3022_v45 = vld [vmem:[%s3745_s1 + $0x110] sm:$0xff] }
  0x22   : > { %677 = vmatpush.bf16.msra.mxu1 %v2978_v11  ;;  %3135 = vmatpush.bf16.msra.mxu3 %v2978_v11  ;;  %v727_v11 = vor.u32 %v726_v56, %v723_v55  ;;  %v2495_v25 = vor.u32 %v2985_v10, %v2494_v9  ;;  %v707_v40 = vld [vmem:[%s3298_s24 + $0x18] sm:$0xf]  ;;  %v3029_v55 = vld [vmem:[%s3745_s1 + $0x148] sm:$0xff]  ;;  %v2996_v61 = vld [vmem:[%s3745_s1 + $0x80] sm:$0xff] }
  0x23   : > { %v3028_v63 = vld [vmem:[%s3745_s1 + $0x140] sm:$0xff]  ;;  %v3004_v2 = vld [vmem:[%s3298_s24 + $0x94] sm:$0xf0]  ;;  %v2735_v20 = vld [vmem:[%s3298_s24 + $0xac] sm:$0x1] }
  0x24   : > { %v3047_v5 = vld [vmem:[%s3745_s1 + $0x1b8] sm:$0xff] }
  0x25   : > { %3128 = vmatpush.bf16.msra.mxu2 %v2989_v12  ;;  %577 = vmatpush.bf16.msra.mxu0 %v2989_v12  ;;  %v730_v12 = vshll.u32 %v702_v54, 16  ;;  %v3009_v54 = vld [vmem:[%s3745_s1 + $0xc8] sm:$0xff]  ;;  %v3075_v19 = vld [vmem:[%s3746_s2 + $0x38] sm:$0xff] }
  0x26   : > { %678 = vmatpush.bf16.msra.mxu1 %v2977_v13  ;;  %3136 = vmatpush.bf16.msra.mxu3 %v2977_v13  ;;  %v741_v13 = vor.u32 %v740_v58, %v737_v57 }
  0x29   : > { %3129 = vmatpush.bf16.msra.mxu2 %v2988_v14  ;;  %578 = vmatpush.bf16.msra.mxu0 %v2988_v14  ;;  %v744_v14 = vshll.u32 %v704_v62, 16  ;;  %v3435_v62 = vld [vmem:[%s3298_s24 + $0x90] sm:$0xf] }
  0x2a   : > { %679 = vmatpush.bf16.msra.mxu1 %v2976_v15  ;;  %3137 = vmatpush.bf16.msra.mxu3 %v2976_v15  ;;  %v3024_v15 = vld [vmem:[%s3745_s1 + $0x120] sm:$0xff] }
  0x2c   : > { %589 = vmatmul.bf16.vlgmr.msra.gmra.mxu2 %v2499_v26  ;;  %579 = vmatmul.bf16.vlgmr.msra.gmra.mxu0 %v2491_v30  ;;  %v3011_v26 = vld [vmem:[%s3745_s1 + $0xd8] sm:$0xff]  ;;  %v746_v30 = vrot.slane %v744_v14, 5 }
  0x2d   : > { %912 = vmatpush.bf16.msrb.mxu2 %v3003_v22  ;;  %680 = vmatmul.bf16.vlgmr.msra.gmra.mxu1 %v2539_v27  ;;  %v2543_v22 = vor.u32 %v2973_v6, %v2542_v3  ;;  %v728_v27 = vrot.slane %v727_v11, 4  ;;  %v706_v6 = vld [vmem:[%s3298_s24 + $0x14] sm:$0x1] }
  0x2e   : > { %1046 = vmatpush.bf16.msrb.mxu3 %v3015_v23  ;;  %1425 = vmatpush.bf16.msrb.mxu1 %v3035_v29  ;;  %v2551_v23 = vor.u32 %v2975_v8, %v2550_v7  ;;  %v742_v29 = vrot.slane %v741_v13, 4  ;;  %v3008_v7 = vld [vmem:[%s3745_s1 + $0xc0] sm:$0xff]  ;;  %v708_v8 = vld [vmem:[%s3298_s24 + $0x1c] sm:$0x1] }
  0x2f   : > { %690 = vmatmul.bf16.vlgmr.msra.gmra.mxu3 %v2547_v28  ;;  %1180 = vmatpush.bf16.msrb.mxu0 %v3027_v31  ;;  %v732_v28 = vrot.slane %v730_v12, 5  ;;  %v3023_v31 = vld [vmem:[%s3745_s1 + $0x118] sm:$0xff]  ;;  %v2733_v13 = vld [vmem:[%s3298_s24 + $0xa4] sm:$0x1] }
  0x30   : > { %v747_v47 = vsel %vm3394_vm2, %v742_v29, %v746_v30  ;;  %v1271_v30 = vshll.u32 %v2733_v13, 16 }
  0x31   : > { %913 = vmatpush.bf16.msrb.mxu2 %v3002_v32  ;;  %v2998_v32 = vld [vmem:[%s3745_s1 + $0x90] sm:$0xff]  ;;  %v733_v42 = vsel %vm3394_vm2, %v728_v27, %v732_v28  ;;  %v849_v1 = vunpack.c.l.b16 %v747_v47 }
  0x32   : > { %1047 = vmatpush.bf16.msrb.mxu3 %v3014_v35  ;;  %1426 = vmatpush.bf16.msrb.mxu1 %v3034_v38  ;;  %v1245_v35 = vrot.slane %v1243_v18, 5  ;;  %v3030_v38 = vld [vmem:[%s3745_s1 + $0x150] sm:$0xff]  ;;  %v848_v0 = vunpack.c.l.b16 %v733_v42  ;;  %v2682_v18 = vld [vmem:[%s3298_s24 + $0xd8] sm:$0xf] }
  0x33   : > { %1181 = vmatpush.bf16.msrb.mxu0 %v3026_v43  ;;  %v2732_v43 = vld [vmem:[%s3298_s24 + $0xa0] sm:$0xf]  ;;  %v2736_v47 = vld [vmem:[%s3298_s24 + $0xb0] sm:$0xf] }
  0x34   : > { %v1246_v48 = vsel %vm3394_vm2, %v1241_v34, %v1245_v35  ;;  %v1262_v56 = vshrl.u32 %v2732_v43, 16  ;;  %v1265_v57 = vshll.u32 %v2732_v43, 16  ;;  %v856_v27 = vpack.c.b16 %v849_v1, %v848_v0  ;;  %v709_v43 = vld [vmem:[%s3298_s24 + $0x20] sm:$0xf] }
  0x35   : > { %914 = vmatpush.bf16.msrb.mxu2 %v3001_v44  ;;  %v2734_v44 = vld [vmem:[%s3298_s24 + $0xa8] sm:$0xf]  ;;  %v1361_v3 = vunpack.c.l.b16 %v1246_v48  ;;  %v2738_v48 = vld [vmem:[%s3298_s24 + $0xb8] sm:$0xf]  ;;  %v3044_v1 = vld [vmem:[%s3745_s1 + $0x1a0] sm:$0xff] }
  0x36   : > { %1048 = vmatpush.bf16.msrb.mxu3 %v3013_v49  ;;  %1427 = vmatpush.bf16.msrb.mxu1 %v3033_v50  ;;  %v1260_v49 = vsel %vm3394_vm2, %v1255_v36, %v1259_v37  ;;  %v749_v50 = vshrl.u32 %v705_v39, 16  ;;  %v1276_v58 = vshrl.u32 %v2734_v44, 16  ;;  %v1264_v14 = vrot.slane %v1262_v56, 4 }
  0x37   : > { %1182 = vmatpush.bf16.msrb.mxu0 %v3025_v51  ;;  %v752_v51 = vshll.u32 %v705_v39, 16  ;;  %v1362_v4 = vunpack.c.l.b16 %v1260_v49  ;;  %v1285_v36 = vshll.u32 %v2735_v20, 16  ;;  %v3067_v39 = vld [vmem:[%s3745_s1 + $0x238] sm:$0xff]  ;;  %v780_v56 = vshll.u32 %v709_v43, 16 }
  0x38   : > { %v751_v9 = vrot.slane %v749_v50, 4  ;;  %v1307_v0 = vshll.u32 %v2738_v48, 16 }
  0x39   : > { %915 = vmatpush.bf16.msrb.mxu2 %v3000_v52  ;;  %v763_v52 = vshrl.u32 %v707_v40, 16  ;;  %v754_v10 = vrot.slane %v752_v51, 5  ;;  %v1369_v28 = vpack.c.b16 %v1362_v4, %v1361_v3 }
  0x3a   : > { %1049 = vmatpush.bf16.msrb.mxu3 %v3012_v53  ;;  %1428 = vmatpush.bf16.msrb.mxu1 %v3032_v59  ;;  %v766_v53 = vshll.u32 %v707_v40, 16  ;;  %v1279_v59 = vshll.u32 %v2734_v44, 16  ;;  %v3074_v40 = vld [vmem:[%s3746_s2 + $0x30] sm:$0xff]  ;;  %v711_v44 = vld [vmem:[%s3298_s24 + $0x28] sm:$0xf] }
  0x3b   : > { %1183 = vmatpush.bf16.msrb.mxu0 %v3024_v15  ;;  %v765_v11 = vrot.slane %v763_v52, 4  ;;  %v1267_v15 = vrot.slane %v1265_v57, 5  ;;  %v755_v29 = vor.u32 %v754_v10, %v751_v9  ;;  %v1287_v52 = vrot.slane %v1285_v36, 5  ;;  %v3065_v9 = vld [vmem:[%s3745_s1 + $0x228] sm:$0xff] }
  0x3c   : > { %594 = vmatmul.bf16.gmra.mxu2 %v2503_v21  ;;  %584 = vmatmul.bf16.gmra.mxu0 %v2495_v25  ;;  %v768_v12 = vrot.slane %v766_v53, 5  ;;  %v1281_v17 = vrot.slane %v1279_v59, 5  ;;  %v3020_v21 = vld [vmem:[%s3745_s1 + $0x100] sm:$0xff]  ;;  %v758_v25 = vshll.u32 %v706_v6, 16  ;;  %v3045_v53 = vld [vmem:[%s3745_s1 + $0x1a8] sm:$0xff]  ;;  %v791_v57 = vshrl.u32 %v711_v44, 16 }
  0x3d   : > { %916 = vmatpush.bf16.msrb.mxu2 %v2999_v16  ;;  %685 = vmatmul.bf16.gmra.mxu1 %v2543_v22  ;;  %v1278_v16 = vrot.slane %v1276_v58, 4  ;;  %v2627_v22 = vor.u32 %v3004_v2, %v3435_v62  ;;  %v1268_v34 = vor.u32 %v1267_v15, %v1264_v14  ;;  %v794_v58 = vshll.u32 %v711_v44, 16  ;;  %v3057_v59 = vld [vmem:[%s3745_s1 + $0x1e8] sm:$0xff]  ;;  %v3056_v6 = vld [vmem:[%s3745_s1 + $0x1e0] sm:$0xff]  ;;  %v2737_v15 = vld [vmem:[%s3298_s24 + $0xb4] sm:$0x1] }
  0x3e   : > { %1429 = vmatpush.bf16.msrb.mxu1 %v3031_v24  ;;  %1050 = vmatpush.bf16.msrb.mxu3 %v3011_v26  ;;  %v3059_v24 = vld [vmem:[%s3745_s1 + $0x1f8] sm:$0xff]  ;;  %v772_v26 = vshll.u32 %v708_v8, 16  ;;  %v1293_v62 = vshll.u32 %v2736_v47, 16  ;;  %v712_v8 = vld [vmem:[%s3298_s24 + $0x2c] sm:$0x1]  ;;  %v3072_v14 = vld [vmem:[%s3746_s2 + $0x20] sm:$0xff] }
  0x3f   : > { %695 = vmatmul.bf16.gmra.mxu3 %v2551_v23  ;;  %1184 = vmatpush.bf16.msrb.mxu0 %v3023_v31  ;;  %v3016_v23 = vld [vmem:[%s3298_s24 + $0xdc] sm:$0xf0]  ;;  %v3046_v31 = vld [vmem:[%s3745_s1 + $0x1b0] sm:$0xff]  ;;  %v1282_v35 = vor.u32 %v1281_v17, %v1278_v16  ;;  %v1269_v50 = vrot.slane %v1268_v34, 4  ;;  %v796_v13 = vrot.slane %v794_v58, 5  ;;  %v1299_v34 = vshll.u32 %v2737_v15, 16 }
  0x40   : > { %v3466_v37 = vor.u32 %v3016_v23, %v2682_v18  ;;  %v774_v42 = vrot.slane %v772_v26, 5  ;;  %v1295_v17 = vrot.slane %v1293_v62, 5  ;;  %v3005_v26 = vld [vmem:[%s3298_s24 + $0xa4] sm:$0xf0]  ;;  %v713_v58 = vld [vmem:[%s3298_s24 + $0x30] sm:$0xf] }
  0x41   : > { %917 = vmatpush.bf16.msrb.mxu2 %v2998_v32  ;;  %v769_v32 = vor.u32 %v768_v12, %v765_v11  ;;  %v1283_v51 = vrot.slane %v1282_v35, 4  ;;  %v782_v11 = vrot.slane %v780_v56, 5  ;;  %v793_v12 = vrot.slane %v791_v57, 4  ;;  %v3071_v35 = vld [vmem:[%s3746_s2 + $0x18] sm:$0xff]  ;;  %v3054_v56 = vld [vmem:[%s3745_s1 + $0x1d0] sm:$0xff]  ;;  %v3040_v15 = vld [vmem:[%s3745_s1 + $0x180] sm:$0xff] }
  0x42   : > { %1430 = vmatpush.bf16.msrb.mxu1 %v3030_v38  ;;  %1051 = vmatpush.bf16.msrb.mxu3 %v3010_v41  ;;  %v3058_v38 = vld [vmem:[%s3745_s1 + $0x1f0] sm:$0xff]  ;;  %v760_v41 = vrot.slane %v758_v25, 5  ;;  %v2739_v25 = vld [vmem:[%s3298_s24 + $0xbc] sm:$0x1]  ;;  %v2740_v62 = vld [vmem:[%s3298_s24 + $0xc0] sm:$0xf] }
  0x43   : > { %1185 = vmatpush.bf16.msrb.mxu0 %v3022_v45  ;;  %v756_v45 = vrot.slane %v755_v29, 4  ;;  %v770_v49 = vrot.slane %v769_v32, 4  ;;  %v3017_v29 = vld [vmem:[%s3298_s24 + $0xec] sm:$0xf0]  ;;  %v800_v32 = vshll.u32 %v712_v8, 16  ;;  %v797_v36 = vor.u32 %v796_v13, %v793_v12  ;;  %v3063_v57 = vld [vmem:[%s3745_s1 + $0x218] sm:$0xff] }
  0x44   : > { %v1321_v12 = vshll.u32 %v2740_v62, 16 }
  0x45   : > { %918 = vmatpush.bf16.msrb.mxu2 %v2997_v46  ;;  %v1273_v46 = vrot.slane %v1271_v30, 5  ;;  %v761_v2 = vsel %vm3394_vm2, %v756_v45, %v760_v41  ;;  %v775_v3 = vsel %vm3394_vm2, %v770_v49, %v774_v42  ;;  %v3055_v41 = vld [vmem:[%s3745_s1 + $0x1d8] sm:$0xff]  ;;  %v3064_v42 = vld [vmem:[%s3745_s1 + $0x220] sm:$0xff] }
  0x46   : > { %1431 = vmatpush.bf16.msrb.mxu1 %v3029_v55  ;;  %1052 = vmatpush.bf16.msrb.mxu3 %v3009_v54  ;;  %v3073_v54 = vld [vmem:[%s3746_s2 + $0x28] sm:$0xff]  ;;  %v777_v55 = vshrl.u32 %v709_v43, 16  ;;  %v850_v20 = vunpack.c.l.b16 %v761_v2 }
  0x47   : > { %1186 = vmatpush.bf16.msrb.mxu0 %v3021_v60  ;;  %v3066_v60 = vld [vmem:[%s3745_s1 + $0x230] sm:$0xff]  ;;  %v1274_v4 = vsel %vm3394_vm2, %v1269_v50, %v1273_v46  ;;  %v802_v50 = vrot.slane %v800_v32, 5 }
  0x48   : > { %v779_v10 = vrot.slane %v777_v55, 4  ;;  %v1363_v23 = vunpack.c.l.b16 %v1274_v4  ;;  %v3053_v4 = vld [vmem:[%s3745_s1 + $0x1c8] sm:$0xff] }
  0x49   : > { %919 = vmatpush.bf16.msrb.mxu2 %v2996_v61  ;;  %v1290_v61 = vshrl.u32 %v2736_v47, 16  ;;  %v3042_v47 = vld [vmem:[%s3745_s1 + $0x190] sm:$0xff] }
  0x4a   : > { %1432 = vmatpush.bf16.msrb.mxu1 %v3028_v63  ;;  %1053 = vmatpush.bf16.msrb.mxu3 %v3008_v7  ;;  %v1304_v63 = vshrl.u32 %v2738_v48, 16  ;;  %v710_v7 = vld [vmem:[%s3298_s24 + $0x24] sm:$0x1]  ;;  %v783_v30 = vor.u32 %v782_v11, %v779_v10  ;;  %v3069_v10 = vld [vmem:[%s3746_s2 + $0x8] sm:$0xff]  ;;  %v1318_v11 = vshrl.u32 %v2740_v62, 16 }
  0x4b   : > { %1187 = vmatpush.bf16.msrb.mxu0 %v3020_v21  ;;  %v1292_v16 = vrot.slane %v1290_v61, 4  ;;  %v851_v21 = vunpack.c.l.b16 %v775_v3 }
  0x4c   : > { %920 = vmatmul.bf16.vlgmr.msrb.gmra.mxu2 %v856_v27  ;;  %v1306_v18 = vrot.slane %v1304_v63, 4  ;;  %v2686_v27 = vld [vmem:[%s3298_s24 + $0xe8] sm:$0xf]  ;;  %v784_v48 = vrot.slane %v783_v30, 4  ;;  %v3068_v30 = vld [vmem:[%s3746_s2] sm:$0xff]  ;;  %v1320_v32 = vrot.slane %v1318_v11, 4 }
  0x4d   : > { %1559 = vmatpush.bf16.msra.mxu2 %v3047_v5  ;;  %1433 = vmatmul.bf16.vlgmr.msrb.gmra.mxu1 %v1369_v28  ;;  %v1288_v5 = vsel %vm3394_vm2, %v1283_v51, %v1287_v52  ;;  %v3043_v28 = vld [vmem:[%s3745_s1 + $0x198] sm:$0xff]  ;;  %v857_v43 = vpack.c.b16 %v851_v21, %v850_v20  ;;  %v3534_v46 = vor.u32 %v3017_v29, %v2686_v27  ;;  %v1301_v51 = vrot.slane %v1299_v34, 5  ;;  %v2742_v63 = vld [vmem:[%s3298_s24 + $0xc8] sm:$0xf] }
  0x4e   : > { %2091 = vmatpush.bf16.msra.mxu1 %v3075_v19  ;;  %1693 = vmatpush.bf16.msra.mxu3 %v3059_v24  ;;  %v1309_v19 = vrot.slane %v1307_v0, 5  ;;  %v1364_v24 = vunpack.c.l.b16 %v1288_v5  ;;  %v798_v52 = vrot.slane %v797_v36, 4  ;;  %v3070_v0 = vld [vmem:[%s3746_s2 + $0x10] sm:$0xff]  ;;  %v1332_v13 = vshrl.u32 %v2742_v63, 16 }
  0x4f   : > { %1054 = vmatmul.bf16.vlgmr.msrb.gmra.mxu3 %v2627_v22  ;;  %1188 = vmatmul.bf16.vlgmr.msrb.gmra.mxu0 %v3466_v37  ;;  %v2630_v22 = vld [vmem:[%s3298_s24 + $0xa0] sm:$0xf]  ;;  %v3062_v5 = vld [vmem:[%s3745_s1 + $0x210] sm:$0xff]  ;;  %v1323_v34 = vrot.slane %v1321_v12, 5 }
  0x50   : > { %1938 = vmatpush.bf16.msra.mxu0 %v3067_v39  ;;  %v1310_v39 = vor.u32 %v1309_v19, %v1306_v18  ;;  %v1370_v44 = vpack.c.b16 %v1364_v24, %v1363_v23  ;;  %v2631_v45 = vor.u32 %v3005_v26, %v2630_v22  ;;  %v714_v22 = vld [vmem:[%s3298_s24 + $0x34] sm:$0x1]  ;;  %v716_v23 = vld [vmem:[%s3298_s24 + $0x3c] sm:$0x1]  ;;  %v3052_v24 = vld [vmem:[%s3745_s1 + $0x1c0] sm:$0xff] }
  0x51   : > { %1560 = vmatpush.bf16.msra.mxu2 %v3046_v31  ;;  %v786_v31 = vshll.u32 %v710_v7, 16  ;;  %v808_v7 = vshll.u32 %v713_v58, 16 }
  0x52   : > { %2092 = vmatpush.bf16.msra.mxu1 %v3074_v40  ;;  %1694 = vmatpush.bf16.msra.mxu3 %v3058_v38  ;;  %v1296_v38 = vor.u32 %v1295_v17, %v1292_v16  ;;  %v1313_v40 = vshll.u32 %v2739_v25, 16  ;;  %v2634_v16 = vld [vmem:[%s3298_s24 + $0xb0] sm:$0xf]  ;;  %v3006_v17 = vld [vmem:[%s3298_s24 + $0xb4] sm:$0xf0]  ;;  %v3061_v25 = vld [vmem:[%s3745_s1 + $0x208] sm:$0xff] }
  0x53   : > { %v788_v49 = vrot.slane %v786_v31, 5  ;;  %v810_v27 = vrot.slane %v808_v7, 5  ;;  %v2741_v31 = vld [vmem:[%s3298_s24 + $0xc4] sm:$0x1] }
  0x54   : > { %1939 = vmatpush.bf16.msra.mxu0 %v3066_v60  ;;  %v1315_v55 = vrot.slane %v1313_v40, 5  ;;  %v3041_v60 = vld [vmem:[%s3745_s1 + $0x188] sm:$0xff]  ;;  %v2635_v40 = vor.u32 %v3006_v17, %v2634_v16  ;;  %v3019_v16 = vld [vmem:[%s3298_s24 + $0x10c] sm:$0xf0] }
  0x55   : > { %1561 = vmatpush.bf16.msra.mxu2 %v3045_v53  ;;  %v1297_v53 = vrot.slane %v1296_v38, 4  ;;  %v789_v61 = vsel %vm3394_vm2, %v784_v48, %v788_v49  ;;  %v2743_v38 = vld [vmem:[%s3298_s24 + $0xcc] sm:$0x1]  ;;  %v828_v48 = vshll.u32 %v716_v23, 16  ;;  %v1327_v49 = vshll.u32 %v2741_v31, 16 }
  0x56   : > { %2093 = vmatpush.bf16.msra.mxu1 %v3073_v54  ;;  %1695 = vmatpush.bf16.msra.mxu3 %v3057_v59  ;;  %v1311_v54 = vrot.slane %v1310_v39, 4  ;;  %v715_v59 = vld [vmem:[%s3298_s24 + $0x38] sm:$0xf]  ;;  %v852_v18 = vunpack.c.l.b16 %v789_v61  ;;  %v2889_v23 = vld [vmem:[%s3298_s24 + $0xc] sm:$0x1] }
  0x57   : > { %v1302_v2 = vsel %vm3394_vm2, %v1297_v53, %v1301_v51  ;;  %v819_v8 = vshrl.u32 %v715_v59, 16  ;;  %v1324_v51 = vor.u32 %v1323_v34, %v1320_v32  ;;  %v1341_v53 = vshll.u32 %v2743_v38, 16  ;;  %v2892_v31 = vld [vmem:[%s3298_s24 + $0x18] sm:$0xf]  ;;  %v2894_v32 = vld [vmem:[%s3298_s24 + $0x20] sm:$0xf] }
  0x58   : > { %1940 = vmatpush.bf16.msra.mxu0 %v3065_v9  ;;  %v1316_v3 = vsel %vm3394_vm2, %v1311_v54, %v1315_v55  ;;  %v822_v9 = vshll.u32 %v715_v59, 16  ;;  %v1365_v20 = vunpack.c.l.b16 %v1302_v2 }
  0x59   : > { %1562 = vmatpush.bf16.msra.mxu2 %v3044_v1  ;;  %v803_v1 = vsel %vm3394_vm2, %v798_v52, %v802_v50  ;;  %v1366_v21 = vunpack.c.l.b16 %v1316_v3  ;;  %v1343_v62 = vrot.slane %v1341_v53, 5 }
  0x5a   : > { %2094 = vmatpush.bf16.msra.mxu1 %v3072_v14  ;;  %1696 = vmatpush.bf16.msra.mxu3 %v3056_v6  ;;  %v805_v6 = vshrl.u32 %v713_v58, 16  ;;  %v1335_v14 = vshll.u32 %v2742_v63, 16  ;;  %v853_v19 = vunpack.c.l.b16 %v803_v1  ;;  %v824_v29 = vrot.slane %v822_v9, 5  ;;  %v2888_v63 = vld [vmem:[%s3298_s24 + $0x8] sm:$0xf] }
  0x5b   : > { %v1329_v58 = vrot.slane %v1327_v49, 5  ;;  %v3048_v49 = vld [vmem:[%s3298_s24 + $0x54] sm:$0xf0] }
  0x5c   : > { %1941 = vmatpush.bf16.msra.mxu0 %v3064_v42  ;;  %925 = vmatmul.bf16.gmra.mxu2 %v857_v43  ;;  %v807_v26 = vrot.slane %v805_v6, 4  ;;  %v1337_v36 = vrot.slane %v1335_v14, 5  ;;  %v858_v39 = vpack.c.b16 %v853_v19, %v852_v18  ;;  %v2690_v42 = vld [vmem:[%s3298_s24 + $0xf8] sm:$0xf]  ;;  %v3018_v43 = vld [vmem:[%s3298_s24 + $0xfc] sm:$0xf0] }
  0x5d   : > { %1563 = vmatpush.bf16.msra.mxu2 %v3043_v28  ;;  %1438 = vmatmul.bf16.gmra.mxu1 %v1370_v44  ;;  %v821_v28 = vrot.slane %v819_v8, 4  ;;  %v3060_v44 = vld [vmem:[%s3745_s1 + $0x200] sm:$0xff]  ;;  %v3596_v54 = vor.u32 %v3018_v43, %v2690_v42  ;;  %v1750_v6 = vshll.u32 %v2888_v63, 16  ;;  %v3007_v14 = vld [vmem:[%s3298_s24 + $0xc4] sm:$0xf0]  ;;  %v1792_v42 = vshll.u32 %v2894_v32, 16 }
  0x5e   : > { %2095 = vmatpush.bf16.msra.mxu1 %v3071_v35  ;;  %1697 = vmatpush.bf16.msra.mxu3 %v3055_v41  ;;  %v1334_v35 = vrot.slane %v1332_v13, 4  ;;  %v1371_v41 = vpack.c.b16 %v1366_v21, %v1365_v20  ;;  %v2638_v13 = vld [vmem:[%s3298_s24 + $0xc0] sm:$0xf] }
  0x5f   : > { %1059 = vmatmul.bf16.gmra.mxu3 %v2631_v45  ;;  %1193 = vmatmul.bf16.gmra.mxu0 %v3534_v46  ;;  %v811_v45 = vor.u32 %v810_v27, %v807_v26  ;;  %v825_v50 = vor.u32 %v824_v29, %v821_v28  ;;  %v1752_v18 = vrot.slane %v1750_v6, 5  ;;  %v1756_v28 = vshll.u32 %v2889_v23, 16  ;;  %v2896_v6 = vld [vmem:[%s3298_s24 + $0x28] sm:$0xf]  ;;  %v2897_v23 = vld [vmem:[%s3298_s24 + $0x2c] sm:$0x1] }
  0x60   : > { %1942 = vmatpush.bf16.msra.mxu0 %v3063_v57  ;;  %v1338_v52 = vor.u32 %v1337_v36, %v1334_v35  ;;  %v830_v57 = vrot.slane %v828_v48, 5  ;;  %v2842_v48 = vld [vmem:[%s3298_s24 + $0x50] sm:$0xf]  ;;  %v1794_v53 = vrot.slane %v1792_v42, 5 }
  0x61   : > { %1564 = vmatpush.bf16.msra.mxu2 %v3042_v47  ;;  %v814_v47 = vshll.u32 %v714_v22, 16  ;;  %v812_v55 = vrot.slane %v811_v45, 4  ;;  %v826_v59 = vrot.slane %v825_v50, 4  ;;  %v1758_v35 = vrot.slane %v1756_v28, 5  ;;  %v2786_v45 = vld [vmem:[%s3298_s24 + $0x8] sm:$0xf] }
  0x62   : > { %1698 = vmatpush.bf16.msra.mxu3 %v3054_v56  ;;  %2096 = vmatpush.bf16.msra.mxu1 %v3070_v0  ;;  %v1339_v61 = vrot.slane %v1338_v52, 4  ;;  %v2890_v0 = vld [vmem:[%s3298_s24 + $0x10] sm:$0xf] }
  0x63   : > { %v816_v56 = vrot.slane %v814_v47, 5  ;;  %v831_v2 = vsel %vm3394_vm2, %v826_v59, %v830_v57  ;;  %v1761_v7 = vshrl.u32 %v2890_v0, 16  ;;  %v1764_v8 = vshll.u32 %v2890_v0, 16  ;;  %v3036_v47 = vld [vmem:[%s3298_s24 + $0xc] sm:$0xf0] }
  0x64   : > { %1943 = vmatpush.bf16.msra.mxu0 %v3062_v5  ;;  %v1747_v5 = vshrl.u32 %v2888_v63, 16  ;;  %v2893_v57 = vld [vmem:[%s3298_s24 + $0x1c] sm:$0x1]  ;;  %v2787_v59 = vor.u32 %v3036_v47, %v2786_v45  ;;  %v2794_v47 = vld [vmem:[%s3298_s24 + $0x28] sm:$0xf] }
  0x65   : > { %1565 = vmatpush.bf16.msra.mxu2 %v3041_v60  ;;  %v1325_v60 = vrot.slane %v1324_v51, 4  ;;  %v817_v1 = vsel %vm3394_vm2, %v812_v55, %v816_v56  ;;  %v1763_v19 = vrot.slane %v1761_v7, 4  ;;  %v1766_v20 = vrot.slane %v1764_v8, 5  ;;  %v2898_v7 = vld [vmem:[%s3298_s24 + $0x30] sm:$0xf] }
  0x66   : > { %1699 = vmatpush.bf16.msra.mxu3 %v3053_v4  ;;  %2097 = vmatpush.bf16.msra.mxu1 %v3069_v10  ;;  %v1344_v4 = vsel %vm3394_vm2, %v1339_v61, %v1343_v62  ;;  %v854_v9 = vunpack.c.l.b16 %v817_v1  ;;  %v855_v10 = vunpack.c.l.b16 %v831_v2  ;;  %v1749_v17 = vrot.slane %v1747_v5, 4 }
  0x67   : > { %v1330_v3 = vsel %vm3394_vm2, %v1325_v60, %v1329_v58  ;;  %v1368_v12 = vunpack.c.l.b16 %v1344_v4  ;;  %v1767_v29 = vor.u32 %v1766_v20, %v1763_v19  ;;  %v2895_v58 = vld [vmem:[%s3298_s24 + $0x24] sm:$0x1]  ;;  %v2843_v60 = vor.u32 %v3048_v49, %v2842_v48  ;;  %v3038_v48 = vld [vmem:[%s3298_s24 + $0x2c] sm:$0xf0] }
  0x68   : > { %1944 = vmatpush.bf16.msra.mxu0 %v3061_v25  ;;  %v1367_v11 = vunpack.c.l.b16 %v1330_v3  ;;  %v859_v21 = vpack.c.b16 %v855_v10, %v854_v9  ;;  %v2639_v25 = vor.u32 %v3007_v14, %v2638_v13  ;;  %v1753_v27 = vor.u32 %v1752_v18, %v1749_v17  ;;  %v2790_v13 = vld [vmem:[%s3298_s24 + $0x18] sm:$0xf]  ;;  %v3037_v14 = vld [vmem:[%s3298_s24 + $0x1c] sm:$0xf0]  ;;  %v3049_v18 = vld [vmem:[%s3298_s24 + $0x64] sm:$0xf0] }
  0x69   : > { %1566 = vmatpush.bf16.msra.mxu2 %v3040_v15  ;;  %v2694_v15 = vld [vmem:[%s3298_s24 + $0x108] sm:$0xf]  ;;  %v1768_v36 = vrot.slane %v1767_v29, 4  ;;  %v1784_v62 = vshll.u32 %v2893_v57, 16  ;;  %v1798_v0 = vshll.u32 %v2895_v58, 16  ;;  %v1806_v10 = vshll.u32 %v2896_v6, 16 }
  0x6a   : > { %1700 = vmatpush.bf16.msra.mxu3 %v3052_v24  ;;  %2098 = vmatpush.bf16.msra.mxu1 %v3068_v30  ;;  %v1372_v22 = vpack.c.b16 %v1368_v12, %v1367_v11  ;;  %v2891_v24 = vld [vmem:[%s3298_s24 + $0x14] sm:$0x1]  ;;  %v3615_v26 = vor.u32 %v3019_v16, %v2694_v15  ;;  %v1754_v34 = vrot.slane %v1753_v27, 4  ;;  %v1817_v11 = vshrl.u32 %v2898_v7, 16  ;;  %v2846_v15 = vld [vmem:[%s3298_s24 + $0x60] sm:$0xf] }
  0x6b   : > { %v1770_v30 = vshll.u32 %v2891_v24, 16  ;;  %v1786_v3 = vrot.slane %v1784_v62, 5  ;;  %v1800_v5 = vrot.slane %v1798_v0, 5  ;;  %v1820_v12 = vshll.u32 %v2898_v7, 16  ;;  %v2899_v24 = vld [vmem:[%s3298_s24 + $0x34] sm:$0x1] }
  0x6c   : > { %1945 = vmatpush.bf16.msra.mxu0 %v3060_v44  ;;  %930 = vmatmul.bf16.gmra.mxu2 %v858_v39  ;;  %v1775_v39 = vshrl.u32 %v2892_v31, 16  ;;  %v1759_v43 = vsel %vm3394_vm2, %v1754_v34, %v1758_v35  ;;  %v1808_v20 = vrot.slane %v1806_v10, 5  ;;  %v2847_v27 = vor.u32 %v3049_v18, %v2846_v15  ;;  %v2850_v49 = vld [vmem:[%s3298_s24 + $0x70] sm:$0xf]  ;;  %v2854_v18 = vld [vmem:[%s3298_s24 + $0x80] sm:$0xf] }
  0x6d   : > { %1443 = vmatmul.bf16.gmra.mxu1 %v1371_v41  ;;  %v1772_v38 = vrot.slane %v1770_v30, 5  ;;  %v1789_v41 = vshrl.u32 %v2894_v32, 16  ;;  %v1874_v55 = vunpack.c.l.b16 %v1759_v43  ;;  %v1812_v30 = vshll.u32 %v2897_v23, 16 }
  0x6e   : > { %v1777_v50 = vrot.slane %v1775_v39, 4  ;;  %v1826_v32 = vshll.u32 %v2899_v24, 16  ;;  %v2900_v39 = vld [vmem:[%s3298_s24 + $0x38] sm:$0xf]  ;;  %v2795_v58 = vor.u32 %v3038_v48, %v2794_v47 }
  0x6f   : > { %1064 = vmatmul.bf16.gmra.mxu3 %v2635_v40  ;;  %1198 = vmatmul.bf16.gmra.mxu0 %v3596_v54  ;;  %v1778_v40 = vshll.u32 %v2892_v31, 16  ;;  %v1773_v44 = vsel %vm3394_vm2, %v1768_v36, %v1772_v38  ;;  %v1791_v52 = vrot.slane %v1789_v41, 4  ;;  %v1814_v35 = vrot.slane %v1812_v30, 5 }
  0x70   : > { %v1875_v56 = vunpack.c.l.b16 %v1773_v44  ;;  %v1828_v38 = vrot.slane %v1826_v32, 5  ;;  %v1831_v43 = vshrl.u32 %v2900_v39, 16 }
  0x71   : > { %v1780_v51 = vrot.slane %v1778_v40, 5  ;;  %v1795_v63 = vor.u32 %v1794_v53, %v1791_v52  ;;  %v2902_v40 = vld [vmem:[%s3298_s24 + $0x40] sm:$0xf] }
  0x72   : > { %v1882_v1 = vpack.c.b16 %v1875_v56, %v1874_v55  ;;  %v1845_v44 = vshrl.u32 %v2902_v40, 16  ;;  %v1848_v45 = vshll.u32 %v2902_v40, 16  ;;  %v1833_v53 = vrot.slane %v1831_v43, 4 }
  0x73   : > { %v1781_v61 = vor.u32 %v1780_v51, %v1777_v50  ;;  %v1796_v4 = vrot.slane %v1795_v63, 4  ;;  %v3050_v50 = vld [vmem:[%s3298_s24 + $0x74] sm:$0xf0] }
  0x74   : > { %v1847_v56 = vrot.slane %v1845_v44, 4  ;;  %v1850_v57 = vrot.slane %v1848_v45, 5  ;;  %v2851_v62 = vor.u32 %v3050_v50, %v2850_v49 }
  0x75   : > { %v1782_v2 = vrot.slane %v1781_v61, 4  ;;  %v1801_v9 = vsel %vm3394_vm2, %v1796_v4, %v1800_v5 }
  0x76   : > { %v1877_v17 = vunpack.c.l.b16 %v1801_v9 }
  0x77   : > { %v1787_v8 = vsel %vm3394_vm2, %v1782_v2, %v1786_v3  ;;  %v1851_v3 = vor.u32 %v1850_v57, %v1847_v56 }
  0x78   : > { %v1876_v16 = vunpack.c.l.b16 %v1787_v8 }
  0x79   : > { %v1852_v9 = vrot.slane %v1851_v3, 4 }
  0x7a   : > { %v1883_v28 = vpack.c.b16 %v1877_v17, %v1876_v16  ;;  %v2798_v16 = vld [vmem:[%s3298_s24 + $0x38] sm:$0xf]  ;;  %v3039_v17 = vld [vmem:[%s3298_s24 + $0x3c] sm:$0xf0] }
  0x7b   : > { %v2799_v24 = vor.u32 %v3039_v17, %v2798_v16 }
  0x7c   : > { %935 = vmatmul.bf16.gmra.mxu2 %v859_v21  ;;  %v1819_v21 = vrot.slane %v1817_v11, 4 }
  0x7d   : > { %1448 = vmatmul.bf16.gmra.mxu1 %v1372_v22  ;;  %v1822_v22 = vrot.slane %v1820_v12, 5 }
  0x7f   : > { %1069 = vmatmul.bf16.gmra.mxu3 %v2639_v25  ;;  %1203 = vmatmul.bf16.gmra.mxu0 %v3615_v26  ;;  %v2791_v25 = vor.u32 %v3037_v14, %v2790_v13  ;;  %v1823_v31 = vor.u32 %v1822_v22, %v1819_v21 }
  0x81   : > { %v1824_v36 = vrot.slane %v1823_v31, 4 }
  0x83   : > { %v1829_v42 = vsel %vm3394_vm2, %v1824_v36, %v1828_v38 }
  0x84   : > { %v1879_v52 = vunpack.c.l.b16 %v1829_v42 }
  0x8c   : > { %1567 = vmatmul.bf16.vlgmr.msra.gmra.mxu2 %v2787_v59  ;;  %v2901_v59 = vld [vmem:[%s3298_s24 + $0x3c] sm:$0x1] }
  0x8d   : > { %2099 = vmatmul.bf16.vlgmr.msra.gmra.mxu1 %v3466_v37  ;;  %v1803_v37 = vshrl.u32 %v2896_v6, 16  ;;  %v1840_v2 = vshll.u32 %v2901_v59, 16 }
  0x8f   : > { %1701 = vmatmul.bf16.vlgmr.msra.gmra.mxu3 %v2843_v60  ;;  %1946 = vmatmul.bf16.vlgmr.msra.gmra.mxu0 %v1882_v1  ;;  %v1805_v19 = vrot.slane %v1803_v37, 4  ;;  %v2903_v60 = vld [vmem:[%s3298_s24 + $0x44] sm:$0x1]  ;;  %v1842_v8 = vrot.slane %v1840_v2, 5 }
  0x90   : > { %v1854_v4 = vshll.u32 %v2903_v60, 16 }
  0x91   : > { %v1809_v29 = vor.u32 %v1808_v20, %v1805_v19  ;;  %v3051_v19 = vld [vmem:[%s3298_s24 + $0x84] sm:$0xf0]  ;;  %s2970_s24 = sshll.u32 %s3762_s27, 5 }
  0x92   : > { %v1856_v37 = vrot.slane %v1854_v4, 5  ;;  %s3693_s22 = scalar_lea.vmem %s3750_s6, %s2970_s24  ;;  %s3701_s25 = scalar_lea.vmem %s3747_s3, %s2970_s24 }
  0x93   : > { %v1810_v34 = vrot.slane %v1809_v29, 4  ;;  %s429_s24 = scalar_lea.vmem %s3749_s5, %s3762_s27 }
  0x95   : > { %v1815_v41 = vsel %vm3394_vm2, %v1810_v34, %v1814_v35 }
  0x96   : > { %v1878_v51 = vunpack.c.l.b16 %v1815_v41 }
  0x98   : > { %v1884_v63 = vpack.c.b16 %v1879_v52, %v1878_v51 }
  0x9c   : > { %1572 = vmatmul.bf16.gmra.mxu2 %v2791_v25 }
  0x9d   : > { %2104 = vmatmul.bf16.gmra.mxu1 %v3534_v46  ;;  %v1834_v46 = vshll.u32 %v2900_v39, 16 }
  0x9f   : > { %1706 = vmatmul.bf16.gmra.mxu3 %v2847_v27  ;;  %1951 = vmatmul.bf16.gmra.mxu0 %v1883_v28  ;;  %v1836_v55 = vrot.slane %v1834_v46, 5  ;;  %v2855_v28 = vor.u32 %v3051_v19, %v2854_v18 }
  0xa1   : > { %v1837_v1 = vor.u32 %v1836_v55, %v1833_v53 }
  0xa3   : > { %v1838_v7 = vrot.slane %v1837_v1, 4 }
  0xa5   : > { %v1843_v14 = vsel %vm3394_vm2, %v1838_v7, %v1842_v8 }
  0xa6   : > { %v1880_v20 = vunpack.c.l.b16 %v1843_v14 }
  0xa9   : > { %v580_v0 = vpop.f32.mrf.mxu0 }
  0xaa   : > { %v681_v61 = vpop.f32.mrf.mxu1 }
  0xab   : > { %v682_v5 = vadd.f32 %v681_v61, %v580_v0 }
  0xac   : > { %1577 = vmatmul.bf16.gmra.mxu2 %v2795_v58 }
  0xad   : > { %2109 = vmatmul.bf16.gmra.mxu1 %v3596_v54  ;;  %v1857_v54 = vsel %vm3394_vm2, %v1852_v9, %v1856_v37 }
  0xae   : > { %v1881_v21 = vunpack.c.l.b16 %v1857_v54 }
  0xaf   : > { %1711 = vmatmul.bf16.gmra.mxu3 %v2851_v62  ;;  %1956 = vmatmul.bf16.gmra.mxu0 %v1884_v63  ;;  %v590_v6 = vpop.f32.mrf.mxu2 }
  0xb0   : > { %v1885_v29 = vpack.c.b16 %v1881_v21, %v1880_v20 }
  0xb1   : > { %v582_v13 = vpop.f32.mrf.mxu0 }
  0xb2   : > { %v691_v10 = vpop.f32.mrf.mxu3  ;;  %v683_v12 = vpop.f32.mrf.mxu1 }
  0xb3   : > { %v3657_v11 = vadd.f32 %v691_v10, %v590_v6  ;;  %v684_v15 = vadd.f32 %v683_v12, %v582_v13 }
  0xb7   : > { %v592_v22 = vpop.f32.mrf.mxu2 }
  0xb9   : > { %v585_v30 = vpop.f32.mrf.mxu0 }
  0xba   : > { %v693_v23 = vpop.f32.mrf.mxu3  ;;  %v686_v27 = vpop.f32.mrf.mxu1 }
  0xbb   : > { %v694_v25 = vadd.f32 %v693_v23, %v592_v22  ;;  %v687_v31 = vadd.f32 %v686_v27, %v585_v30 }
  0xbc   : > { %1582 = vmatmul.bf16.gmra.mxu2 %v2799_v24 }
  0xbd   : > { %2114 = vmatmul.bf16.gmra.mxu1 %v3615_v26 }
  0xbf   : > { %1716 = vmatmul.bf16.gmra.mxu3 %v2855_v28  ;;  %1961 = vmatmul.bf16.gmra.mxu0 %v1885_v29  ;;  %v595_v33 = vpop.f32.mrf.mxu2 }
  0xc1   : > { %v587_v36 = vpop.f32.mrf.mxu0 }
  0xc2   : > { %v696_v32 = vpop.f32.mrf.mxu3  ;;  %v688_v35 = vpop.f32.mrf.mxu1 }
  0xc3   : > { %v697_v34 = vadd.f32 %v696_v32, %v595_v33  ;;  %v689_v38 = vadd.f32 %v688_v35, %v587_v36 }
  0xc7   : > { %v597_v39 = vpop.f32.mrf.mxu2 }
  0xca   : > { %v698_v40 = vpop.f32.mrf.mxu3  ;;  %v1434_v42 = vpop.f32.mrf.mxu1 }
  0xcb   : > { %v699_v41 = vadd.f32 %v698_v40, %v597_v39 }
  0xcc   : > { %v1189_v43 = vpop.f32.mrf.mxu0 }
  0xcf   : > { %v921_v46 = vpop.f32.mrf.mxu2 }
  0xd0   : > { %v941_v44 = vadd.f32 %v921_v46, %v682_v5 }
  0xd2   : > { %v1055_v45 = vpop.f32.mrf.mxu3  ;;  %v1436_v47 = vpop.f32.mrf.mxu1 }
  0xd3   : > { %v1075_v48 = vadd.f32 %v1055_v45, %v941_v44 }
  0xd4   : > { %v1191_v49 = vpop.f32.mrf.mxu0 }
  0xd5   : > { %v1209_v26 = vadd.f32 %v1189_v43, %v1075_v48 }
  0xd7   : > { %v3668_v50 = vadd.f32 %v1434_v42, %v1209_v26  ;;  %v923_v51 = vpop.f32.mrf.mxu2 }
  0xd8   : > { %v942_v52 = vadd.f32 %v923_v51, %v684_v15 }
  0xda   : > { %v1057_v53 = vpop.f32.mrf.mxu3  ;;  %v1439_v55 = vpop.f32.mrf.mxu1 }
  0xdb   : > { %v1076_v56 = vadd.f32 %v1057_v53, %v942_v52 }
  0xdc   : > { %v1194_v57 = vpop.f32.mrf.mxu0 }
  0xdd   : > { %v1210_v58 = vadd.f32 %v1191_v49, %v1076_v56 }
  0xdf   : > { %v1455_v59 = vadd.f32 %v1436_v47, %v1210_v58  ;;  %v926_v60 = vpop.f32.mrf.mxu2 }
  0xe0   : > { %v943_v61 = vadd.f32 %v926_v60, %v687_v31 }
  0xe2   : > { %v1060_v62 = vpop.f32.mrf.mxu3  ;;  %v1441_v63 = vpop.f32.mrf.mxu1 }
  0xe3   : > { %v1077_v0 = vadd.f32 %v1060_v62, %v943_v61 }
  0xe4   : > { %v1196_v1 = vpop.f32.mrf.mxu0 }
  0xe5   : > { %v1211_v2 = vadd.f32 %v1194_v57, %v1077_v0 }
  0xe7   : > { %v3670_v3 = vadd.f32 %v1439_v55, %v1211_v2  ;;  %v928_v4 = vpop.f32.mrf.mxu2 }
  0xe8   : > { %v944_v5 = vadd.f32 %v928_v4, %v689_v38 }
  0xea   : > { %v1062_v6 = vpop.f32.mrf.mxu3  ;;  %v1444_v7 = vpop.f32.mrf.mxu1 }
  0xeb   : > { %v1078_v8 = vadd.f32 %v1062_v6, %v944_v5 }
  0xec   : > { %v1199_v9 = vpop.f32.mrf.mxu0 }
  0xed   : > { %v1212_v37 = vadd.f32 %v1196_v1, %v1078_v8 }
  0xef   : > { %v3672_v10 = vadd.f32 %v1441_v63, %v1212_v37  ;;  %v931_v12 = vpop.f32.mrf.mxu2 }
  0xf0   : > { %v945_v13 = vadd.f32 %v931_v12, %v3657_v11 }
  0xf2   : > { %v1065_v14 = vpop.f32.mrf.mxu3  ;;  %v1446_v54 = vpop.f32.mrf.mxu1 }
  0xf3   : > { %v1079_v15 = vadd.f32 %v1065_v14, %v945_v13 }
  0xf4   : > { %v1201_v16 = vpop.f32.mrf.mxu0 }
  0xf5   : > { %v1213_v17 = vadd.f32 %v1199_v9, %v1079_v15 }
  0xf7   : > { %v3675_v18 = vadd.f32 %v1444_v7, %v1213_v17  ;;  %v933_v19 = vpop.f32.mrf.mxu2 }
  0xf8   : > { %v946_v20 = vadd.f32 %v933_v19, %v694_v25 }
  0xfa   : > { %v1067_v21 = vpop.f32.mrf.mxu3  ;;  %v1449_v22 = vpop.f32.mrf.mxu1 }
  0xfb   : > { %v1080_v23 = vadd.f32 %v1067_v21, %v946_v20 }
  0xfc   : > { %v1204_v24 = vpop.f32.mrf.mxu0 }
  0xfd   : > { %v1214_v27 = vadd.f32 %v1201_v16, %v1080_v23 }
  0xff   : > { %v3677_v28 = vadd.f32 %v1446_v54, %v1214_v27  ;;  %v936_v29 = vpop.f32.mrf.mxu2 }
 0x100   : > { %v947_v11 = vadd.f32 %v936_v29, %v697_v34 }
 0x102   : > { %v1070_v30 = vpop.f32.mrf.mxu3  ;;  %v1451_v31 = vpop.f32.mrf.mxu1 }
 0x103   : > { %v1081_v33 = vadd.f32 %v1070_v30, %v947_v11 }
 0x104   : > { %v1206_v32 = vpop.f32.mrf.mxu0 }
 0x105   : > { %v1215_v35 = vadd.f32 %v1204_v24, %v1081_v33 }
 0x107   : > { %v3680_v36 = vadd.f32 %v1449_v22, %v1215_v35  ;;  %v938_v38 = vpop.f32.mrf.mxu2 }
 0x108   : > { %v948_v25 = vadd.f32 %v938_v38, %v699_v41 }
 0x10a   : > { %v1072_v39 = vpop.f32.mrf.mxu3  ;;  %v3682_v40 = vpop.f32.mrf.mxu1 }
 0x10b   : > { %v1082_v42 = vadd.f32 %v1072_v39, %v948_v25 }
 0x10c   : > { %v1947_v43 = vpop.f32.mrf.mxu0 }
 0x10d   : > { %v1216_v46 = vadd.f32 %v1206_v32, %v1082_v42 }
 0x10f   : > { %v3688_v34 = vadd.f32 %v1451_v31, %v1216_v46  ;;  %v1568_v44 = vpop.f32.mrf.mxu2 }
 0x110   : > { %v1588_v47 = vadd.f32 %v1568_v44, %v3668_v50 }
 0x112   : > { %v1702_v45 = vpop.f32.mrf.mxu3  ;;  %v2102_v41 = vpop.f32.mrf.mxu1 }
 0x113   : > { %v3099_v48 = vpack.c.bf16 %v2102_v41, %v3682_v40  ;;  %v1722_v26 = vadd.f32 %v1702_v45, %v1588_v47  ;;  %v2151_v31 = vmul.f32 %v2102_v41, %v2102_v41  ;;  %v2136_v35 = vadd.f32 %v2102_v41, %v3682_v40 }
 0x114   : > { %v1949_v49 = vpop.f32.mrf.mxu0 }
 0x115   : > { %3100 = vst [vmem:[%s3693_s22] sm:$0xff] %v3099_v48   ;;  %v1967_v56 = vadd.f32 %v1947_v43, %v1722_v26 }
 0x117   : > { %v1570_v51 = vpop.f32.mrf.mxu2  ;;  %v2005_v50 = vmul.f32 %v1967_v56, %v1967_v56 }
 0x118   : > { %v1589_v52 = vadd.f32 %v1570_v51, %v1455_v59 }
 0x11a   : > { %v1704_v53 = vpop.f32.mrf.mxu3  ;;  %v2105_v55 = vpop.f32.mrf.mxu1 }
 0x11b   : > { %v1723_v57 = vadd.f32 %v1704_v53, %v1589_v52  ;;  %v2152_v32 = vmul.f32 %v2105_v55, %v2105_v55 }
 0x11c   : > { %v1952_v58 = vpop.f32.mrf.mxu0 }
 0x11d   : > { %v1968_v60 = vadd.f32 %v1949_v49, %v1723_v57 }
 0x11f   : > { %v3079_v61 = vpack.c.bf16 %v1968_v60, %v1967_v56  ;;  %v1991_v62 = vadd.f32 %v1968_v60, %v1967_v56  ;;  %v2006_v63 = vmul.f32 %v1968_v60, %v1968_v60  ;;  %v1573_v0 = vpop.f32.mrf.mxu2 }
 0x120   : > { %v1590_v1 = vadd.f32 %v1573_v0, %v3670_v3 }
 0x121   : > { %3080 = vst [vmem:[%s3701_s25] sm:$0xff] %v3079_v61   ;;  %v2013_v59 = vadd.f32 %v2006_v63, %v2005_v50 }
 0x122   : > { %v1707_v2 = vpop.f32.mrf.mxu3  ;;  %v2107_v4 = vpop.f32.mrf.mxu1 }
 0x123   : > { %v1724_v5 = vadd.f32 %v1707_v2, %v1590_v1  ;;  %v3104_v6 = vpack.c.bf16 %v2107_v4, %v2105_v55  ;;  %v2153_v42 = vmul.f32 %v2107_v4, %v2107_v4 }
 0x124   : > { %v1954_v7 = vpop.f32.mrf.mxu0 }
 0x125   : > { %v1969_v8 = vadd.f32 %v1952_v58, %v1724_v5  ;;  %3119 = vst [vmem:[%s3693_s22 + $0x8] sm:$0xff] %v3104_v6  }
 0x127   : > { %v1992_v9 = vadd.f32 %v1991_v62, %v1969_v8  ;;  %v2007_v37 = vmul.f32 %v1969_v8, %v1969_v8  ;;  %v1575_v12 = vpop.f32.mrf.mxu2 }
 0x128   : > { %v1591_v14 = vadd.f32 %v1575_v12, %v3672_v10  ;;  %v2150_v10 = vmul.f32 %v3682_v40, %v3682_v40 }
 0x129   : > { %v2014_v13 = vadd.f32 %v2013_v59, %v2007_v37 }
 0x12a   : > { %v1709_v54 = vpop.f32.mrf.mxu3  ;;  %v2110_v15 = vpop.f32.mrf.mxu1  ;;  %v2158_v39 = vadd.f32 %v2151_v31, %v2150_v10 }
 0x12b   : > { %v1725_v16 = vadd.f32 %v1709_v54, %v1591_v14  ;;  %v2154_v49 = vmul.f32 %v2110_v15, %v2110_v15 }
 0x12c   : > { %v1957_v3 = vpop.f32.mrf.mxu0  ;;  %v2159_v48 = vadd.f32 %v2158_v39, %v2152_v32 }
 0x12d   : > { %v1970_v17 = vadd.f32 %v1954_v7, %v1725_v16 }
 0x12e   : > { %v2160_v53 = vadd.f32 %v2159_v48, %v2153_v42 }
 0x12f   : > { %v3084_v19 = vpack.c.bf16 %v1970_v17, %v1969_v8  ;;  %v1993_v20 = vadd.f32 %v1992_v9, %v1970_v17  ;;  %v2008_v21 = vmul.f32 %v1970_v17, %v1970_v17  ;;  %v1578_v22 = vpop.f32.mrf.mxu2 }
 0x130   : > { %v1592_v24 = vadd.f32 %v1578_v22, %v3675_v18  ;;  %v2137_v18 = vadd.f32 %v2136_v35, %v2105_v55  ;;  %v2161_v57 = vadd.f32 %v2160_v53, %v2154_v49 }
 0x131   : > { %3116 = vst [vmem:[%s3701_s25 + $0x8] sm:$0xff] %v3084_v19   ;;  %v2015_v23 = vadd.f32 %v2014_v13, %v2008_v21 }
 0x132   : > { %v1712_v27 = vpop.f32.mrf.mxu3  ;;  %v2112_v29 = vpop.f32.mrf.mxu1  ;;  %v2138_v51 = vadd.f32 %v2137_v18, %v2107_v4 }
 0x133   : > { %v1726_v11 = vadd.f32 %v1712_v27, %v1592_v24  ;;  %v3109_v30 = vpack.c.bf16 %v2112_v29, %v2110_v15  ;;  %v2155_v56 = vmul.f32 %v2112_v29, %v2112_v29 }
 0x134   : > { %v1959_v43 = vpop.f32.mrf.mxu0  ;;  %v2139_v40 = vadd.f32 %v2138_v51, %v2110_v15 }
 0x135   : > { %v1971_v33 = vadd.f32 %v1957_v3, %v1726_v11  ;;  %3120 = vst [vmem:[%s3693_s22 + $0x10] sm:$0xff] %v3109_v30   ;;  %v2162_v62 = vadd.f32 %v2161_v57, %v2155_v56 }
 0x136   : > { %v2140_v60 = vadd.f32 %v2139_v40, %v2112_v29 }
 0x137   : > { %v1994_v38 = vadd.f32 %v1993_v20, %v1971_v33  ;;  %v2009_v25 = vmul.f32 %v1971_v33, %v1971_v33  ;;  %v1580_v46 = vpop.f32.mrf.mxu2 }
 0x138   : > { %v1593_v45 = vadd.f32 %v1580_v46, %v3677_v28 }
 0x139   : > { %v2016_v44 = vadd.f32 %v2015_v23, %v2009_v25 }
 0x13a   : > { %v1714_v47 = vpop.f32.mrf.mxu3  ;;  %v2115_v26 = vpop.f32.mrf.mxu1 }
 0x13b   : > { %v1727_v52 = vadd.f32 %v1714_v47, %v1593_v45  ;;  %v2156_v58 = vmul.f32 %v2115_v26, %v2115_v26  ;;  %v2141_v0 = vadd.f32 %v2140_v60, %v2115_v26 }
 0x13c   : > { %v1962_v4 = vpop.f32.mrf.mxu0 }
 0x13d   : > { %v1972_v41 = vadd.f32 %v1959_v43, %v1727_v52  ;;  %v2163_v2 = vadd.f32 %v2162_v62, %v2156_v58 }
 0x13f   : > { %v3089_v50 = vpack.c.bf16 %v1972_v41, %v1971_v33  ;;  %v1995_v61 = vadd.f32 %v1994_v38, %v1972_v41  ;;  %v2010_v55 = vmul.f32 %v1972_v41, %v1972_v41  ;;  %v1583_v28 = vpop.f32.mrf.mxu2 }
 0x140   : > { %v1594_v59 = vadd.f32 %v1583_v28, %v3680_v36 }
 0x141   : > { %3117 = vst [vmem:[%s3701_s25 + $0x10] sm:$0xff] %v3089_v50   ;;  %v2017_v63 = vadd.f32 %v2016_v44, %v2010_v55 }
 0x142   : > { %v1717_v1 = vpop.f32.mrf.mxu3  ;;  %v2117_v5 = vpop.f32.mrf.mxu1 }
 0x143   : > { %v1728_v6 = vadd.f32 %v1717_v1, %v1594_v59  ;;  %v3114_v7 = vpack.c.bf16 %v2117_v5, %v2115_v26  ;;  %v2142_v8 = vadd.f32 %v2141_v0, %v2117_v5  ;;  %v2157_v9 = vmul.f32 %v2117_v5, %v2117_v5 }
 0x144   : > { %v1964_v27 = vpop.f32.mrf.mxu0 }
 0x145   : > { %v1973_v37 = vadd.f32 %v1962_v4, %v1728_v6  ;;  %3121 = vst [vmem:[%s3693_s22 + $0x18] sm:$0xff] %v3114_v7   ;;  %v2143_v12 = vrot.slane %v2142_v8, 4  ;;  %v2164_v13 = vadd.f32 %v2163_v2, %v2157_v9 }
 0x147   : > { %v1996_v14 = vadd.f32 %v1995_v61, %v1973_v37  ;;  %v2011_v54 = vmul.f32 %v1973_v37, %v1973_v37  ;;  %v2144_v15 = vadd.f32 %v2143_v12, %v2142_v8  ;;  %v2165_v16 = vrot.slane %v2164_v13, 4  ;;  %v1585_v17 = vpop.f32.mrf.mxu2 }
 0x148   : > { %v1595_v20 = vadd.f32 %v1585_v17, %v3688_v34 }
 0x149   : > { %v2018_v3 = vadd.f32 %v2017_v63, %v2011_v54  ;;  %v2145_v36 = vrot.slane %v2144_v15, 2  ;;  %v2166_v19 = vadd.f32 %v2165_v16, %v2164_v13 }
 0x14a   : > { %v1719_v21 = vpop.f32.mrf.mxu3 }
 0x14b   : > { %v2146_v22 = vadd.f32 %v2145_v36, %v2144_v15  ;;  %v2167_v23 = vrot.slane %v2166_v19, 2  ;;  %v1729_v24 = vadd.f32 %v1719_v21, %v1595_v20 }
 0x14d   : > { %v2147_v29 = vrot.slane %v2146_v22, 1  ;;  %v2168_v11 = vadd.f32 %v2167_v23, %v2166_v19  ;;  %v1974_v30 = vadd.f32 %v1964_v27, %v1729_v24 }
 0x14f   : > { %v2148_v10 = vadd.f32 %v2147_v29, %v2146_v22  ;;  %v2169_v31 = vrot.slane %v2168_v11, 1  ;;  %v3094_v33 = vpack.c.bf16 %v1974_v30, %v1973_v37  ;;  %v1997_v32 = vadd.f32 %v1996_v14, %v1974_v30 }
 0x150   : > { %v2012_v34 = vmul.f32 %v1974_v30, %v1974_v30 }
 0x151   : > { %2149 = vst [vmem:[%s443_s10] sm:$0x1] %v2148_v10  ;;  %v2170_v35 = vadd.f32 %v2169_v31, %v2168_v11  ;;  %v1998_v38 = vrot.slane %v1997_v32, 4 }
 0x152   : > { %3118 = vst [vmem:[%s3701_s25 + $0x18] sm:$0xff] %v3094_v33   ;;  %v2019_v25 = vadd.f32 %v2018_v3, %v2012_v34 }
 0x153   : > { %2171 = vst [vmem:[%s449_s13] sm:$0x1] %v2170_v35  ;;  %v1999_v39 = vadd.f32 %v1998_v38, %v1997_v32 }
 0x154   : > { %v2020_v42 = vrot.slane %v2019_v25, 4 }
 0x155   : > { %v2000_v43 = vrot.slane %v1999_v39, 2 }
 0x156   : > { %v2021_v46 = vadd.f32 %v2020_v42, %v2019_v25 }
 0x157   : > { %v2001_v18 = vadd.f32 %v2000_v43, %v1999_v39 }
 0x158   : > { %v2022_v44 = vrot.slane %v2021_v46, 2 }
 0x159   : > { %v2002_v45 = vrot.slane %v2001_v18, 1 }
 0x15a   : > { %v2023_v47 = vadd.f32 %v2022_v44, %v2021_v46 }
 0x15b   : > { %v2003_v48 = vadd.f32 %v2002_v45, %v2001_v18 }
 0x15c   : > { %v2024_v49 = vrot.slane %v2023_v47, 1 }
 0x15d   : > { %2004 = vst [vmem:[%s423_s16] sm:$0x1] %v2003_v48 }
 0x15e   : > { %v2025_v26 = vadd.f32 %v2024_v49, %v2023_v47 }
 0x160   : > { %2026 = vst [vmem:[%s429_s24] sm:$0x1] %v2025_v26 }
 0x161 PF: > { %s19_s29 = sadd.s32 1, %s3185_s29   ;;  %s3755_s27 = smov %s3181_s28 }
 0x162   : > { %p16_p6 = scmp.ge.s32.totalorder %s19_s29, 4   ;;  %s3756_s28 = smov %s3758_s30 }
 0x164   :  { %18 = sbr.rel (!%p16_p6) target bundleno = 2 (0x2), region = 133 }

// kernel: res_block_forward.4
= control target key start
LH: loop header
LB: loop body
LE: loop exit
PB: predicated region body
PF: predicated region fallthrough
CT: control target
= control target key end

     0   :  { %s2988_s21 = smov 0   ;;  %s2990_s22 = smov 0   ;;  %s3639_s0 = inlined_call_operand.vmem [shape: bf16[2,8,8,128], index: 0, kind: input, shape index: {}]   ;;  %s3640_s1 = inlined_call_operand.vmem [shape: f32[1,128], index: 1, kind: input, shape index: {}]   ;;  %s3641_s2 = inlined_call_operand.vmem [shape: f32[1,128], index: 2, kind: input, shape index: {}]   ;;  %s3642_s3 = inlined_call_operand.vmem [shape: bf16[1152,128], index: 3, kind: input, shape index: {}]   ;;  %s3643_s4 = inlined_call_operand.vmem [shape: bf16[2,8,8,128], index: 4, kind: output, shape index: {0}]   ;;  %s3644_s5 = inlined_call_operand.vmem [shape: f32[2,1,128], index: 5, kind: output, shape index: {1}]   ;;  %s3645_s6 = inlined_call_operand.vmem [shape: f32[2,1,128], index: 6, kind: output, shape index: {2}]  }
   0x1   :  { %s2992_s23 = smov 0  }
   0x2 LB: > { %s29_s24 = sadd.s32 1, %s2946_s22  ;;  %p2390_p0 = scmp.ge.s32.totalorder %s2950_s23, 1  ;;  %s2950_s23 = sphi %s2992_s23, %s17_s23   ;;  %s2946_s22 = sphi %s2990_s22, %s3655_s22   ;;  %s2942_s21 = sphi %s2988_s21, %s3654_s21  }
   0x3   : > { %p31_p1 = scmp.ge.s32.totalorder %s29_s24, 2  ;;  %p244_p2 = scmp.lt.s32.totalorder %s2950_s23, 3 }
   0x5   : > { %s3657_s24 = smov (%p31_p1, %s29_s24), 0  ;;  %p245_p3 = pnand %p2390_p0, %p244_p2 }
   0x6   : > { %p293_p4 = scmp.lt.s32.totalorder (!%p245_p3), %s2942_s21, 1 }
   0x7   : > { %248 = sbr.rel (%p245_p3) target bundleno = 359 (0x167), region = 36 }
   0xc   : > { %v2778_v0 = vld [vmem:[%s3642_s3 + $0x78] sm:$0xff]  ;;  %v2952_v2 = vmov 0   ;;  %v2777_v3 = vld [vmem:[%s3642_s3 + $0x70] sm:$0xff]  ;;  %s3659_s21 = smov (!%p293_p4, %s2942_s21), 1  ;;  %v2776_v6 = vld [vmem:[%s3642_s3 + $0x68] sm:$0xff]  ;;  %vm480_vm0 = vcmask 1043456  }
   0xd   : > { %v2786_v1 = vld [vmem:[%s3642_s3 + $0xb8] sm:$0xff]  ;;  %387 = vst [vmem:[#allocation2 + $0x20] sm:$0xf] %v2952_v2  ;;  %2885 = vmatpush.bf16.msra.mxu1 %v2778_v0  ;;  %761 = vmatpush.bf16.msra.mxu0 %v2778_v0  ;;  %v2785_v4 = vld [vmem:[%s3642_s3 + $0xb0] sm:$0xff]  ;;  %s2757_s11 = sshll.u32 %s3659_s21, 5  ;;  %v2784_v10 = vld [vmem:[%s3642_s3 + $0xa8] sm:$0xff]  ;;  %s315_s28 = scalar_lea.vmem %s3644_s5, %s3659_s21 }
   0xe   : > { %388 = vst [vmem:[#allocation2 + $0x24] sm:$0x1] %v2952_v2  ;;  %1030 = vmatpush.bf16.msra.mxu2 %v2786_v1  ;;  %v2798_v5 = vld [vmem:[%s3642_s3 + $0xf8] sm:$0xff]  ;;  %v2797_v7 = vld [vmem:[%s3642_s3 + $0xf0] sm:$0xff]  ;;  %s297_s18 = scalar_lea.vmem %s3639_s0, %s2757_s11  ;;  %v3045_v13 = vld [vmem:[%s3640_s1] ss:$0 sm:$0xff]  ;;  %s3607_s26 = scalar_lea.vmem %s3643_s4, %s2757_s11 }
   0xf   : > { %389 = vst [vmem:[#allocation2 + $0x28] sm:$0xf] %v2952_v2  ;;  %1163 = vmatpush.bf16.msra.mxu3 %v2798_v5  ;;  %v2879_v8 = vld [vmem:[%s297_s18 + $0x8] sm:$0xff]   ;;  %v2880_v9 = vld [vmem:[%s297_s18 + $0x10] sm:$0xff]   ;;  %v3050_v14 = vld [vmem:[%s3641_s2] ss:$0 sm:$0xff]  ;;  %s321_s7 = scalar_lea.vmem %s3645_s6, %s3659_s21 }
  0x10   : > { %390 = vst [vmem:[#allocation2 + $0x2c] sm:$0x1] %v2952_v2  ;;  %v2850_v11 = vunpack.c.h.bf16 %v2879_v8  ;;  %v2853_v12 = vunpack.c.l.bf16 %v2880_v9  ;;  %v2854_v15 = vunpack.c.h.bf16 %v2880_v9  ;;  %v2849_v16 = vunpack.c.l.bf16 %v2879_v8  ;;  %v2796_v17 = vld [vmem:[%s3642_s3 + $0xe8] sm:$0xff]  ;;  %v3059_v20 = vld [vmem:[%s297_s18] sm:$0xff]   ;;  %v3066_v23 = vld [vmem:[%s297_s18 + $0x18] sm:$0xff]  }
  0x11   : > { %2886 = vmatpush.bf16.msra.mxu1 %v2777_v3  ;;  %762 = vmatpush.bf16.msra.mxu0 %v2777_v3  ;;  %379 = vst [vmem:[#allocation2] sm:$0xf] %v2952_v2  ;;  %v2775_v21 = vld [vmem:[%s3642_s3 + $0x60] sm:$0xff]  ;;  %v2845_v22 = vunpack.c.l.bf16 %v3059_v20  ;;  %v2857_v29 = vunpack.c.l.bf16 %v3066_v23  ;;  %vm486_vm1 = vcmask 1040384   ;;  %vm481_vm2 = vsmask.f32 7938 }
  0x12   : > { %1031 = vmatpush.bf16.msra.mxu2 %v2785_v4  ;;  %v347_v18 = vmul.f32 %v3045_v13, %v2850_v11  ;;  %v348_v19 = vmul.f32 %v3045_v13, %v2853_v12  ;;  %380 = vst [vmem:[#allocation2 + $0x4] sm:$0x1] %v2952_v2  ;;  %v349_v24 = vmul.f32 %v3045_v13, %v2854_v15  ;;  %v2783_v26 = vld [vmem:[%s3642_s3 + $0xa0] sm:$0xff]  ;;  %v2774_v33 = vld [vmem:[%s3642_s3 + $0x58] sm:$0xff]  ;;  %vm487_vm3 = vsmask.f32 256  ;;  %vm3113_vm7 = vmand %vm480_vm0, %vm481_vm2 }
  0x13   : > { %1164 = vmatpush.bf16.msra.mxu3 %v2797_v7  ;;  %381 = vst [vmem:[#allocation2 + $0x8] sm:$0xf] %v2952_v2  ;;  %v346_v25 = vmul.f32 %v3045_v13, %v2849_v16  ;;  %v344_v30 = vmul.f32 %v3045_v13, %v2845_v22  ;;  %v2782_v37 = vld [vmem:[%s3642_s3 + $0x98] sm:$0xff]  ;;  %v2795_v40 = vld [vmem:[%s3642_s3 + $0xe0] sm:$0xff]  ;;  %v350_v41 = vmul.f32 %v3045_v13, %v2857_v29  ;;  %v2846_v42 = vunpack.c.h.bf16 %v3059_v20  ;;  %v2773_v43 = vld [vmem:[%s3642_s3 + $0x50] sm:$0xff] }
  0x14   : > { %v358_v27 = vadd.f32 %v3050_v14, %v347_v18  ;;  %v359_v28 = vadd.f32 %v3050_v14, %v348_v19  ;;  %382 = vst [vmem:[#allocation2 + $0xc] sm:$0x1] %v2952_v2  ;;  %v3086_v35 = vadd.f32 %v3050_v14, %v349_v24  ;;  %v2781_v50 = vld [vmem:[%s3642_s3 + $0x90] sm:$0xff]  ;;  %v504_v51 = vld [vmem:[#allocation2 + $0x20] sm:$0xf]  ;;  %vm915_vm6 = vcmask 1042432   ;;  %vm3126_vm8 = vmand %vm486_vm1, %vm487_vm3 }
  0x15   : > { %2887 = vmatpush.bf16.msra.mxu1 %v2776_v6  ;;  %763 = vmatpush.bf16.msra.mxu0 %v2776_v6  ;;  %383 = vst [vmem:[#allocation2 + $0x10] sm:$0xf] %v2952_v2  ;;  %v355_v34 = vadd.f32 %v3050_v14, %v344_v30  ;;  %v3089_v36 = vadd.f32 %v3050_v14, %v346_v25  ;;  %v507_v52 = vld [vmem:[#allocation2 + $0x24] sm:$0x1]  ;;  %vm566_vm4 = vsmask.f32 3328 }
  0x16   : > { %1032 = vmatpush.bf16.msra.mxu2 %v2784_v10  ;;  %v366_v31 = vmax.f32 %v358_v27, 0.0  ;;  %v367_v32 = vmax.f32 %v359_v28, 0.0  ;;  %384 = vst [vmem:[#allocation2 + $0x14] sm:$0x1] %v2952_v2  ;;  %v510_v53 = vld [vmem:[#allocation2 + $0x28] sm:$0xf]  ;;  %v3121_v62 = vadd.f32 %v3050_v14, %v350_v41  ;;  %v345_v63 = vmul.f32 %v3045_v13, %v2846_v42 }
  0x17   : > { %1165 = vmatpush.bf16.msra.mxu3 %v2796_v17  ;;  %385 = vst [vmem:[#allocation2 + $0x18] sm:$0xf] %v2952_v2  ;;  %v363_v44 = vmax.f32 %v355_v34, 0.0  ;;  %vm567_vm5 = vsmask.f32 7440  ;;  %v368_v55 = vmax.f32 %v3086_v35, 0.0 }
  0x18   : > { %v374_v38 = vpack.c.bf16 %v366_v31, %v366_v31  ;;  %v375_v39 = vpack.c.bf16 %v367_v32, %v367_v32  ;;  %386 = vst [vmem:[#allocation2 + $0x1c] sm:$0x1] %v2952_v2  ;;  %v534_v45 = vld [vmem:[#allocation2] sm:$0xf]  ;;  %v365_v56 = vmax.f32 %v3089_v36, 0.0  ;;  %v2772_v6 = vld [vmem:[%s3642_s3 + $0x48] sm:$0xff]  ;;  %v356_v34 = vadd.f32 %v3050_v14, %v345_v63  ;;  %vm3194_vm11 = vmor %vm566_vm4, %vm567_vm5 }
  0x19   : > { %2888 = vmatpush.bf16.msra.mxu1 %v2775_v21  ;;  %764 = vmatpush.bf16.msra.mxu0 %v2775_v21  ;;  %391 = vst [vmem:[#allocation2 + $0x30] sm:$0xf] %v2952_v2  ;;  %v371_v54 = vpack.c.bf16 %v363_v44, %v363_v44  ;;  %v513_v60 = vld [vmem:[#allocation2 + $0x2c] sm:$0x1]  ;;  %v3118_v61 = vld [vmem:[#allocation2 + $0x4] sm:$0x1]  ;;  %v376_v25 = vpack.c.bf16 %v368_v55, %v368_v55 }
  0x1a   : > { %1033 = vmatpush.bf16.msra.mxu2 %v2783_v26  ;;  %v424_v46 = vshrl.u32 %v374_v38, 16  ;;  %v427_v47 = vshll.u32 %v374_v38, 16  ;;  %v432_v48 = vshrl.u32 %v375_v39, 16  ;;  %v435_v49 = vshll.u32 %v375_v39, 16  ;;  %392 = vst [vmem:[#allocation2 + $0x34] sm:$0x1] %v2952_v2 }
  0x1b   : > { %1166 = vmatpush.bf16.msra.mxu3 %v2795_v40  ;;  %393 = vst [vmem:[#allocation2 + $0x38] sm:$0xf] %v2952_v2  ;;  %v400_v1 = vshrl.u32 %v371_v54, 16  ;;  %v403_v3 = vshll.u32 %v371_v54, 16  ;;  %v570_v4 = vshrl.u32 %v534_v45, 16  ;;  %v573_v5 = vshll.u32 %v534_v45, 16 }
  0x1c   : > { %v426_v57 = vrot.slane %v424_v46, 7  ;;  %v434_v58 = vrot.slane %v432_v48, 7  ;;  %394 = vst [vmem:[#allocation2 + $0x3c] sm:$0x1] %v2952_v2  ;;  %v2794_v11 = vld [vmem:[%s3642_s3 + $0xd8] sm:$0xff]  ;;  %v579_v17 = vshll.u32 %v3118_v61, 16 }
  0x1d   : > { %2889 = vmatpush.bf16.msra.mxu1 %v2774_v33  ;;  %765 = vmatpush.bf16.msra.mxu0 %v2774_v33  ;;  %395 = vst [vmem:[#allocation2 + $0x40] sm:$0xf] %v2952_v2  ;;  %v402_v12 = vrot.slane %v400_v1, 7  ;;  %v572_v15 = vrot.slane %v570_v4, 4  ;;  %v575_v16 = vrot.slane %v573_v5, 5  ;;  %v2780_v21 = vld [vmem:[%s3642_s3 + $0x88] sm:$0xff] }
  0x1e   : > { %1034 = vmatpush.bf16.msra.mxu2 %v2782_v37  ;;  %v429_v7 = vor.u32 %v427_v47, %v426_v57  ;;  %v430_v8 = vrot.slane %v426_v57, 4  ;;  %v437_v9 = vor.u32 %v435_v49, %v434_v58  ;;  %v438_v10 = vrot.slane %v434_v58, 4  ;;  %396 = vst [vmem:[#allocation2 + $0x44] sm:$0x1] %v2952_v2  ;;  %v483_v22 = vld [vmem:[#allocation2 + $0x8] sm:$0xf] }
  0x1f   : > { %397 = vst [vmem:[#allocation2 + $0x48] sm:$0xf] %v2952_v2  ;;  %v891_v24 = vld [vmem:[#allocation2] sm:$0xe]  ;;  %v405_v27 = vor.u32 %v403_v3, %v402_v12  ;;  %v406_v28 = vrot.slane %v402_v12, 4  ;;  %v576_v30 = vor.u32 %v575_v16, %v572_v15  ;;  %1167 = vmatpush.bf16.msra.mxu3 %v2794_v11  ;;  %v2793_v31 = vld [vmem:[%s3642_s3 + $0xd0] sm:$0xff]  ;;  %v3183_v47 = vpack.c.bf16 %v365_v56, %v365_v56 }
  0x20   : > { %v505_v18 = vsel %vm3113_vm7, %v429_v7, %v504_v51  ;;  %v508_v19 = vsel %vm3126_vm8, %v430_v8, %v507_v52  ;;  %v511_v20 = vsel %vm3113_vm7, %v437_v9, %v510_v53  ;;  %v514_v26 = vsel %vm3126_vm8, %v438_v10, %v513_v60  ;;  %v489_v29 = vld [vmem:[#allocation2 + $0xc] sm:$0x1]  ;;  %v2771_v35 = vld [vmem:[%s3642_s3 + $0x40] sm:$0xff]  ;;  %v2770_v41 = vld [vmem:[%s3642_s3 + $0x38] sm:$0xff]  ;;  %398 = vst [vmem:[#allocation2 + $0x4c] sm:$0x1] %v2952_v2 }
  0x21   : > { %2890 = vmatpush.bf16.msra.mxu1 %v2773_v43  ;;  %766 = vmatpush.bf16.msra.mxu0 %v2773_v43  ;;  %506 = vst [vmem:[#allocation2 + $0x20] sm:$0xf] %v505_v18  ;;  %v3154_v32 = vrot.slane %v579_v17, 5  ;;  %vm916_vm9 = vcmask 1046532   ;;  %v2475_v33 = vrot.slane %v891_v24, 9  ;;  %v484_v37 = vsel %vm3113_vm7, %v405_v27, %v483_v22  ;;  %v2779_v42 = vld [vmem:[%s3642_s3 + $0x80] sm:$0xff] }
  0x22   : > { %1035 = vmatpush.bf16.msra.mxu2 %v2781_v50  ;;  %509 = vst [vmem:[#allocation2 + $0x24] sm:$0x1] %v508_v19  ;;  %v3162_v38 = vrot.slane %v576_v30, 4  ;;  %v920_v39 = vrot.slane %v3118_v61, 5  ;;  %v369_v40 = vmax.f32 %v3121_v62, 0.0  ;;  %v490_v43 = vsel %vm3126_vm8, %v406_v28, %v489_v29  ;;  %vm3176_vm10 = vmor %vm915_vm6, %vm916_vm9  ;;  %v2806_v48 = vld [vmem:[%s3642_s3 + $0x138] sm:$0xff] }
  0x23   : > { %512 = vst [vmem:[#allocation2 + $0x28] sm:$0xf] %v511_v20  ;;  %v440_v45 = vshrl.u32 %v376_v25, 16  ;;  %v443_v46 = vshll.u32 %v376_v25, 16  ;;  %1168 = vmatpush.bf16.msra.mxu3 %v2793_v31  ;;  %v2792_v49 = vld [vmem:[%s3642_s3 + $0xc8] sm:$0xff]  ;;  %v2769_v2 = vld [vmem:[%s3642_s3 + $0x30] sm:$0xff] }
  0x24   : > { %515 = vst [vmem:[#allocation2 + $0x2c] sm:$0x1] %v514_v26  ;;  %v377_v50 = vpack.c.bf16 %v369_v40, %v369_v40  ;;  %v516_v52 = vld [vmem:[#allocation2 + $0x30] sm:$0xf]  ;;  %v364_v53 = vmax.f32 %v356_v34, 0.0  ;;  %v582_v54 = vsel %vm3194_vm11, %v3162_v38, %v3154_v32  ;;  %v3207_v55 = vsel %vm3176_vm10, %v2475_v33, %v920_v39  ;;  %v2826_v1 = vld [vmem:[%s3642_s3 + $0x1b8] sm:$0xff] }
  0x25   : > { %2891 = vmatpush.bf16.msra.mxu1 %v2772_v6  ;;  %767 = vmatpush.bf16.msra.mxu0 %v2772_v6  ;;  %485 = vst [vmem:[#allocation2 + $0x8] sm:$0xf] %v484_v37  ;;  %v442_v36 = vrot.slane %v440_v45, 7  ;;  %v2805_v56 = vld [vmem:[%s3642_s3 + $0x130] sm:$0xff]  ;;  %v2791_v3 = vld [vmem:[%s3642_s3 + $0xc0] sm:$0xff]  ;;  %v416_v5 = vshrl.u32 %v3183_v47, 16  ;;  %v966_v40 = vunpack.c.l.b16 %v3207_v55 }
  0x26   : > { %1036 = vmatpush.bf16.msra.mxu2 %v2780_v21  ;;  %491 = vst [vmem:[#allocation2 + $0xc] sm:$0x1] %v490_v43  ;;  %v448_v57 = vshrl.u32 %v377_v50, 16  ;;  %v451_v58 = vshll.u32 %v377_v50, 16  ;;  %v519_v60 = vld [vmem:[#allocation2 + $0x34] sm:$0x1]  ;;  %v3218_v4 = vpack.c.bf16 %v364_v53, %v364_v53 }
  0x27   : > { %v445_v62 = vor.u32 %v443_v46, %v442_v36  ;;  %v446_v63 = vrot.slane %v442_v36, 4  ;;  %1169 = vmatpush.bf16.msra.mxu3 %v2792_v49  ;;  %v419_v10 = vshll.u32 %v3183_v47, 16  ;;  %v2768_v15 = vld [vmem:[%s3642_s3 + $0x28] sm:$0xff]  ;;  %v522_v25 = vld [vmem:[#allocation2 + $0x38] sm:$0xf]  ;;  %v2767_v53 = vld [vmem:[%s3642_s3 + $0x20] sm:$0xff] }
  0x28   : > { %v538_v61 = vld [vmem:[#allocation2 + $0x20] sm:$0xf]  ;;  %v450_v9 = vrot.slane %v448_v57, 7  ;;  %v408_v18 = vshrl.u32 %v3218_v4, 16  ;;  %v525_v26 = vld [vmem:[#allocation2 + $0x3c] sm:$0x1] }
  0x29   : > { %2892 = vmatpush.bf16.msra.mxu1 %v2771_v35  ;;  %768 = vmatpush.bf16.msra.mxu0 %v2771_v35  ;;  %v3221_v6 = vld [vmem:[#allocation2 + $0x24] sm:$0x1]  ;;  %v626_v7 = vshrl.u32 %v538_v61, 16  ;;  %v629_v8 = vshll.u32 %v538_v61, 16  ;;  %v517_v16 = vsel %vm3113_vm7, %v445_v62, %v516_v52  ;;  %v520_v17 = vsel %vm3126_vm8, %v446_v63, %v519_v60  ;;  %v2804_v29 = vld [vmem:[%s3642_s3 + $0x128] sm:$0xff]  ;;  %v2825_v32 = vld [vmem:[%s3642_s3 + $0x1b0] sm:$0xff] }
  0x2a   : > { %1037 = vmatpush.bf16.msra.mxu2 %v2779_v42  ;;  %v539_v11 = vld [vmem:[#allocation2 + $0x28] sm:$0xf]  ;;  %v635_v12 = vshll.u32 %v3221_v6, 16  ;;  %v453_v30 = vor.u32 %v451_v58, %v450_v9  ;;  %v454_v31 = vrot.slane %v450_v9, 4  ;;  %518 = vst [vmem:[#allocation2 + $0x30] sm:$0xf] %v517_v16 }
  0x2b   : > { %v3233_v19 = vld [vmem:[#allocation2 + $0x2c] sm:$0x1]  ;;  %v628_v20 = vrot.slane %v626_v7, 4  ;;  %v631_v21 = vrot.slane %v629_v8, 5  ;;  %v640_v22 = vshrl.u32 %v539_v11, 16  ;;  %v643_v24 = vshll.u32 %v539_v11, 16  ;;  %1170 = vmatpush.bf16.msra.mxu3 %v2791_v3 }
  0x2c   : > { %v637_v27 = vrot.slane %v635_v12, 5  ;;  %v649_v28 = vshll.u32 %v3233_v19, 16  ;;  %v535_v37 = vld [vmem:[#allocation2 + $0x8] sm:$0xf]  ;;  %521 = vst [vmem:[#allocation2 + $0x34] sm:$0x1] %v520_v17  ;;  %v523_v55 = vsel %vm3113_vm7, %v453_v30, %v522_v25  ;;  %v697_v11 = vunpack.c.l.b16 %v582_v54 }
  0x2d   : > { %862 = vmatpush.bf16.msrb.mxu1 %v2770_v41  ;;  %1408 = vmatpush.bf16.msrb.mxu0 %v2806_v48  ;;  %v632_v33 = vor.u32 %v631_v21, %v628_v20  ;;  %v642_v34 = vrot.slane %v640_v22, 4  ;;  %v645_v35 = vrot.slane %v643_v24, 5  ;;  %v892_v39 = vld [vmem:[#allocation2 + $0x8] sm:$0xe]  ;;  %v559_v42 = vld [vmem:[#allocation2 + $0xc] sm:$0x1] }
  0x2e   : > { %1715 = vmatpush.bf16.msrb.mxu2 %v2826_v1  ;;  %v651_v41 = vrot.slane %v649_v28, 5  ;;  %v584_v43 = vshrl.u32 %v535_v37, 16  ;;  %v587_v45 = vshll.u32 %v535_v37, 16  ;;  %v2476_v46 = vrot.slane %v892_v39, 9  ;;  %524 = vst [vmem:[#allocation2 + $0x38] sm:$0xf] %v523_v55 }
  0x2f   : > { %v633_v48 = vrot.slane %v632_v33, 4  ;;  %v646_v49 = vor.u32 %v645_v35, %v642_v34  ;;  %v593_v50 = vshll.u32 %v559_v42, 16  ;;  %v2803_v62 = vld [vmem:[%s3642_s3 + $0x120] sm:$0xff]  ;;  %v410_v7 = vrot.slane %v408_v18, 7  ;;  %v492_v8 = vld [vmem:[#allocation2 + $0x10] sm:$0xf] }
  0x30   : > { %v586_v36 = vrot.slane %v584_v43, 4  ;;  %v589_v52 = vrot.slane %v587_v45, 5  ;;  %v418_v16 = vrot.slane %v416_v5, 7  ;;  %v495_v17 = vld [vmem:[#allocation2 + $0x14] sm:$0x1]  ;;  %v2766_v24 = vld [vmem:[%s3642_s3 + $0x18] sm:$0xff] }
  0x31   : > { %863 = vmatpush.bf16.msrb.mxu1 %v2769_v2  ;;  %1409 = vmatpush.bf16.msrb.mxu0 %v2805_v56  ;;  %v924_v2 = vrot.slane %v559_v42, 5  ;;  %v526_v56 = vsel %vm3126_vm8, %v454_v31, %v525_v26  ;;  %v638_v57 = vsel %vm3194_vm11, %v633_v48, %v637_v27  ;;  %v647_v58 = vrot.slane %v646_v49, 4  ;;  %v540_v12 = vld [vmem:[#allocation2 + $0x30] sm:$0xf]  ;;  %v498_v25 = vld [vmem:[#allocation2 + $0x18] sm:$0xf] }
  0x32   : > { %v595_v60 = vrot.slane %v593_v50, 5  ;;  %v701_v63 = vunpack.c.l.b16 %v638_v57  ;;  %v590_v1 = vor.u32 %v589_v52, %v586_v36  ;;  %527 = vst [vmem:[#allocation2 + $0x3c] sm:$0x1] %v526_v56  ;;  %v654_v22 = vshrl.u32 %v540_v12, 16  ;;  %v501_v26 = vld [vmem:[#allocation2 + $0x1c] sm:$0x1]  ;;  %1716 = vmatpush.bf16.msrb.mxu2 %v2825_v32 }
  0x33   : > { %v925_v61 = vsel %vm3176_vm10, %v2476_v46, %v924_v2  ;;  %v652_v9 = vsel %vm3194_vm11, %v647_v58, %v651_v41  ;;  %v657_v38 = vshll.u32 %v540_v12, 16  ;;  %v421_v5 = vor.u32 %v419_v10, %v418_v16  ;;  %v2802_v27 = vld [vmem:[%s3642_s3 + $0x118] sm:$0xff]  ;;  %v3280_v31 = vld [vmem:[#allocation2 + $0x34] sm:$0x1]  ;;  %v2824_v45 = vld [vmem:[%s3642_s3 + $0x1a8] sm:$0xff] }
  0x34   : > { %v967_v3 = vunpack.c.l.b16 %v925_v61  ;;  %v702_v20 = vunpack.c.l.b16 %v652_v9  ;;  %v591_v21 = vrot.slane %v590_v1, 4  ;;  %v2834_v28 = vld [vmem:[%s3642_s3 + $0x1f8] sm:$0xff]  ;;  %v656_v33 = vrot.slane %v654_v22, 4  ;;  %v3297_v46 = vld [vmem:[#allocation2 + $0x8] sm:$0xf]  ;;  %v2801_v36 = vld [vmem:[%s3642_s3 + $0x110] sm:$0xff] }
  0x35   : > { %864 = vmatpush.bf16.msrb.mxu1 %v2768_v15  ;;  %1410 = vmatpush.bf16.msrb.mxu0 %v2804_v29  ;;  %v411_v15 = vshll.u32 %v3218_v4, 16  ;;  %v414_v4 = vrot.slane %v410_v7, 4  ;;  %v422_v34 = vrot.slane %v418_v16, 4  ;;  %v659_v10 = vrot.slane %v657_v38, 5  ;;  %v541_v39 = vld [vmem:[#allocation2 + $0x38] sm:$0xf] }
  0x36   : > { %v974_v18 = vpack.c.b16 %v967_v3, %v966_v40  ;;  %v707_v29 = vpack.c.b16 %v702_v20, %v701_v63  ;;  %v596_v30 = vsel %vm3194_vm11, %v591_v21, %v595_v60  ;;  %v663_v35 = vshll.u32 %v3280_v31, 16  ;;  %1960 = vmatpush.bf16.msrb.mxu3 %v2834_v28  ;;  %v2765_v40 = vld [vmem:[%s3642_s3 + $0x10] sm:$0xff]  ;;  %1717 = vmatpush.bf16.msrb.mxu2 %v2824_v45  ;;  %v2517_v60 = vld [vmem:[#allocation2 + $0x8] sm:$0xf]  ;;  %v2799_v16 = vld [vmem:[%s3642_s3 + $0x100] sm:$0xff] }
  0x37   : > { %v413_v54 = vor.u32 %v411_v15, %v410_v7  ;;  %v698_v47 = vunpack.c.l.b16 %v596_v30  ;;  %v496_v41 = vsel %vm3126_vm8, %v414_v4, %v495_v17  ;;  %v499_v42 = vsel %vm3113_vm7, %v421_v5, %v498_v25  ;;  %v2764_v61 = vld [vmem:[%s3642_s3 + $0x8] sm:$0xff]  ;;  %v2763_v15 = vld [vmem:[%s3642_s3] sm:$0xff]  ;;  %v2814_v30 = vld [vmem:[%s3642_s3 + $0x178] sm:$0xff] }
  0x38   : > { %1038 = vmatmul.bf16.vlgmr.msra.gmra.mxu2 %v974_v18  ;;  %779 = vmatmul.bf16.vlgmr.msra.gmra.mxu1 %v707_v29  ;;  %v502_v43 = vsel %vm3126_vm8, %v422_v34, %v501_v26  ;;  %v660_v50 = vor.u32 %v659_v10, %v656_v33  ;;  %v668_v2 = vshrl.u32 %v541_v39, 16  ;;  %497 = vst [vmem:[#allocation2 + $0x14] sm:$0x1] %v496_v41  ;;  %v665_v52 = vrot.slane %v663_v35, 5  ;;  %v2823_v35 = vld [vmem:[%s3642_s3 + $0x1a0] sm:$0xff] }
  0x39   : > { %865 = vmatpush.bf16.msrb.mxu1 %v2767_v53  ;;  %1411 = vmatpush.bf16.msrb.mxu0 %v2803_v62  ;;  %v493_v37 = vsel %vm3113_vm7, %v413_v54, %v492_v8  ;;  %v705_v48 = vpack.c.b16 %v698_v47, %v697_v11  ;;  %v3299_v49 = vld [vmem:[#allocation2 + $0x3c] sm:$0x1]  ;;  %v671_v53 = vshll.u32 %v541_v39, 16  ;;  %500 = vst [vmem:[#allocation2 + $0x18] sm:$0xf] %v499_v42  ;;  %v2800_v62 = vld [vmem:[%s3642_s3 + $0x108] sm:$0xff] }
  0x3a   : > { %494 = vst [vmem:[#allocation2 + $0x10] sm:$0xf] %v493_v37  ;;  %v677_v55 = vshll.u32 %v3299_v49, 16  ;;  %v661_v56 = vrot.slane %v660_v50, 4  ;;  %v670_v57 = vrot.slane %v668_v2, 4  ;;  %v1217_v63 = vshrl.u32 %v3297_v46, 16  ;;  %1718 = vmatpush.bf16.msrb.mxu2 %v2823_v35 }
  0x3b   : > { %769 = vmatmul.bf16.vlgmr.msra.gmra.mxu0 %v705_v48  ;;  %503 = vst [vmem:[#allocation2 + $0x1c] sm:$0x1] %v502_v43  ;;  %v673_v58 = vrot.slane %v671_v53, 5  ;;  %v1220_v8 = vshll.u32 %v3297_v46, 16  ;;  %v2832_v42 = vld [vmem:[%s3642_s3 + $0x1e8] sm:$0xff]  ;;  %v2813_v53 = vld [vmem:[%s3642_s3 + $0x170] sm:$0xff] }
  0x3c   : > { %v666_v1 = vsel %vm3194_vm11, %v661_v56, %v665_v52  ;;  %v679_v7 = vrot.slane %v677_v55, 5  ;;  %v2811_v35 = vld [vmem:[%s3642_s3 + $0x160] sm:$0xff]  ;;  %v3449_v59 = vld [vmem:[#allocation2 + $0x34] sm:$0x1] }
  0x3d   : > { %866 = vmatpush.bf16.msrb.mxu1 %v2766_v24  ;;  %1412 = vmatpush.bf16.msrb.mxu0 %v2802_v27  ;;  %v674_v3 = vor.u32 %v673_v58, %v670_v57  ;;  %v2833_v24 = vld [vmem:[%s3642_s3 + $0x1f0] sm:$0xff]  ;;  %v703_v25 = vunpack.c.l.b16 %v666_v1  ;;  %v1222_v52 = vrot.slane %v1220_v8, 5 }
  0x3e   : > { %1961 = vmatpush.bf16.msrb.mxu3 %v2833_v24  ;;  %v2788_v24 = vld [vmem:[#allocation2 + $0x1c] sm:$0xf0] }
  0x3f   : > { %v675_v17 = vrot.slane %v674_v3, 4  ;;  %v560_v20 = vld [vmem:[#allocation2 + $0x14] sm:$0x1]  ;;  %v2822_v3 = vld [vmem:[%s3642_s3 + $0x198] sm:$0xff] }
  0x40   : > { %v537_v32 = vld [vmem:[#allocation2 + $0x18] sm:$0xf]  ;;  %v607_v38 = vshll.u32 %v560_v20, 16  ;;  %1719 = vmatpush.bf16.msrb.mxu2 %v2822_v3  ;;  %v897_v3 = vld [vmem:[#allocation2 + $0x30] sm:$0xe] }
  0x41   : > { %867 = vmatpush.bf16.msrb.mxu1 %v2765_v40  ;;  %1413 = vmatpush.bf16.msrb.mxu0 %v2801_v36  ;;  %v536_v9 = vld [vmem:[#allocation2 + $0x10] sm:$0xf]  ;;  %v894_v54 = vld [vmem:[#allocation2 + $0x18] sm:$0xe]  ;;  %v680_v5 = vsel %vm3194_vm11, %v675_v17, %v679_v7  ;;  %v612_v29 = vshrl.u32 %v537_v32, 16  ;;  %v615_v47 = vshll.u32 %v537_v32, 16 }
  0x42   : > { %v2787_v11 = vld [vmem:[#allocation2 + $0xc] sm:$0xf0]  ;;  %v598_v21 = vshrl.u32 %v536_v9, 16  ;;  %v601_v18 = vshll.u32 %v536_v9, 16  ;;  %v561_v26 = vld [vmem:[#allocation2 + $0x1c] sm:$0x1]  ;;  %v704_v33 = vunpack.c.l.b16 %v680_v5  ;;  %1962 = vmatpush.bf16.msrb.mxu3 %v2832_v42 }
  0x43   : > { %v893_v12 = vld [vmem:[#allocation2 + $0x10] sm:$0xe]  ;;  %v2518_v22 = vor.u32 %v2787_v11, %v2517_v60  ;;  %v609_v34 = vrot.slane %v607_v38, 5  ;;  %v621_v10 = vshll.u32 %v561_v26, 16  ;;  %v614_v39 = vrot.slane %v612_v29, 4  ;;  %v3352_v7 = vld [vmem:[%s3642_s3 + $0x238] sm:$0xff] }
  0x44   : > { %v2477_v4 = vrot.slane %v893_v12, 9  ;;  %v600_v27 = vrot.slane %v598_v21, 4  ;;  %v603_v28 = vrot.slane %v601_v18, 5  ;;  %v928_v40 = vrot.slane %v560_v20, 5  ;;  %v1202_v48 = vld [vmem:[#allocation2 + $0x10] sm:$0xf] }
  0x45   : > { %868 = vmatpush.bf16.msrb.mxu1 %v2764_v61  ;;  %1414 = vmatpush.bf16.msrb.mxu0 %v2800_v62  ;;  %v2478_v41 = vrot.slane %v894_v54, 9  ;;  %v708_v43 = vpack.c.b16 %v704_v33, %v703_v25  ;;  %v617_v45 = vrot.slane %v615_v47, 5  ;;  %v932_v46 = vrot.slane %v561_v26, 5  ;;  %v3344_v62 = vld [vmem:[#allocation2 + $0xc] sm:$0x1] }
  0x46   : > { %1171 = vmatmul.bf16.vlgmr.msra.gmra.mxu3 %v2518_v22  ;;  %v604_v37 = vor.u32 %v603_v28, %v600_v27  ;;  %v929_v2 = vsel %vm3176_vm10, %v2477_v4, %v928_v40  ;;  %v1219_v36 = vrot.slane %v1217_v63, 4  ;;  %v623_v56 = vrot.slane %v621_v10, 5  ;;  %v895_v9 = vld [vmem:[#allocation2 + $0x20] sm:$0xe]  ;;  %v896_v11 = vld [vmem:[#allocation2 + $0x28] sm:$0xe] }
  0x47   : > { %v618_v55 = vor.u32 %v617_v45, %v614_v39  ;;  %v933_v57 = vsel %vm3176_vm10, %v2478_v41, %v932_v46  ;;  %v968_v58 = vunpack.c.l.b16 %v929_v2  ;;  %v1231_v63 = vshrl.u32 %v1202_v48, 16  ;;  %v2812_v21 = vld [vmem:[%s3642_s3 + $0x168] sm:$0xff]  ;;  %v2521_v22 = vld [vmem:[#allocation2 + $0x18] sm:$0xf]  ;;  %v2429_v33 = vld [vmem:[#allocation2] sm:$0xf] }
  0x48   : > { %v605_v50 = vrot.slane %v604_v37, 4  ;;  %784 = vmatmul.bf16.gmra.mxu1 %v708_v43  ;;  %v969_v61 = vunpack.c.l.b16 %v933_v57  ;;  %v1234_v1 = vshll.u32 %v1202_v48, 16  ;;  %v1226_v25 = vshll.u32 %v3344_v62, 16  ;;  %v2759_v37 = vld [vmem:[#allocation2 + $0x4] sm:$0xf0]  ;;  %v3382_v43 = vld [vmem:[%s3642_s3 + $0x230] sm:$0xff] }
  0x49   : > { %869 = vmatpush.bf16.msrb.mxu1 %v2763_v15  ;;  %1415 = vmatpush.bf16.msrb.mxu0 %v2799_v16  ;;  %v619_v8 = vrot.slane %v618_v55, 4  ;;  %v3354_v16 = vld [vmem:[#allocation2 + $0x14] sm:$0x1]  ;;  %v1233_v17 = vrot.slane %v1231_v63, 4  ;;  %v1223_v38 = vor.u32 %v1222_v52, %v1219_v36  ;;  %v2479_v54 = vrot.slane %v895_v9, 9 }
  0x4a   : > { %v610_v60 = vsel %vm3194_vm11, %v605_v50, %v609_v34  ;;  %v975_v15 = vpack.c.b16 %v969_v61, %v968_v58  ;;  %v1236_v20 = vrot.slane %v1234_v1, 5  ;;  %v936_v4 = vrot.slane %v3221_v6, 5  ;;  %v1204_v34 = vld [vmem:[#allocation2 + $0x18] sm:$0xf]  ;;  %v2831_v6 = vld [vmem:[%s3642_s3 + $0x1e0] sm:$0xff] }
  0x4b   : > { %v699_v12 = vunpack.c.l.b16 %v610_v60  ;;  %v624_v18 = vsel %vm3194_vm11, %v619_v8, %v623_v56  ;;  %v1240_v26 = vshll.u32 %v3354_v16, 16  ;;  %v2480_v27 = vrot.slane %v896_v11, 9  ;;  %v1206_v45 = vld [vmem:[#allocation2 + $0x20] sm:$0xf]  ;;  %1963 = vmatpush.bf16.msrb.mxu3 %v2831_v6  ;;  %v2830_v50 = vld [vmem:[%s3642_s3 + $0x1d8] sm:$0xff] }
  0x4c   : > { %v700_v32 = vunpack.c.l.b16 %v624_v18  ;;  %1043 = vmatmul.bf16.gmra.mxu2 %v975_v15  ;;  %v1237_v5 = vor.u32 %v1236_v20, %v1233_v17  ;;  %v940_v28 = vrot.slane %v3233_v19, 5  ;;  %v1224_v47 = vrot.slane %v1223_v38, 4  ;;  %v2821_v19 = vld [vmem:[%s3642_s3 + $0x190] sm:$0xff]  ;;  %v3394_v61 = vld [vmem:[#allocation2 + $0x1c] sm:$0x1] }
  0x4d   : > { %1581 = vmatpush.bf16.msra.mxu1 %v2814_v30  ;;  %2133 = vmatpush.bf16.msra.mxu0 %v3352_v7  ;;  %v2522_v30 = vor.u32 %v2788_v24, %v2521_v22  ;;  %v937_v10 = vsel %vm3176_vm10, %v2479_v54, %v936_v4  ;;  %v1228_v39 = vrot.slane %v1226_v25, 5  ;;  %v1242_v41 = vrot.slane %v1240_v26, 5  ;;  %v2810_v11 = vld [vmem:[%s3642_s3 + $0x158] sm:$0xff]  ;;  %v2525_v18 = vld [vmem:[#allocation2 + $0x28] sm:$0xf]  ;;  %v2819_v24 = vld [vmem:[%s3642_s3 + $0x180] sm:$0xff] }
  0x4e   : > { %v706_v29 = vpack.c.b16 %v700_v32, %v699_v12  ;;  %v1238_v40 = vrot.slane %v1237_v5, 4  ;;  %v941_v42 = vsel %vm3176_vm10, %v2480_v27, %v940_v28  ;;  %v1245_v46 = vshrl.u32 %v1204_v34, 16  ;;  %1720 = vmatpush.bf16.msrb.mxu2 %v2821_v19  ;;  %v2820_v12 = vld [vmem:[%s3642_s3 + $0x188] sm:$0xff]  ;;  %v3408_v22 = vld [vmem:[#allocation2 + $0x24] sm:$0x1] }
  0x4f   : > { %v1248_v48 = vshll.u32 %v1204_v34, 16  ;;  %v2430_v2 = vor.u32 %v2759_v37, %v2429_v33  ;;  %v970_v36 = vunpack.c.l.b16 %v937_v10  ;;  %v971_v52 = vunpack.c.l.b16 %v941_v42  ;;  %1964 = vmatpush.bf16.msrb.mxu3 %v2830_v50  ;;  %v2789_v32 = vld [vmem:[#allocation2 + $0x2c] sm:$0xf0]  ;;  %v2760_v34 = vld [vmem:[#allocation2 + $0x14] sm:$0xf0] }
  0x50   : > { %774 = vmatmul.bf16.gmra.mxu0 %v706_v29  ;;  %v1229_v55 = vsel %vm3194_vm11, %v1224_v47, %v1228_v39  ;;  %v1243_v56 = vsel %vm3194_vm11, %v1238_v40, %v1242_v41  ;;  %v1259_v57 = vshrl.u32 %v1206_v45, 16  ;;  %v1262_v58 = vshll.u32 %v1206_v45, 16  ;;  %v2433_v33 = vld [vmem:[#allocation2 + $0x10] sm:$0xf]  ;;  %v531_v50 = vld [vmem:[#allocation2 + $0x44] sm:$0x1] }
  0x51   : > { %1582 = vmatpush.bf16.msra.mxu1 %v2813_v53  ;;  %2134 = vmatpush.bf16.msra.mxu0 %v3382_v43  ;;  %v2858_v53 = vunpack.c.h.bf16 %v3066_v23  ;;  %v1247_v63 = vrot.slane %v1245_v46, 4  ;;  %v1250_v1 = vrot.slane %v1248_v48, 5  ;;  %v1344_v8 = vunpack.c.l.b16 %v1229_v55  ;;  %v1210_v37 = vld [vmem:[#allocation2 + $0x30] sm:$0xf]  ;;  %v528_v48 = vld [vmem:[#allocation2 + $0x40] sm:$0xf] }
  0x52   : > { %v1345_v9 = vunpack.c.l.b16 %v1243_v56  ;;  %v976_v23 = vpack.c.b16 %v971_v52, %v970_v36  ;;  %v1261_v17 = vrot.slane %v1259_v57, 4  ;;  %v1264_v20 = vrot.slane %v1262_v58, 5  ;;  %1721 = vmatpush.bf16.msrb.mxu2 %v2820_v12  ;;  %v2829_v41 = vld [vmem:[%s3642_s3 + $0x1d0] sm:$0xff] }
  0x53   : > { %v351_v60 = vmul.f32 %v3045_v13, %v2858_v53  ;;  %v3405_v13 = vld [vmem:[%s3642_s3 + $0x228] sm:$0xff]  ;;  %v1251_v38 = vor.u32 %v1250_v1, %v1247_v63  ;;  %v1254_v54 = vshll.u32 %v3394_v61, 16  ;;  %v2481_v4 = vrot.slane %v897_v3, 9  ;;  %v2809_v42 = vld [vmem:[%s3642_s3 + $0x150] sm:$0xff]  ;;  %1965 = vmatpush.bf16.msrb.mxu3 %v2829_v41 }
  0x54   : > { %v1352_v5 = vpack.c.b16 %v1345_v9, %v1344_v8  ;;  %v948_v27 = vrot.slane %v3299_v49, 5  ;;  %v1265_v29 = vor.u32 %v1264_v20, %v1261_v17  ;;  %v2526_v47 = vor.u32 %v2789_v32, %v2525_v18  ;;  %v1752_v9 = vld [vmem:[#allocation2 + $0x10] sm:$0xf] }
  0x55   : > { %1583 = vmatpush.bf16.msra.mxu1 %v2812_v21  ;;  %v362_v15 = vadd.f32 %v3050_v14, %v351_v60  ;;  %v898_v21 = vld [vmem:[#allocation2 + $0x38] sm:$0xe]  ;;  %v944_v14 = vrot.slane %v3280_v31, 5  ;;  %2135 = vmatpush.bf16.msra.mxu0 %v3405_v13  ;;  %v1256_v19 = vrot.slane %v1254_v54, 5  ;;  %v1208_v31 = vld [vmem:[#allocation2 + $0x28] sm:$0xf]  ;;  %v2434_v55 = vor.u32 %v2760_v34, %v2433_v33 }
  0x56   : > { %1176 = vmatmul.bf16.gmra.mxu3 %v2522_v30  ;;  %v2482_v26 = vrot.slane %v898_v21, 9  ;;  %v1268_v30 = vshll.u32 %v3408_v22, 16  ;;  %1722 = vmatpush.bf16.msrb.mxu2 %v2819_v24  ;;  %v1266_v45 = vrot.slane %v1265_v29, 4  ;;  %v1273_v52 = vshrl.u32 %v1208_v31, 16  ;;  %v2828_v60 = vld [vmem:[%s3642_s3 + $0x1c8] sm:$0xff] }
  0x57   : > { %v370_v25 = vmax.f32 %v362_v15, 0.0  ;;  %v945_v49 = vsel %vm3176_vm10, %v2481_v4, %v944_v14  ;;  %v1276_v53 = vshll.u32 %v1208_v31, 16  ;;  %v1287_v1 = vshrl.u32 %v1210_v37, 16  ;;  %v3447_v15 = vld [vmem:[#allocation2 + $0x2c] sm:$0x1]  ;;  %1966 = vmatpush.bf16.msrb.mxu3 %v2828_v60  ;;  %v2838_v4 = vld [vmem:[%s3642_s3 + $0x218] sm:$0xff] }
  0x58   : > { %870 = vmatmul.bf16.vlgmr.msrb.gmra.mxu1 %v2430_v2  ;;  %v949_v39 = vsel %vm3176_vm10, %v2482_v26, %v948_v27  ;;  %v1270_v46 = vrot.slane %v1268_v30, 5  ;;  %v972_v57 = vunpack.c.l.b16 %v945_v49  ;;  %v1290_v3 = vshll.u32 %v1210_v37, 16  ;;  %v2808_v54 = vld [vmem:[%s3642_s3 + $0x148] sm:$0xff]  ;;  %v2827_v14 = vld [vmem:[%s3642_s3 + $0x1c0] sm:$0xff] }
  0x59   : > { %1584 = vmatpush.bf16.msra.mxu1 %v2811_v35  ;;  %v378_v28 = vpack.c.bf16 %v370_v25, %v370_v25  ;;  %v1252_v35 = vrot.slane %v1251_v38, 4  ;;  %v973_v58 = vunpack.c.l.b16 %v949_v39  ;;  %v1275_v17 = vrot.slane %v1273_v52, 4  ;;  %v2761_v39 = vld [vmem:[#allocation2 + $0x24] sm:$0xf0] }
  0x5a   : > { %2893 = vmatpush.bf16.msra.mxu2 %v3352_v7  ;;  %v3432_v7 = vld [vmem:[%s3642_s3 + $0x220] sm:$0xff]  ;;  %v1278_v20 = vrot.slane %v1276_v53, 5  ;;  %v1769_v21 = vshrl.u32 %v1752_v9, 16  ;;  %v1772_v0 = vshll.u32 %v1752_v9, 16  ;;  %v1289_v32 = vrot.slane %v1287_v1, 4 }
  0x5b   : > { %v456_v10 = vshrl.u32 %v378_v28, 16  ;;  %v459_v6 = vshll.u32 %v378_v28, 16  ;;  %v1257_v56 = vsel %vm3194_vm11, %v1252_v35, %v1256_v19  ;;  %2136 = vmatpush.bf16.msra.mxu0 %v3432_v7  ;;  %v1292_v38 = vrot.slane %v1290_v3, 5  ;;  %v2529_v28 = vld [vmem:[#allocation2 + $0x38] sm:$0xf]  ;;  %1967 = vmatpush.bf16.msrb.mxu3 %v2827_v14  ;;  %v2836_v3 = vld [vmem:[%s3642_s3 + $0x208] sm:$0xff] }
  0x5c   : > { %1048 = vmatmul.bf16.gmra.mxu2 %v976_v23  ;;  %v1754_v23 = vld [vmem:[#allocation2 + $0x18] sm:$0xf]  ;;  %v1346_v12 = vunpack.c.l.b16 %v1257_v56  ;;  %v1282_v26 = vshll.u32 %v3447_v15, 16  ;;  %v1296_v27 = vshll.u32 %v3449_v59, 16  ;;  %v1771_v29 = vrot.slane %v1769_v21, 4 }
  0x5d   : > { %1585 = vmatpush.bf16.msra.mxu1 %v2810_v11  ;;  %v458_v40 = vrot.slane %v456_v10, 7  ;;  %v1271_v11 = vsel %vm3194_vm11, %v1266_v45, %v1270_v46  ;;  %v1783_v18 = vshrl.u32 %v1754_v23, 16  ;;  %v1786_v24 = vshll.u32 %v1754_v23, 16  ;;  %v3463_v35 = vld [vmem:[#allocation2 + $0x14] sm:$0x1] }
  0x5e   : > { %2894 = vmatpush.bf16.msra.mxu2 %v3382_v43  ;;  %v1347_v25 = vunpack.c.l.b16 %v1271_v11  ;;  %v977_v43 = vpack.c.b16 %v973_v58, %v972_v57  ;;  %v1774_v30 = vrot.slane %v1772_v0, 5  ;;  %v2437_v19 = vld [vmem:[#allocation2 + $0x20] sm:$0xf]  ;;  %v1284_v49 = vrot.slane %v1282_v26, 5  ;;  %v1758_v57 = vld [vmem:[#allocation2 + $0x28] sm:$0xf] }
  0x5f   : > { %v461_v2 = vor.u32 %v459_v6, %v458_v40  ;;  %v462_v36 = vrot.slane %v458_v40, 4  ;;  %2137 = vmatpush.bf16.msra.mxu0 %v2838_v4  ;;  %v1785_v33 = vrot.slane %v1783_v18, 4  ;;  %v1788_v34 = vrot.slane %v1786_v24, 5  ;;  %v1212_v40 = vld [vmem:[#allocation2 + $0x38] sm:$0xf] }
  0x60   : > { %1416 = vmatmul.bf16.vlgmr.msrb.gmra.mxu0 %v1352_v5  ;;  %v1279_v5 = vor.u32 %v1278_v20, %v1275_v17  ;;  %v1293_v6 = vor.u32 %v1292_v38, %v1289_v32  ;;  %v1775_v41 = vor.u32 %v1774_v30, %v1771_v29  ;;  %v2438_v52 = vor.u32 %v2761_v39, %v2437_v19  ;;  %v1756_v56 = vld [vmem:[#allocation2 + $0x20] sm:$0xf]  ;;  %v2637_v9 = vld [vmem:[#allocation2 + $0x10] sm:$0xf]  ;;  %v2815_v17 = vld [vmem:[#allocation2 + $0x14] sm:$0xf0] }
  0x61   : > { %1586 = vmatpush.bf16.msra.mxu1 %v2809_v42  ;;  %v529_v63 = vsel %vm3113_vm7, %v461_v2, %v528_v48  ;;  %v532_v8 = vsel %vm3126_vm8, %v462_v36, %v531_v50  ;;  %v1778_v42 = vshll.u32 %v3463_v35, 16  ;;  %v1789_v45 = vor.u32 %v1788_v34, %v1785_v33  ;;  %v2807_v2 = vld [vmem:[%s3642_s3 + $0x140] sm:$0xff]  ;;  %v3496_v19 = vld [vmem:[#allocation2 + $0x2c] sm:$0x1] }
  0x62   : > { %530 = vst [vmem:[#allocation2 + $0x40] sm:$0xf] %v529_v63  ;;  %2895 = vmatpush.bf16.msra.mxu2 %v3405_v13  ;;  %v3465_v13 = vld [vmem:[#allocation2 + $0x1c] sm:$0x1]  ;;  %v1280_v37 = vrot.slane %v1279_v5, 4  ;;  %v1294_v48 = vrot.slane %v1293_v6, 4 }
  0x63   : > { %533 = vst [vmem:[#allocation2 + $0x44] sm:$0x1] %v532_v8  ;;  %v1792_v46 = vshll.u32 %v3465_v13, 16  ;;  %v1298_v50 = vrot.slane %v1296_v27, 5  ;;  %v1776_v58 = vrot.slane %v1775_v41, 4  ;;  %v1780_v60 = vrot.slane %v1778_v42, 5 }
  0x64   : > { %v1285_v53 = vsel %vm3194_vm11, %v1280_v37, %v1284_v49  ;;  %v1790_v63 = vrot.slane %v1789_v45, 4  ;;  %v1304_v23 = vshll.u32 %v1212_v40, 16  ;;  %v1797_v20 = vshrl.u32 %v1756_v56, 16  ;;  %v2835_v27 = vld [vmem:[%s3642_s3 + $0x200] sm:$0xff] }
  0x65   : > { %1587 = vmatpush.bf16.msra.mxu1 %v2808_v54  ;;  %v1794_v1 = vrot.slane %v1792_v46, 5  ;;  %v1299_v8 = vsel %vm3194_vm11, %v1294_v48, %v1298_v50  ;;  %v1800_v21 = vshll.u32 %v1756_v56, 16  ;;  %v1811_v0 = vshrl.u32 %v1758_v57, 16  ;;  %v3494_v6 = vld [vmem:[#allocation2 + $0x24] sm:$0x1] }
  0x66   : > { %1181 = vmatmul.bf16.gmra.mxu3 %v2526_v47  ;;  %v1353_v47 = vpack.c.b16 %v1347_v25, %v1346_v12  ;;  %2896 = vmatpush.bf16.msra.mxu2 %v3432_v7  ;;  %v2837_v7 = vld [vmem:[%s3642_s3 + $0x210] sm:$0xff]  ;;  %v1814_v18 = vshll.u32 %v1758_v57, 16  ;;  %v1348_v24 = vunpack.c.l.b16 %v1285_v53  ;;  %v1349_v25 = vunpack.c.l.b16 %v1299_v8  ;;  %v2762_v53 = vld [vmem:[#allocation2 + $0x34] sm:$0xf0] }
  0x67   : > { %2138 = vmatpush.bf16.msra.mxu0 %v2837_v7  ;;  %v1781_v32 = vsel %vm3194_vm11, %v1776_v58, %v1780_v60  ;;  %v1795_v38 = vsel %vm3194_vm11, %v1790_v63, %v1794_v1  ;;  %v2638_v54 = vor.u32 %v2815_v17, %v2637_v9  ;;  %v1306_v14 = vrot.slane %v1304_v23, 5  ;;  %v2441_v50 = vld [vmem:[#allocation2 + $0x30] sm:$0xf]  ;;  %v1762_v63 = vld [vmem:[#allocation2 + $0x38] sm:$0xf] }
  0x68   : > { %875 = vmatmul.bf16.gmra.mxu1 %v2434_v55  ;;  %v1301_v55 = vshrl.u32 %v1212_v40, 16  ;;  %v1799_v29 = vrot.slane %v1797_v20, 4  ;;  %v1802_v30 = vrot.slane %v1800_v21, 5  ;;  %v1813_v33 = vrot.slane %v1811_v0, 4  ;;  %v1760_v60 = vld [vmem:[#allocation2 + $0x30] sm:$0xf] }
  0x69   : > { %v2790_v10 = vld [vmem:[#allocation2 + $0x3c] sm:$0xf0]  ;;  %1588 = vmatpush.bf16.msra.mxu1 %v2807_v2  ;;  %v1816_v34 = vrot.slane %v1814_v18, 5  ;;  %v1806_v42 = vshll.u32 %v3494_v6, 16  ;;  %v1820_v46 = vshll.u32 %v3496_v19, 16  ;;  %v2442_v1 = vor.u32 %v2762_v53, %v2441_v50 }
  0x6a   : > { %v2530_v31 = vor.u32 %v2790_v10, %v2529_v28  ;;  %v1214_v36 = vld [vmem:[#allocation2 + $0x40] sm:$0xf]  ;;  %2897 = vmatpush.bf16.msra.mxu2 %v2838_v4  ;;  %v3487_v4 = vld [vmem:[#allocation2 + $0x3c] sm:$0x1]  ;;  %v3492_v28 = vld [vmem:[#allocation2 + $0x44] sm:$0x1]  ;;  %v1897_v10 = vunpack.c.l.b16 %v1795_v38  ;;  %v1803_v41 = vor.u32 %v1802_v30, %v1799_v29 }
  0x6b   : > { %v1315_v11 = vshrl.u32 %v1214_v36, 16  ;;  %v1318_v12 = vshll.u32 %v1214_v36, 16  ;;  %2139 = vmatpush.bf16.msra.mxu0 %v2836_v3  ;;  %v1310_v49 = vshll.u32 %v3487_v4, 16  ;;  %v1324_v40 = vshll.u32 %v3492_v28, 16  ;;  %v2641_v9 = vld [vmem:[#allocation2 + $0x20] sm:$0xf] }
  0x6c   : > { %1053 = vmatmul.bf16.gmra.mxu2 %v977_v43  ;;  %v1303_v43 = vrot.slane %v1301_v55, 4  ;;  %v1817_v45 = vor.u32 %v1816_v34, %v1813_v33  ;;  %v1804_v55 = vrot.slane %v1803_v41, 4  ;;  %v1808_v56 = vrot.slane %v1806_v42, 5  ;;  %v2816_v23 = vld [vmem:[#allocation2 + $0x24] sm:$0xf0] }
  0x6d   : > { %v1317_v5 = vrot.slane %v1315_v11, 4  ;;  %v1320_v26 = vrot.slane %v1318_v12, 5  ;;  %v1822_v58 = vrot.slane %v1820_v46, 5  ;;  %v1445_v11 = vld [vmem:[#allocation2 + $0x8] sm:$0xe]  ;;  %v1825_v21 = vshrl.u32 %v1760_v60, 16 }
  0x6e   : > { %2898 = vmatpush.bf16.msra.mxu2 %v2837_v7  ;;  %v1307_v37 = vor.u32 %v1306_v14, %v1303_v43  ;;  %v1312_v7 = vrot.slane %v1310_v49, 5  ;;  %v1818_v57 = vrot.slane %v1817_v45, 4  ;;  %v1809_v12 = vsel %vm3194_vm11, %v1804_v55, %v1808_v56  ;;  %v1446_v20 = vld [vmem:[#allocation2 + $0x10] sm:$0xe] }
  0x6f   : > { %2140 = vmatpush.bf16.msra.mxu0 %v2835_v27  ;;  %v1321_v39 = vor.u32 %v1320_v26, %v1317_v5  ;;  %v1828_v0 = vshll.u32 %v1760_v60, 16  ;;  %v1839_v18 = vshrl.u32 %v1762_v63, 16  ;;  %v1475_v43 = vrot.slane %v3354_v16, 5  ;;  %v1997_v49 = vld [vmem:[#allocation2 + $0x10] sm:$0xe] }
  0x70   : > { %1421 = vmatmul.bf16.gmra.mxu0 %v1353_v47  ;;  %v1896_v47 = vunpack.c.l.b16 %v1781_v32  ;;  %v1308_v2 = vrot.slane %v1307_v37, 4  ;;  %v1823_v17 = vsel %vm3194_vm11, %v1818_v57, %v1822_v58  ;;  %v2595_v14 = vrot.slane %v1445_v11, 9  ;;  %v1764_v58 = vld [vmem:[#allocation2 + $0x40] sm:$0xf]  ;;  %v1766_v60 = vld [vmem:[#allocation2 + $0x48] sm:$0xf] }
  0x71   : > { %v1322_v36 = vrot.slane %v1321_v39, 4  ;;  %v2596_v5 = vrot.slane %v1446_v20, 9  ;;  %v1898_v26 = vunpack.c.l.b16 %v1809_v12  ;;  %v1827_v29 = vrot.slane %v1825_v21, 4  ;;  %v1998_v39 = vld [vmem:[#allocation2 + $0x18] sm:$0xe] }
  0x72   : > { %2899 = vmatpush.bf16.msra.mxu2 %v2836_v3  ;;  %v1904_v48 = vpack.c.b16 %v1897_v10, %v1896_v47  ;;  %v1313_v3 = vsel %vm3194_vm11, %v1308_v2, %v1312_v7  ;;  %v1830_v30 = vrot.slane %v1828_v0, 5  ;;  %v1841_v33 = vrot.slane %v1839_v18, 4  ;;  %v3512_v47 = vld [vmem:[#allocation2 + $0x34] sm:$0x1]  ;;  %v3514_v10 = vld [vmem:[#allocation2 + $0x3c] sm:$0x1] }
  0x73   : > { %v1350_v32 = vunpack.c.l.b16 %v1313_v3  ;;  %v1476_v16 = vsel %vm3176_vm10, %v2596_v5, %v1475_v43  ;;  %v1834_v41 = vshll.u32 %v3512_v47, 16  ;;  %v1848_v45 = vshll.u32 %v3514_v10, 16  ;;  %v2645_v3 = vld [vmem:[#allocation2 + $0x30] sm:$0xf] }
  0x74   : > { %v2023_v50 = vrot.slane %v3463_v35, 5  ;;  %v2027_v2 = vrot.slane %v3465_v13, 5  ;;  %v2715_v7 = vrot.slane %v1997_v49, 9  ;;  %v2817_v35 = vld [vmem:[#allocation2 + $0x34] sm:$0xf0]  ;;  %v1853_v11 = vshrl.u32 %v1764_v58, 16 }
  0x75   : > { %v1836_v53 = vrot.slane %v1834_v41, 5  ;;  %v1850_v56 = vrot.slane %v1848_v45, 5  ;;  %v1448_v13 = vld [vmem:[#allocation2 + $0x20] sm:$0xe]  ;;  %v1856_v12 = vshll.u32 %v1764_v58, 16  ;;  %v1870_v20 = vshll.u32 %v1766_v60, 16 }
  0x76   : > { %1186 = vmatmul.bf16.gmra.mxu3 %v2530_v31  ;;  %v1354_v31 = vpack.c.b16 %v1349_v25, %v1348_v24  ;;  %2900 = vmatpush.bf16.msra.mxu2 %v2835_v27  ;;  %v1842_v24 = vshll.u32 %v1762_v63, 16  ;;  %v1471_v25 = vrot.slane %v3344_v62, 5  ;;  %v1899_v27 = vunpack.c.l.b16 %v1823_v17  ;;  %v1450_v58 = vld [vmem:[#allocation2 + $0x30] sm:$0xe] }
  0x77   : > { %v2024_v63 = vsel %vm3176_vm10, %v2715_v7, %v2023_v50  ;;  %v1867_v17 = vshrl.u32 %v1766_v60, 16  ;;  %v2646_v18 = vor.u32 %v2817_v35, %v2645_v3  ;;  %v2598_v43 = vrot.slane %v1448_v13, 9 }
  0x78   : > { %880 = vmatmul.bf16.gmra.mxu1 %v2438_v52  ;;  %v1326_v52 = vrot.slane %v1324_v40, 5  ;;  %v1844_v34 = vrot.slane %v1842_v24, 5  ;;  %v1472_v62 = vsel %vm3176_vm10, %v2595_v14, %v1471_v25  ;;  %v1905_v37 = vpack.c.b16 %v1899_v27, %v1898_v26  ;;  %v1999_v14 = vld [vmem:[#allocation2 + $0x20] sm:$0xe] }
  0x79   : > { %v1831_v40 = vor.u32 %v1830_v30, %v1827_v29  ;;  %v1517_v46 = vunpack.c.l.b16 %v1472_v62  ;;  %v2069_v21 = vunpack.c.l.b16 %v2024_v63  ;;  %v1479_v25 = vrot.slane %v3394_v61, 5 }
  0x7a   : > { %v1327_v8 = vsel %vm3194_vm11, %v1322_v36, %v1326_v52  ;;  %v1845_v42 = vor.u32 %v1844_v34, %v1841_v33  ;;  %v2716_v36 = vrot.slane %v1998_v39, 9  ;;  %v1855_v5 = vrot.slane %v1853_v11, 4  ;;  %v3534_v33 = vld [vmem:[#allocation2 + $0x44] sm:$0x1]  ;;  %v3536_v34 = vld [vmem:[#allocation2 + $0x4c] sm:$0x1] }
  0x7b   : > { %v1351_v38 = vunpack.c.l.b16 %v1327_v8  ;;  %v1832_v52 = vrot.slane %v1831_v40, 4  ;;  %v1447_v8 = vld [vmem:[#allocation2 + $0x18] sm:$0xe]  ;;  %v1858_v26 = vrot.slane %v1856_v12, 5  ;;  %v1869_v27 = vrot.slane %v1867_v17, 4 }
  0x7c   : > { %1723 = vmatmul.bf16.vlgmr.msrb.gmra.mxu2 %v2638_v54  ;;  %v2642_v54 = vor.u32 %v2816_v23, %v2641_v9  ;;  %v1846_v55 = vrot.slane %v1845_v42, 4  ;;  %v2597_v24 = vrot.slane %v1447_v8, 9  ;;  %v1872_v29 = vrot.slane %v1870_v20, 5  ;;  %v2003_v12 = vld [vmem:[#allocation2 + $0x40] sm:$0xe] }
  0x7d   : > { %v1837_v9 = vsel %vm3194_vm11, %v1832_v52, %v1836_v53  ;;  %v1859_v49 = vor.u32 %v1858_v26, %v1855_v5  ;;  %v1862_v39 = vshll.u32 %v3534_v33, 16  ;;  %v1876_v41 = vshll.u32 %v3536_v34, 16  ;;  %v2004_v17 = vld [vmem:[#allocation2 + $0x48] sm:$0xe] }
  0x7e   : > { %v1851_v23 = vsel %vm3194_vm11, %v1846_v55, %v1850_v56  ;;  %v1873_v40 = vor.u32 %v1872_v29, %v1869_v27  ;;  %v2649_v55 = vld [vmem:[#allocation2 + $0x40] sm:$0xf]  ;;  %v2818_v56 = vld [vmem:[#allocation2 + $0x44] sm:$0xf0]  ;;  %v1487_v8 = vrot.slane %v3447_v15, 5  ;;  %v2600_v13 = vrot.slane %v1450_v58, 9 }
  0x7f   : > { %v1864_v7 = vrot.slane %v1862_v39, 5  ;;  %v2001_v15 = vld [vmem:[#allocation2 + $0x30] sm:$0xe]  ;;  %v2043_v26 = vrot.slane %v3514_v10, 5  ;;  %v1452_v10 = vld [vmem:[#allocation2 + $0x40] sm:$0xe] }
  0x80   : > { %1426 = vmatmul.bf16.gmra.mxu0 %v1354_v31  ;;  %v1355_v31 = vpack.c.b16 %v1351_v38, %v1350_v32  ;;  %v1483_v32 = vrot.slane %v3408_v22, 5  ;;  %v1900_v38 = vunpack.c.l.b16 %v1837_v9  ;;  %v2000_v22 = vld [vmem:[#allocation2 + $0x28] sm:$0xe]  ;;  %v1491_v9 = vrot.slane %v3449_v59, 5 }
  0x82   : > { %v1484_v61 = vsel %vm3176_vm10, %v2598_v43, %v1483_v32  ;;  %v1492_v51 = vsel %vm3176_vm10, %v2600_v13, %v1491_v9  ;;  %v2002_v43 = vld [vmem:[#allocation2 + $0x38] sm:$0xe] }
  0x83   : > { %v1520_v45 = vunpack.c.l.b16 %v1484_v61  ;;  %v2720_v5 = vrot.slane %v2002_v43, 9 }
  0x86   : > { %1968 = vmatmul.bf16.vlgmr.msrb.gmra.mxu3 %v1904_v48  ;;  %v1518_v48 = vunpack.c.l.b16 %v1476_v16  ;;  %v2717_v16 = vrot.slane %v1999_v14, 9  ;;  %v2039_v14 = vrot.slane %v3512_v47, 5  ;;  %v2044_v47 = vsel %vm3176_vm10, %v2720_v5, %v2043_v26 }
  0x88   : > { %885 = vmatmul.bf16.gmra.mxu1 %v2442_v1  ;;  %v1525_v57 = vpack.c.b16 %v1518_v48, %v1517_v46  ;;  %v2028_v1 = vsel %vm3176_vm10, %v2716_v36, %v2027_v2  ;;  %v2718_v46 = vrot.slane %v2000_v22, 9  ;;  %v2035_v48 = vrot.slane %v3496_v19, 5  ;;  %v1451_v22 = vld [vmem:[#allocation2 + $0x38] sm:$0xe] }
  0x89   : > { %v2070_v0 = vunpack.c.l.b16 %v2028_v1  ;;  %v1860_v2 = vrot.slane %v1859_v49, 4  ;;  %v1874_v36 = vrot.slane %v1873_v40, 4  ;;  %v2650_v1 = vor.u32 %v2818_v56, %v2649_v55 }
  0x8a   : > { %v2036_v53 = vsel %vm3176_vm10, %v2718_v46, %v2035_v48  ;;  %v2601_v39 = vrot.slane %v1451_v22, 9  ;;  %v1495_v40 = vrot.slane %v3487_v4, 5 }
  0x8b   : > { %v2077_v30 = vpack.c.b16 %v2070_v0, %v2069_v21  ;;  %v2072_v63 = vunpack.c.l.b16 %v2036_v53  ;;  %v1865_v19 = vsel %vm3194_vm11, %v1860_v2, %v1864_v7  ;;  %v2047_v0 = vrot.slane %v3534_v33, 5 }
  0x8c   : > { %1728 = vmatmul.bf16.gmra.mxu2 %v2642_v54  ;;  %v1901_v54 = vunpack.c.l.b16 %v1851_v23  ;;  %v1902_v23 = vunpack.c.l.b16 %v1865_v19 }
  0x8e   : > { %v1906_v62 = vpack.c.b16 %v1901_v54, %v1900_v38  ;;  %v1522_v38 = vunpack.c.l.b16 %v1492_v51  ;;  %v2719_v54 = vrot.slane %v2001_v15, 9 }
  0x90   : > { %1431 = vmatmul.bf16.gmra.mxu0 %v1355_v31  ;;  %v1480_v31 = vsel %vm3176_vm10, %v2597_v24, %v1479_v25  ;;  %v2721_v24 = vrot.slane %v2003_v12, 9  ;;  %v2722_v25 = vrot.slane %v2004_v17, 9  ;;  %v2040_v61 = vsel %vm3176_vm10, %v2719_v54, %v2039_v14 }
  0x91   : > { %v1519_v42 = vunpack.c.l.b16 %v1480_v31 }
  0x92   : > { %v2048_v27 = vsel %vm3176_vm10, %v2721_v24, %v2047_v0 }
  0x93   : > { %v1526_v52 = vpack.c.b16 %v1520_v45, %v1519_v42  ;;  %v2075_v33 = vunpack.c.l.b16 %v2048_v27  ;;  %v1499_v42 = vrot.slane %v3492_v28, 5 }
  0x96   : > { %1973 = vmatmul.bf16.gmra.mxu3 %v1905_v37  ;;  %v2031_v37 = vrot.slane %v3494_v6, 5  ;;  %v1878_v6 = vrot.slane %v1876_v41, 5  ;;  %v2602_v41 = vrot.slane %v1452_v10, 9 }
  0x98   : > { %1589 = vmatmul.bf16.vlgmr.msra.gmra.mxu1 %v1525_v57  ;;  %v2032_v50 = vsel %vm3176_vm10, %v2717_v16, %v2031_v37  ;;  %v1449_v57 = vld [vmem:[#allocation2 + $0x28] sm:$0xe]  ;;  %v1879_v3 = vsel %vm3194_vm11, %v1874_v36, %v1878_v6  ;;  %v2074_v16 = vunpack.c.l.b16 %v2044_v47  ;;  %v1500_v2 = vsel %vm3176_vm10, %v2602_v41, %v1499_v42 }
  0x99   : > { %v2071_v60 = vunpack.c.l.b16 %v2032_v50  ;;  %v2599_v35 = vrot.slane %v1449_v57, 9  ;;  %v1903_v11 = vunpack.c.l.b16 %v1879_v3  ;;  %v1496_v50 = vsel %vm3176_vm10, %v2601_v39, %v1495_v40 }
  0x9a   : > { %v1523_v7 = vunpack.c.l.b16 %v1496_v50  ;;  %v1524_v36 = vunpack.c.l.b16 %v1500_v2 }
  0x9b   : > { %v2078_v20 = vpack.c.b16 %v2072_v63, %v2071_v60  ;;  %v1488_v21 = vsel %vm3176_vm10, %v2599_v35, %v1487_v8  ;;  %v1907_v59 = vpack.c.b16 %v1903_v11, %v1902_v23 }
  0x9c   : > { %1733 = vmatmul.bf16.gmra.mxu2 %v2646_v18  ;;  %v2051_v18 = vrot.slane %v3536_v34, 5  ;;  %v1521_v32 = vunpack.c.l.b16 %v1488_v21 }
  0x9e   : > { %v2052_v29 = vsel %vm3176_vm10, %v2722_v25, %v2051_v18 }
  0x9f   : > { %v2076_v34 = vunpack.c.l.b16 %v2052_v29 }
  0xa0   : > { %2141 = vmatmul.bf16.vlgmr.msra.gmra.mxu0 %v2077_v30  ;;  %v1527_v30 = vpack.c.b16 %v1522_v38, %v1521_v32 }
  0xa1   : > { %v2080_v37 = vpack.c.b16 %v2076_v34, %v2075_v33 }
  0xa6   : > { %1978 = vmatmul.bf16.gmra.mxu3 %v1906_v62  ;;  %v2073_v62 = vunpack.c.l.b16 %v2040_v61 }
  0xa8   : > { %1594 = vmatmul.bf16.gmra.mxu1 %v1526_v52  ;;  %v2079_v46 = vpack.c.b16 %v2074_v16, %v2073_v62  ;;  %v1528_v52 = vpack.c.b16 %v1524_v36, %v1523_v7 }
  0xac   : > { %1738 = vmatmul.bf16.gmra.mxu2 %v2650_v1 }
  0xb0   : > { %2146 = vmatmul.bf16.gmra.mxu0 %v2078_v20 }
  0xb5   : > { %v3568_v31 = vpop.f32.mrf.mxu1 }
  0xb6   : > { %1983 = vmatmul.bf16.gmra.mxu3 %v1907_v59 }
  0xb8   : > { %1599 = vmatmul.bf16.gmra.mxu1 %v1527_v30  ;;  %v770_v49 = vpop.f32.mrf.mxu0 }
  0xbb   : > { %v1039_v45 = vpop.f32.mrf.mxu2 }
  0xbc   : > { %2156 = vmatmul.bf16.vlgmr.msra.gmra.mxu2 %v2080_v37 }
  0xbd   : > { %v782_v48 = vpop.f32.mrf.mxu1 }
  0xc0   : > { %2151 = vmatmul.bf16.gmra.mxu0 %v2079_v46  ;;  %v772_v6 = vpop.f32.mrf.mxu0 }
  0xc3   : > { %v1041_v53 = vpop.f32.mrf.mxu2 }
  0xc5   : > { %v785_v4 = vpop.f32.mrf.mxu1 }
  0xc8   : > { %1604 = vmatmul.bf16.gmra.mxu1 %v1528_v52 }
  0xc9   : > { %v1172_v55 = vpop.f32.mrf.mxu3 }
  0xcd   : > { %v775_v28 = vpop.f32.mrf.mxu0  ;;  %v787_v56 = vpop.f32.mrf.mxu1 }
  0xcf   : > { %v1044_v58 = vpop.f32.mrf.mxu2 }
  0xd1   : > { %v1174_v57 = vpop.f32.mrf.mxu3 }
  0xd5   : > { %v777_v60 = vpop.f32.mrf.mxu0  ;;  %v871_v63 = vpop.f32.mrf.mxu1 }
  0xd6   : > { %v872_v1 = vadd.f32 %v871_v63, %v770_v49 }
  0xd7   : > { %v1046_v3 = vpop.f32.mrf.mxu2 }
  0xd8   : > { %v1059_v44 = vadd.f32 %v1039_v45, %v872_v1 }
  0xd9   : > { %v1177_v19 = vpop.f32.mrf.mxu3 }
  0xda   : > { %v1192_v35 = vadd.f32 %v1172_v55, %v1059_v44 }
  0xdd   : > { %v1417_v8 = vpop.f32.mrf.mxu0  ;;  %v873_v13 = vpop.f32.mrf.mxu1 }
  0xde   : > { %v1437_v9 = vadd.f32 %v1417_v8, %v1192_v35  ;;  %v874_v23 = vadd.f32 %v873_v13, %v772_v6 }
  0xdf   : > { %v1049_v12 = vpop.f32.mrf.mxu2 }
  0xe0   : > { %v1060_v17 = vadd.f32 %v1041_v53, %v874_v23 }
  0xe1   : > { %v3580_v11 = vpop.f32.mrf.mxu3 }
  0xe2   : > { %v1193_v55 = vadd.f32 %v1174_v57, %v1060_v17 }
  0xe5   : > { %v1419_v20 = vpop.f32.mrf.mxu0  ;;  %v876_v21 = vpop.f32.mrf.mxu1 }
  0xe6   : > { %v877_v51 = vadd.f32 %v876_v21, %v775_v28 }
  0xe7   : > { %v1051_v18 = vpop.f32.mrf.mxu2 }
  0xe8   : > { %v1061_v15 = vadd.f32 %v1044_v58, %v877_v51 }
  0xe9   : > { %v1182_v0 = vpop.f32.mrf.mxu3 }
  0xea   : > { %v1194_v24 = vadd.f32 %v1177_v19, %v1061_v15 }
  0xed   : > { %v1422_v25 = vpop.f32.mrf.mxu0  ;;  %v878_v59 = vpop.f32.mrf.mxu1 }
  0xee   : > { %v1439_v43 = vadd.f32 %v1422_v25, %v1194_v24  ;;  %v879_v32 = vadd.f32 %v878_v59, %v777_v60 }
  0xef   : > { %v1054_v54 = vpop.f32.mrf.mxu2 }
  0xf0   : > { %v1062_v14 = vadd.f32 %v1046_v3, %v879_v32 }
  0xf1   : > { %v3582_v38 = vpop.f32.mrf.mxu3 }
  0xf5   : > { %v1424_v5 = vpop.f32.mrf.mxu0  ;;  %v881_v26 = vpop.f32.mrf.mxu1 }
  0xf6   : > { %v882_v27 = vadd.f32 %v881_v26, %v3568_v31 }
  0xf7   : > { %v1056_v30 = vpop.f32.mrf.mxu2 }
  0xf8   : > { %v1063_v33 = vadd.f32 %v1049_v12, %v882_v27 }
  0xf9   : > { %v3585_v29 = vpop.f32.mrf.mxu3 }
  0xfa   : > { %v1196_v34 = vadd.f32 %v1182_v0, %v1063_v33 }
  0xfd   : > { %v1427_v61 = vpop.f32.mrf.mxu0  ;;  %v883_v47 = vpop.f32.mrf.mxu1 }
  0xfe   : > { %v3587_v22 = vadd.f32 %v1427_v61, %v1196_v34  ;;  %v884_v10 = vadd.f32 %v883_v47, %v782_v48 }
  0xff   : > { %v1724_v62 = vpop.f32.mrf.mxu2 }
 0x100   : > { %v1064_v16 = vadd.f32 %v1051_v18, %v884_v10 }
 0x101   : > { %v3589_v37 = vpop.f32.mrf.mxu3 }
 0x105   : > { %v3591_v49 = vpop.f32.mrf.mxu0  ;;  %v886_v39 = vpop.f32.mrf.mxu1 }
 0x106   : > { %v887_v40 = vadd.f32 %v886_v39, %v785_v4  ;;  %v1438_v4 = vadd.f32 %v1419_v20, %v1193_v55  ;;  %v1197_v39 = vadd.f32 %v3582_v38, %v1064_v16 }
 0x107   : > { %v1726_v41 = vpop.f32.mrf.mxu2 }
 0x108   : > { %v3593_v31 = vadd.f32 %v1054_v54, %v887_v40 }
 0x109   : > { %v1969_v42 = vpop.f32.mrf.mxu3 }
 0x10d   : > { %v3595_v45 = vpop.f32.mrf.mxu0  ;;  %v888_v46 = vpop.f32.mrf.mxu1 }
 0x10e   : > { %v889_v50 = vadd.f32 %v888_v46, %v787_v56 }
 0x10f   : > { %v1729_v2 = vpop.f32.mrf.mxu2 }
 0x110   : > { %v3597_v7 = vadd.f32 %v1056_v30, %v889_v50 }
 0x111   : > { %v1971_v48 = vpop.f32.mrf.mxu3 }
 0x115   : > { %v3599_v36 = vpop.f32.mrf.mxu0  ;;  %v1590_v6 = vpop.f32.mrf.mxu1 }
 0x116   : > { %v1610_v52 = vadd.f32 %v1590_v6, %v1437_v9  ;;  %v1195_v9 = vadd.f32 %v3580_v11, %v1062_v14 }
 0x117   : > { %v1731_v53 = vpop.f32.mrf.mxu2 }
 0x118   : > { %v1744_v28 = vadd.f32 %v1724_v62, %v1610_v52  ;;  %v1440_v25 = vadd.f32 %v1424_v5, %v1195_v9 }
 0x119   : > { %v1974_v1 = vpop.f32.mrf.mxu3 }
 0x11a   : > { %v1989_v19 = vadd.f32 %v1969_v42, %v1744_v28 }
 0x11d   : > { %v2142_v58 = vpop.f32.mrf.mxu0  ;;  %v1592_v60 = vpop.f32.mrf.mxu1 }
 0x11e   : > { %v1611_v63 = vadd.f32 %v1592_v60, %v1438_v4  ;;  %v2162_v35 = vadd.f32 %v2142_v58, %v1989_v19 }
 0x11f   : > { %v1734_v56 = vpop.f32.mrf.mxu2 }
 0x120   : > { %v1745_v3 = vadd.f32 %v1726_v41, %v1611_v63  ;;  %v2200_v21 = vmul.f32 %v2162_v35, %v2162_v35 }
 0x121   : > { %v1976_v0 = vpop.f32.mrf.mxu3 }
 0x122   : > { %v1990_v44 = vadd.f32 %v1971_v48, %v1745_v3 }
 0x125   : > { %v2144_v8 = vpop.f32.mrf.mxu0  ;;  %v1595_v13 = vpop.f32.mrf.mxu1 }
 0x126   : > { %v2163_v23 = vadd.f32 %v2144_v8, %v1990_v44  ;;  %v1612_v12 = vadd.f32 %v1595_v13, %v1439_v43 }
 0x127   : > { %v1736_v15 = vpop.f32.mrf.mxu2 }
 0x128   : > { %v2862_v57 = vpack.c.bf16 %v2163_v23, %v2162_v35  ;;  %v2186_v17 = vadd.f32 %v2163_v23, %v2162_v35  ;;  %v2201_v20 = vmul.f32 %v2163_v23, %v2163_v23  ;;  %v1746_v51 = vadd.f32 %v1729_v2, %v1612_v12 }
 0x129   : > { %v1979_v30 = vpop.f32.mrf.mxu3  ;;  %v1442_v2 = vadd.f32 %v3591_v49, %v1197_v39 }
 0x12a   : > { %2863 = vst [vmem:[%s3607_s26] sm:$0xff] %v2862_v57   ;;  %v2208_v18 = vadd.f32 %v2201_v20, %v2200_v21  ;;  %v1991_v24 = vadd.f32 %v1974_v1, %v1746_v51 }
 0x12d   : > { %v2147_v59 = vpop.f32.mrf.mxu0  ;;  %v1597_v11 = vpop.f32.mrf.mxu1 }
 0x12e   : > { %v2164_v43 = vadd.f32 %v2147_v59, %v1991_v24  ;;  %v1613_v32 = vadd.f32 %v1597_v11, %v1440_v25 }
 0x12f   : > { %v1739_v34 = vpop.f32.mrf.mxu2 }
 0x130   : > { %v2187_v54 = vadd.f32 %v2186_v17, %v2164_v43  ;;  %v2202_v14 = vmul.f32 %v2164_v43, %v2164_v43  ;;  %v1747_v26 = vadd.f32 %v1731_v53, %v1613_v32 }
 0x131   : > { %v1981_v48 = vpop.f32.mrf.mxu3 }
 0x132   : > { %v2209_v27 = vadd.f32 %v2208_v18, %v2202_v14  ;;  %v1992_v33 = vadd.f32 %v1976_v0, %v1747_v26 }
 0x135   : > { %v2149_v61 = vpop.f32.mrf.mxu0  ;;  %v1600_v47 = vpop.f32.mrf.mxu1 }
 0x136   : > { %v2165_v10 = vadd.f32 %v2149_v61, %v1992_v33  ;;  %v1614_v62 = vadd.f32 %v1600_v47, %v3587_v22  ;;  %v1198_v22 = vadd.f32 %v3585_v29, %v3593_v31 }
 0x137   : > { %v1741_v28 = vpop.f32.mrf.mxu2 }
 0x138   : > { %v2867_v5 = vpack.c.bf16 %v2165_v10, %v2164_v43  ;;  %v2188_v40 = vadd.f32 %v2187_v54, %v2165_v10  ;;  %v2203_v41 = vmul.f32 %v2165_v10, %v2165_v10  ;;  %v1748_v42 = vadd.f32 %v1734_v56, %v1614_v62 }
 0x139   : > { %v1443_v63 = vadd.f32 %v3595_v45, %v1198_v22  ;;  %v1199_v56 = vadd.f32 %v3589_v37, %v3597_v7  ;;  %v1984_v44 = vpop.f32.mrf.mxu3 }
 0x13a   : > { %2882 = vst [vmem:[%s3607_s26 + $0x8] sm:$0xff] %v2867_v5   ;;  %v2210_v46 = vadd.f32 %v2209_v27, %v2203_v41  ;;  %v1993_v50 = vadd.f32 %v1979_v30, %v1748_v42 }
 0x13b   : > { %v1444_v9 = vadd.f32 %v3599_v36, %v1199_v56 }
 0x13d   : > { %v2152_v6 = vpop.f32.mrf.mxu0  ;;  %v1602_v52 = vpop.f32.mrf.mxu1 }
 0x13e   : > { %v2166_v53 = vadd.f32 %v2152_v6, %v1993_v50  ;;  %v1615_v55 = vadd.f32 %v1602_v52, %v1442_v2 }
 0x13f   : > { %v2157_v31 = vpop.f32.mrf.mxu2 }
 0x140   : > { %v2189_v4 = vadd.f32 %v2188_v40, %v2166_v53  ;;  %v2204_v38 = vmul.f32 %v2166_v53, %v2166_v53  ;;  %v1749_v16 = vadd.f32 %v1736_v15, %v1615_v55 }
 0x141   : > { %v1986_v37 = vpop.f32.mrf.mxu3 }
 0x142   : > { %v2211_v58 = vadd.f32 %v2210_v46, %v2204_v38  ;;  %v1994_v60 = vadd.f32 %v1981_v48, %v1749_v16 }
 0x145   : > { %v2154_v1 = vpop.f32.mrf.mxu0  ;;  %v1605_v19 = vpop.f32.mrf.mxu1 }
 0x146   : > { %v2167_v49 = vadd.f32 %v2154_v1, %v1994_v60  ;;  %v1616_v3 = vadd.f32 %v1605_v19, %v1443_v63 }
 0x147   : > { %v2159_v18 = vpop.f32.mrf.mxu2 }
 0x148   : > { %v2872_v35 = vpack.c.bf16 %v2167_v49, %v2166_v53  ;;  %v2190_v8 = vadd.f32 %v2189_v4, %v2167_v49  ;;  %v2205_v13 = vmul.f32 %v2167_v49, %v2167_v49  ;;  %v1750_v29 = vadd.f32 %v1739_v34, %v1616_v3 }
 0x14a   : > { %2883 = vst [vmem:[%s3607_s26 + $0x10] sm:$0xff] %v2872_v35   ;;  %v2212_v23 = vadd.f32 %v2211_v58, %v2205_v13  ;;  %v1995_v12 = vadd.f32 %v1984_v44, %v1750_v29 }
 0x14c   : > { %v2168_v45 = vadd.f32 %v2157_v31, %v1995_v12 }
 0x14d   : > { %v1607_v21 = vpop.f32.mrf.mxu1 }
 0x14e   : > { %v2191_v57 = vadd.f32 %v2190_v8, %v2168_v45  ;;  %v2206_v17 = vmul.f32 %v2168_v45, %v2168_v45  ;;  %v1617_v20 = vadd.f32 %v1607_v21, %v1444_v9 }
 0x150   : > { %v2213_v51 = vadd.f32 %v2212_v23, %v2206_v17  ;;  %v1751_v0 = vadd.f32 %v1741_v28, %v1617_v20 }
 0x152   : > { %v1996_v7 = vadd.f32 %v1986_v37, %v1751_v0 }
 0x154   : > { %v2169_v15 = vadd.f32 %v2159_v18, %v1996_v7 }
 0x156   : > { %v2877_v24 = vpack.c.bf16 %v2169_v15, %v2168_v45  ;;  %v2192_v25 = vadd.f32 %v2191_v57, %v2169_v15  ;;  %v2207_v59 = vmul.f32 %v2169_v15, %v2169_v15 }
 0x158   : > { %2884 = vst [vmem:[%s3607_s26 + $0x18] sm:$0xff] %v2877_v24   ;;  %v2193_v11 = vrot.slane %v2192_v25, 4  ;;  %v2214_v43 = vadd.f32 %v2213_v51, %v2207_v59 }
 0x15a   : > { %v2194_v36 = vadd.f32 %v2193_v11, %v2192_v25  ;;  %v2215_v32 = vrot.slane %v2214_v43, 4 }
 0x15c   : > { %v2195_v54 = vrot.slane %v2194_v36, 2  ;;  %v2216_v14 = vadd.f32 %v2215_v32, %v2214_v43 }
 0x15e   : > { %v2196_v26 = vadd.f32 %v2195_v54, %v2194_v36  ;;  %v2217_v27 = vrot.slane %v2216_v14, 2 }
 0x160   : > { %v2197_v30 = vrot.slane %v2196_v26, 1  ;;  %v2218_v33 = vadd.f32 %v2217_v27, %v2216_v14 }
 0x162   : > { %v2198_v34 = vadd.f32 %v2197_v30, %v2196_v26  ;;  %v2219_v61 = vrot.slane %v2218_v33, 1 }
 0x164   : > { %2199 = vst [vmem:[%s315_s28] sm:$0x1] %v2198_v34  ;;  %v2220_v47 = vadd.f32 %v2219_v61, %v2218_v33 }
 0x166   : > { %2221 = vst [vmem:[%s321_s7] sm:$0x1] %v2220_v47 }
 0x167 PF: > { %s17_s23 = sadd.s32 1, %s2950_s23   ;;  %s3654_s21 = smov %s2946_s22 }
 0x168   : > { %p14_p5 = scmp.ge.s32.totalorder %s17_s23, 4   ;;  %s3655_s22 = smov %s3657_s24 }
 0x16a   :  { %16 = sbr.rel (!%p14_p5) target bundleno = 2 (0x2), region = 95 }

</bundles_post_ra>
